<compile_context>
chip_gen: v7x
topology: tpu7x:2x2x1
jax: 0.10.0
libtpu: 0.0.40
codegen_flags: <defaults>
</compile_context>

<pallas_src>
import functools

import jax
import jax.numpy as jnp
from jax import lax
from jax.experimental import pallas as pl
from jax.experimental.pallas import tpu as pltpu

_BN_EPS = 1e-5
_LANE = 128
_HALO = 4                         # packed halo rows fetched below each row tile


def _round_up(x, m):
    return ((x + m - 1) // m) * m


def _vmem_limit_bytes():
    """Generation-aware scoped-VMEM limit: ~75% of physical, clamped 32..100MiB
    (v5e/v6e: 96 MiB, v7x: 48 MiB)."""
    try:
        cap = int(pltpu.get_tpu_info().vmem_capacity_bytes)
    except Exception:
        cap = 64 * 1024 * 1024
    return int(max(32 * 1024 * 1024, min(100 * 1024 * 1024, (cap * 3) // 4)))


def _pick_row_tile(ho, wo, cout_p):
    """Output rows per grid step: biggest tile whose f32 conv1 accumulator
    ((th+2)*wo*cout_p*4 B) stays register-friendly (<=128 KiB), never much
    larger than the image, always a multiple of _HALO."""
    best = 8
    for th in (16, 32):
        if (th + 2) * wo * cout_p * 4 <= 128 * 1024:
            best = th
    if ho <= best:
        return max(_HALO, _round_up(ho, _HALO))
    return best


def _mish(x):
    # mish(x) = x * tanh(softplus(x)), numerically stable softplus (f32).
    sp = jnp.where(x > 20.0, x, jnp.log1p(jnp.exp(jnp.minimum(x, 20.0))))
    return x * jnp.tanh(sp)


def _fold_bn(gamma, beta, mean, var):
    scale = gamma * lax.rsqrt(var + _BN_EPS)
    return scale, beta - mean * scale


# ---------------------------------------------------------------------------
# Fused Pallas kernel: one (batch, row-tile) grid step does the whole block.
# ---------------------------------------------------------------------------
def _res_block_kernel(*refs, s, th, ho, wo, hop, has_proj):
    if has_proj:
        (xm_ref, xh_ref, w1_ref, s1_ref, b1_ref, w2_ref, s2_ref, b2_ref,
         wsc_ref, ssc_ref, bsc_ref, out_ref, xs_ref, ys_ref) = refs
    else:
        (xm_ref, xh_ref, w1_ref, s1_ref, b1_ref, w2_ref, s2_ref, b2_ref,
         out_ref, xs_ref, ys_ref) = refs

    cin_p = xs_ref.shape[-1]
    cout_p = out_ref.shape[-1]
    ty = th + 2                              # y rows incl. a 1-row halo each side
    r0 = pl.program_id(1) * th               # first output row of this tile

    # ---- assemble the packed-x row strip (main rows + bottom halo) in VMEM --
    xs_ref[:, 0:th] = xm_ref[...]
    xs_ref[:, th:th + _HALO] = xh_ref[...]

    # ---- conv1 (stride s): 9 shifted MXU matmuls, f32 register accumulation -
    acc1 = jnp.zeros((ty * wo, cout_p), jnp.float32)
    for dy in range(3):
        for dx in range(3):
            p = (dy % s) * s + (dx % s)      # stride phase of this tap
            patch = xs_ref[p, pl.ds(dy // s, ty), pl.ds(dx // s, wo), :]
            acc1 = acc1 + jnp.dot(patch.reshape(ty * wo, cin_p),
                                  w1_ref[dy * 3 + dx],
                                  preferred_element_type=jnp.float32)

    # folded BN + Mish (f32); y strip kept resident in VMEM scratch as bf16
    y = _mish(acc1 * s1_ref[...] + b1_ref[...]).reshape(ty, wo, cout_p)
    zcol = jnp.zeros((ty, 1, cout_p), ys_ref.dtype)
    ys_ref[:, 0:1, :] = zcol                 # left / right zero column halo
    ys_ref[:, wo + 1:wo + 2, :] = zcol
    ys_ref[:, 1:wo + 1, :] = y.astype(ys_ref.dtype)

    # conv2's spatial zero padding: zero the y-halo rows that fall outside the
    # image (top row of the first tile, bottom rows of the last tile).
    @pl.when(pl.program_id(1) == 0)
    def _():
        ys_ref[0:1, :, :] = jnp.zeros((1, wo + 2, cout_p), ys_ref.dtype)

    @pl.when(pl.program_id(1) == pl.num_programs(1) - 1)
    def _():
        nz = hop - ho + 1                    # static: rows with gy >= ho
        ys_ref[ty - nz:ty, :, :] = jnp.zeros((nz, wo + 2, cout_p), ys_ref.dtype)

    # ---- shortcut: center tap of the resident packed x strip ----------------
    p_ctr = (1 % s) * s + (1 % s)
    center = xs_ref[p_ctr, pl.ds(1 // s + 1, th), pl.ds(1 // s, wo), :]
    center = center.reshape(th * wo, cin_p)
    if has_proj:                             # 1x1 stride-s conv + BN
        sc = jnp.dot(center, wsc_ref[...], preferred_element_type=jnp.float32)
        sc = sc * ssc_ref[...] + bsc_ref[...]
    else:                                    # identity (cin == cout, s == 1)
        sc = center.astype(jnp.float32)

    # ---- conv2 (stride 1) over the resident y strip, + BN + add + Mish ------
    acc2 = jnp.zeros((th * wo, cout_p), jnp.float32)
    for dy in range(3):
        for dx in range(3):
            patch = ys_ref[pl.ds(dy, th), pl.ds(dx, wo), :]
            acc2 = acc2 + jnp.dot(patch.reshape(th * wo, cout_p),
                                  w2_ref[dy * 3 + dx],
                                  preferred_element_type=jnp.float32)

    out = _mish(acc2 * s2_ref[...] + b2_ref[...] + sc)
    out_ref[...] = out.reshape(1, th, wo, cout_p).astype(out_ref.dtype)


# ---------------------------------------------------------------------------
# pallas_call wrapper
# ---------------------------------------------------------------------------
def _res_block_call(xps, weights, *, s, th, ho, wo, hop, has_proj):
    NP, hpp, wpp, cin_p = xps.shape          # NP = N * s * s (batch x phases)
    P = s * s
    N = NP // P
    cout_p = weights[3].shape[-1]            # w2 is (9, cout_p, cout_p)
    grid = (N, hop // th)

    # Row-strip fetches (main TH rows + 4-row bottom halo of the same array);
    # weights / folded-BN vectors use constant index maps (fetched once).
    xm_spec = pl.BlockSpec((P, th, wpp, cin_p), lambda n, h: (n, h, 0, 0))
    xh_spec = pl.BlockSpec((P, _HALO, wpp, cin_p),
                           lambda n, h: (n, (h + 1) * (th // _HALO), 0, 0))
    w1_spec = pl.BlockSpec((9, cin_p, cout_p), lambda n, h: (0, 0, 0))
    w2_spec = pl.BlockSpec((9, cout_p, cout_p), lambda n, h: (0, 0, 0))
    v_spec = pl.BlockSpec((1, cout_p), lambda n, h: (0, 0))
    out_spec = pl.BlockSpec((1, th, wo, cout_p), lambda n, h: (n, h, 0, 0))

    in_specs = [xm_spec, xh_spec, w1_spec, v_spec, v_spec, w2_spec, v_spec, v_spec]
    if has_proj:
        in_specs += [pl.BlockSpec((cin_p, cout_p), lambda n, h: (0, 0)),
                     v_spec, v_spec]

    return pl.pallas_call(
        functools.partial(_res_block_kernel, s=s, th=th, ho=ho, wo=wo, hop=hop,
                          has_proj=has_proj),
        out_shape=jax.ShapeDtypeStruct((N, hop, wo, cout_p), jnp.float32),
        grid=grid,
        in_specs=in_specs,
        out_specs=out_spec,
        scratch_shapes=[
            pltpu.VMEM((P, th + _HALO, wpp, cin_p), jnp.bfloat16),   # x strip
            pltpu.VMEM((th + 2, wo + 2, cout_p), jnp.bfloat16),      # y strip
        ],
        compiler_params=pltpu.CompilerParams(
            dimension_semantics=("parallel", "parallel"),
            vmem_limit_bytes=_vmem_limit_bytes()),
    )(xps, xps, *weights)


# ---------------------------------------------------------------------------
# ResidualBlock forward (public API: NCHW in / NCHW out, like PyTorch)
# ---------------------------------------------------------------------------
def residual_block_forward(x_nchw, params, *, stride=1):
    s = int(stride)                          # supported strides: 1, 2
    N, Cin, H, W = x_nchw.shape
    Cout = params["w1"].shape[-1]
    cin_p, cout_p = _round_up(Cin, _LANE), _round_up(Cout, _LANE)
    ho, wo = (H - 1) // s + 1, (W - 1) // s + 1
    th = _pick_row_tile(ho, wo, cout_p)
    hop = _round_up(ho, th)                  # output rows padded to a full tile
    has_proj = "wsc" in params
    assert has_proj or cin_p == cout_p

    # --- boundary glue (plain XLA): NCHW->NHWC, lane-pad channels, zero-pad
    # spatially, cast to bf16, pack BOTH row and column stride-phases so every
    # 3x3 tap in the kernel is a contiguous slice of the packed strip. --------
    hpp = hop + _HALO                        # packed rows incl. top/bottom halo
    wpp = wo + (2 // s)                      # packed cols incl. right halo
    x = jnp.transpose(x_nchw, (0, 2, 3, 1))                       # (N,H,W,Cin)
    x = jnp.pad(x, ((0, 0), (0, 0), (0, 0), (0, cin_p - Cin)))    # lane pad
    x = jnp.pad(x, ((0, 0),
                    (s + 1, s * hpp - H - s - 1),                 # rows
                    (1, s * wpp - W - 1),                         # cols
                    (0, 0)))
    xps = (x.astype(jnp.bfloat16)
           .reshape(N, hpp, s, wpp, s, cin_p)   # rows->(hr,phase), cols->(wr,phase)
           .transpose(0, 2, 4, 1, 3, 5)         # (N, pr, pc, hr, wr, C)
           .reshape(N * s * s, hpp, wpp, cin_p))

    def prep_w3(w, ci_p, co_p):              # (3,3,ci,co) -> (9,ci_p,co_p) bf16
        w = jnp.pad(w, ((0, 0), (0, 0),
                        (0, ci_p - w.shape[2]), (0, co_p - w.shape[3])))
        return w.reshape(9, ci_p, co_p).astype(jnp.bfloat16)

    def prep_v(v):                           # (co,) -> (1, cout_p) f32
        return jnp.pad(v, (0, cout_p - v.shape[0])).reshape(1, cout_p).astype(jnp.float32)

    weights = [prep_w3(params["w1"], cin_p, cout_p),
               prep_v(params["scale1"]), prep_v(params["bias1"]),
               prep_w3(params["w2"], cout_p, cout_p),
               prep_v(params["scale2"]), prep_v(params["bias2"])]
    if has_proj:
        wsc = jnp.pad(params["wsc"], ((0, cin_p - Cin), (0, cout_p - Cout)))
        weights += [wsc.astype(jnp.bfloat16),
                    prep_v(params["scale_sc"]), prep_v(params["bias_sc"])]

    out = _res_block_call(xps, weights, s=s, th=th, ho=ho, wo=wo, hop=hop,
                          has_proj=has_proj)
    out = out[:, :ho, :, :Cout]                              # drop row/lane pad
    return jnp.transpose(out, (0, 3, 1, 2))                  # NHWC -> NCHW


# ---------------------------------------------------------------------------
# Deterministic parameter init + pure-JAX reference for a sanity check
# ---------------------------------------------------------------------------
def init_residual_block_params(key, cin, cout, stride):
    ks = jax.random.split(key, 3)

    def conv_w(k, shape):
        fan_in = shape[0] * shape[1] * shape[2]
        return jax.random.normal(k, shape, jnp.float32) / jnp.sqrt(float(fan_in))

    def bn(k, c):
        k1, k2, k3, k4 = jax.random.split(k, 4)
        gamma = 1.0 + 0.1 * jax.random.normal(k1, (c,), jnp.float32)
        beta = 0.1 * jax.random.normal(k2, (c,), jnp.float32)
        mean = 0.1 * jax.random.normal(k3, (c,), jnp.float32)
        var = 0.5 + 0.5 * jnp.abs(jax.random.normal(k4, (c,), jnp.float32))
        return _fold_bn(gamma, beta, mean, var)

    p = {}
    p["w1"] = conv_w(jax.random.fold_in(ks[0], 0), (3, 3, cin, cout))
    p["scale1"], p["bias1"] = bn(jax.random.fold_in(ks[0], 1), cout)
    p["w2"] = conv_w(jax.random.fold_in(ks[1], 0), (3, 3, cout, cout))
    p["scale2"], p["bias2"] = bn(jax.random.fold_in(ks[1], 1), cout)
    if stride != 1 or cin != cout:
        p["wsc"] = conv_w(jax.random.fold_in(ks[2], 0), (1, 1, cin, cout))[0, 0]
        p["scale_sc"], p["bias_sc"] = bn(jax.random.fold_in(ks[2], 1), cout)
    return p


def reference_forward(x_nchw, p, stride, *, match_bf16=True):
    # match_bf16=True mirrors the kernel's bf16 matmul operands / bf16 y and
    # identity-shortcut storage so the comparison isolates kernel correctness.
    q = ((lambda a: a.astype(jnp.bfloat16).astype(jnp.float32))
         if match_bf16 else (lambda a: a))

    def conv(x, w_hwio, s, pad):
        return lax.conv_general_dilated(
            q(x), q(w_hwio), window_strides=(s, s),
            padding=[(pad, pad), (pad, pad)],
            dimension_numbers=("NCHW", "HWIO", "NCHW"),
            precision=lax.Precision.HIGHEST)

    def bn(x, scale, bias):
        return x * scale[None, :, None, None] + bias[None, :, None, None]

    y = _mish(bn(conv(x_nchw, p["w1"], stride, 1), p["scale1"], p["bias1"]))
    y = q(y)
    left = bn(conv(y, p["w2"], 1, 1), p["scale2"], p["bias2"])
    if "wsc" in p:
        sc = bn(conv(x_nchw, p["wsc"][None, None], stride, 0),
                p["scale_sc"], p["bias_sc"])
    else:
        sc = q(x_nchw)
    return _mish(left + sc)


if __name__ == "__main__":
    N, H, W = 2, 16, 16
    configs = [
        (4, 8, 1),   # projection shortcut (channel change), stride 1
        (4, 8, 2),   # projection shortcut, strided conv (row+col phase packing)
        (8, 8, 1),   # identity shortcut
    ]
    root = jax.random.PRNGKey(0)
    for i, (cin, cout, stride) in enumerate(configs):
        kx, kp = jax.random.split(jax.random.fold_in(root, i))
        x = jax.random.normal(kx, (N, cin, H, W), jnp.float32)
        params = init_residual_block_params(kp, cin, cout, stride)

        fwd = jax.jit(functools.partial(residual_block_forward, stride=stride))
        out = jax.block_until_ready(fwd(x, params))

        ref = reference_forward(x, params, stride)
        assert out.shape == ref.shape, (out.shape, ref.shape)
        err = float(jnp.max(jnp.abs(out - ref)))
        assert jnp.allclose(out, ref, rtol=2e-3, atol=1e-3), (cin, cout, stride, err)
    print("KERNEL_OK")
</pallas_src>

<mosaic_0001>
module attributes {stable_mosaic.version = 11 : i64} {
  func.func @_res_block_kernel(%arg0: i32, %arg1: i32, %arg2: memref<1x8x18x128xbf16, #tpu.memory_space<vmem>>, %arg3: memref<1x4x18x128xbf16, #tpu.memory_space<vmem>>, %arg4: memref<9x128x128xbf16, #tpu.memory_space<vmem>>, %arg5: memref<1x128xf32, #tpu.memory_space<vmem>>, %arg6: memref<1x128xf32, #tpu.memory_space<vmem>>, %arg7: memref<9x128x128xbf16, #tpu.memory_space<vmem>>, %arg8: memref<1x128xf32, #tpu.memory_space<vmem>>, %arg9: memref<1x128xf32, #tpu.memory_space<vmem>>, %arg10: memref<128x128xbf16, #tpu.memory_space<vmem>>, %arg11: memref<1x128xf32, #tpu.memory_space<vmem>>, %arg12: memref<1x128xf32, #tpu.memory_space<vmem>>, %arg13: memref<1x8x16x128xf32, #tpu.memory_space<vmem>>, %arg14: memref<1x12x18x128xbf16, #tpu.memory_space<vmem>>, %arg15: memref<10x18x128xbf16, #tpu.memory_space<vmem>>) attributes {dimension_semantics = [#tpu.dimension_semantics<parallel>, #tpu.dimension_semantics<parallel>], iteration_bounds = array<i64: 2, 2>, scalar_prefetch = 0 : i64, scratch_operands = 2 : i64, tpu.core_type = #tpu.core_type<tc>, window_params = [{transform_indices = @transform_0, window_bounds = array<i64: 1, 8, 18, 128>}, {transform_indices = @transform_1, window_bounds = array<i64: 1, 4, 18, 128>}, {pipeline_mode = #tpu.pipeline_mode<synchronous>, transform_indices = @transform_2, window_bounds = array<i64: 9, 128, 128>}, {pipeline_mode = #tpu.pipeline_mode<synchronous>, transform_indices = @transform_3, window_bounds = array<i64: 1, 128>}, {pipeline_mode = #tpu.pipeline_mode<synchronous>, transform_indices = @transform_4, window_bounds = array<i64: 1, 128>}, {pipeline_mode = #tpu.pipeline_mode<synchronous>, transform_indices = @transform_5, window_bounds = array<i64: 9, 128, 128>}, {pipeline_mode = #tpu.pipeline_mode<synchronous>, transform_indices = @transform_6, window_bounds = array<i64: 1, 128>}, {pipeline_mode = #tpu.pipeline_mode<synchronous>, transform_indices = @transform_7, window_bounds = array<i64: 1, 128>}, {pipeline_mode = #tpu.pipeline_mode<synchronous>, transform_indices = @transform_8, window_bounds = array<i64: 128, 128>}, {pipeline_mode = #tpu.pipeline_mode<synchronous>, transform_indices = @transform_9, window_bounds = array<i64: 1, 128>}, {pipeline_mode = #tpu.pipeline_mode<synchronous>, transform_indices = @transform_10, window_bounds = array<i64: 1, 128>}, {transform_indices = @transform_11, window_bounds = array<i64: 1, 8, 16, 128>}]} {
    %c0 = arith.constant 0 : index
    %c0_0 = arith.constant 0 : index
    %c0_1 = arith.constant 0 : index
    %c0_2 = arith.constant 0 : index
    %0 = vector.load %arg2[%c0, %c0_0, %c0_1, %c0_2] : memref<1x8x18x128xbf16, #tpu.memory_space<vmem>>, vector<1x8x18x128xbf16>
    %c0_3 = arith.constant 0 : index
    %c0_4 = arith.constant 0 : index
    %c0_5 = arith.constant 0 : index
    %c0_6 = arith.constant 0 : index
    %1 = vector.load %arg14[%c0_3, %c0_4, %c0_5, %c0_6] : memref<1x12x18x128xbf16, #tpu.memory_space<vmem>>, vector<1x8x18x128xbf16>
    tpu.vector_store %arg14[%c0_3, %c0_4, %c0_5, %c0_6], %0 {strides = array<i32>} : memref<1x12x18x128xbf16, #tpu.memory_space<vmem>>, vector<1x8x18x128xbf16>,
    %c0_7 = arith.constant 0 : index
    %c0_8 = arith.constant 0 : index
    %c0_9 = arith.constant 0 : index
    %c0_10 = arith.constant 0 : index
    %2 = vector.load %arg3[%c0_7, %c0_8, %c0_9, %c0_10] : memref<1x4x18x128xbf16, #tpu.memory_space<vmem>>, vector<1x4x18x128xbf16>
    %c0_11 = arith.constant 0 : index
    %c8 = arith.constant 8 : index
    %c0_12 = arith.constant 0 : index
    %c0_13 = arith.constant 0 : index
    %3 = vector.load %arg14[%c0_11, %c8, %c0_12, %c0_13] : memref<1x12x18x128xbf16, #tpu.memory_space<vmem>>, vector<1x4x18x128xbf16>
    tpu.vector_store %arg14[%c0_11, %c8, %c0_12, %c0_13], %2 {strides = array<i32>} : memref<1x12x18x128xbf16, #tpu.memory_space<vmem>>, vector<1x4x18x128xbf16>,
    %cst = arith.constant 0.000000e+00 : f32
    %4 = vector.broadcast %cst : f32 to vector<160x128xf32>
    %c0_14 = arith.constant 0 : index
    %c0_15 = arith.constant 0 : index
    %c0_16 = arith.constant 0 : index
    %c0_17 = arith.constant 0 : index
    %5 = vector.load %arg14[%c0_14, %c0_15, %c0_16, %c0_17] : memref<1x12x18x128xbf16, #tpu.memory_space<vmem>>, vector<1x10x16x128xbf16>
    %6 = vector.shape_cast %5 : vector<1x10x16x128xbf16> to vector<10x16x128xbf16>
    %7 = vector.shape_cast %6 : vector<10x16x128xbf16> to vector<160x128xbf16>
    %c0_18 = arith.constant 0 : index
    %c0_19 = arith.constant 0 : index
    %c0_20 = arith.constant 0 : index
    %8 = vector.load %arg4[%c0_18, %c0_19, %c0_20] : memref<9x128x128xbf16, #tpu.memory_space<vmem>>, vector<1x128x128xbf16>
    %9 = vector.shape_cast %8 : vector<1x128x128xbf16> to vector<128x128xbf16>
    %cst_21 = arith.constant dense<0.000000e+00> : vector<160x128xf32>
    %10 = tpu.matmul %7, %9, %cst_21 {dimension_numbers = #tpu.dot_dimension_numbers<[1], [0], [0], [1], [0, 0, 1, 1], [], []>} : vector<160x128xbf16>, vector<128x128xbf16>, vector<160x128xf32> -> vector<160x128xf32>
    %11 = arith.addf %4, %10 : vector<160x128xf32>
    %c0_22 = arith.constant 0 : index
    %c0_23 = arith.constant 0 : index
    %c1 = arith.constant 1 : index
    %c0_24 = arith.constant 0 : index
    %12 = vector.load %arg14[%c0_22, %c0_23, %c1, %c0_24] : memref<1x12x18x128xbf16, #tpu.memory_space<vmem>>, vector<1x10x16x128xbf16>
    %13 = vector.shape_cast %12 : vector<1x10x16x128xbf16> to vector<10x16x128xbf16>
    %14 = vector.shape_cast %13 : vector<10x16x128xbf16> to vector<160x128xbf16>
    %c1_25 = arith.constant 1 : index
    %c0_26 = arith.constant 0 : index
    %c0_27 = arith.constant 0 : index
    %15 = vector.load %arg4[%c1_25, %c0_26, %c0_27] : memref<9x128x128xbf16, #tpu.memory_space<vmem>>, vector<1x128x128xbf16>
    %16 = vector.shape_cast %15 : vector<1x128x128xbf16> to vector<128x128xbf16>
    %cst_28 = arith.constant dense<0.000000e+00> : vector<160x128xf32>
    %17 = tpu.matmul %14, %16, %cst_28 {dimension_numbers = #tpu.dot_dimension_numbers<[1], [0], [0], [1], [0, 0, 1, 1], [], []>} : vector<160x128xbf16>, vector<128x128xbf16>, vector<160x128xf32> -> vector<160x128xf32>
    %18 = arith.addf %11, %17 : vector<160x128xf32>
    %c0_29 = arith.constant 0 : index
    %c0_30 = arith.constant 0 : index
    %c2 = arith.constant 2 : index
    %c0_31 = arith.constant 0 : index
    %19 = vector.load %arg14[%c0_29, %c0_30, %c2, %c0_31] : memref<1x12x18x128xbf16, #tpu.memory_space<vmem>>, vector<1x10x16x128xbf16>
    %20 = vector.shape_cast %19 : vector<1x10x16x128xbf16> to vector<10x16x128xbf16>
    %21 = vector.shape_cast %20 : vector<10x16x128xbf16> to vector<160x128xbf16>
    %c2_32 = arith.constant 2 : index
    %c0_33 = arith.constant 0 : index
    %c0_34 = arith.constant 0 : index
    %22 = vector.load %arg4[%c2_32, %c0_33, %c0_34] : memref<9x128x128xbf16, #tpu.memory_space<vmem>>, vector<1x128x128xbf16>
    %23 = vector.shape_cast %22 : vector<1x128x128xbf16> to vector<128x128xbf16>
    %cst_35 = arith.constant dense<0.000000e+00> : vector<160x128xf32>
    %24 = tpu.matmul %21, %23, %cst_35 {dimension_numbers = #tpu.dot_dimension_numbers<[1], [0], [0], [1], [0, 0, 1, 1], [], []>} : vector<160x128xbf16>, vector<128x128xbf16>, vector<160x128xf32> -> vector<160x128xf32>
    %25 = arith.addf %18, %24 : vector<160x128xf32>
    %c0_36 = arith.constant 0 : index
    %c1_37 = arith.constant 1 : index
    %c0_38 = arith.constant 0 : index
    %c0_39 = arith.constant 0 : index
    %26 = vector.load %arg14[%c0_36, %c1_37, %c0_38, %c0_39] : memref<1x12x18x128xbf16, #tpu.memory_space<vmem>>, vector<1x10x16x128xbf16>
    %27 = vector.shape_cast %26 : vector<1x10x16x128xbf16> to vector<10x16x128xbf16>
    %28 = vector.shape_cast %27 : vector<10x16x128xbf16> to vector<160x128xbf16>
    %c3 = arith.constant 3 : index
    %c0_40 = arith.constant 0 : index
    %c0_41 = arith.constant 0 : index
    %29 = vector.load %arg4[%c3, %c0_40, %c0_41] : memref<9x128x128xbf16, #tpu.memory_space<vmem>>, vector<1x128x128xbf16>
    %30 = vector.shape_cast %29 : vector<1x128x128xbf16> to vector<128x128xbf16>
    %cst_42 = arith.constant dense<0.000000e+00> : vector<160x128xf32>
    %31 = tpu.matmul %28, %30, %cst_42 {dimension_numbers = #tpu.dot_dimension_numbers<[1], [0], [0], [1], [0, 0, 1, 1], [], []>} : vector<160x128xbf16>, vector<128x128xbf16>, vector<160x128xf32> -> vector<160x128xf32>
    %32 = arith.addf %25, %31 : vector<160x128xf32>
    %c0_43 = arith.constant 0 : index
    %c1_44 = arith.constant 1 : index
    %c1_45 = arith.constant 1 : index
    %c0_46 = arith.constant 0 : index
    %33 = vector.load %arg14[%c0_43, %c1_44, %c1_45, %c0_46] : memref<1x12x18x128xbf16, #tpu.memory_space<vmem>>, vector<1x10x16x128xbf16>
    %34 = vector.shape_cast %33 : vector<1x10x16x128xbf16> to vector<10x16x128xbf16>
    %35 = vector.shape_cast %34 : vector<10x16x128xbf16> to vector<160x128xbf16>
    %c4 = arith.constant 4 : index
    %c0_47 = arith.constant 0 : index
    %c0_48 = arith.constant 0 : index
    %36 = vector.load %arg4[%c4, %c0_47, %c0_48] : memref<9x128x128xbf16, #tpu.memory_space<vmem>>, vector<1x128x128xbf16>
    %37 = vector.shape_cast %36 : vector<1x128x128xbf16> to vector<128x128xbf16>
    %cst_49 = arith.constant dense<0.000000e+00> : vector<160x128xf32>
    %38 = tpu.matmul %35, %37, %cst_49 {dimension_numbers = #tpu.dot_dimension_numbers<[1], [0], [0], [1], [0, 0, 1, 1], [], []>} : vector<160x128xbf16>, vector<128x128xbf16>, vector<160x128xf32> -> vector<160x128xf32>
    %39 = arith.addf %32, %38 : vector<160x128xf32>
    %c0_50 = arith.constant 0 : index
    %c1_51 = arith.constant 1 : index
    %c2_52 = arith.constant 2 : index
    %c0_53 = arith.constant 0 : index
    %40 = vector.load %arg14[%c0_50, %c1_51, %c2_52, %c0_53] : memref<1x12x18x128xbf16, #tpu.memory_space<vmem>>, vector<1x10x16x128xbf16>
    %41 = vector.shape_cast %40 : vector<1x10x16x128xbf16> to vector<10x16x128xbf16>
    %42 = vector.shape_cast %41 : vector<10x16x128xbf16> to vector<160x128xbf16>
    %c5 = arith.constant 5 : index
    %c0_54 = arith.constant 0 : index
    %c0_55 = arith.constant 0 : index
    %43 = vector.load %arg4[%c5, %c0_54, %c0_55] : memref<9x128x128xbf16, #tpu.memory_space<vmem>>, vector<1x128x128xbf16>
    %44 = vector.shape_cast %43 : vector<1x128x128xbf16> to vector<128x128xbf16>
    %cst_56 = arith.constant dense<0.000000e+00> : vector<160x128xf32>
    %45 = tpu.matmul %42, %44, %cst_56 {dimension_numbers = #tpu.dot_dimension_numbers<[1], [0], [0], [1], [0, 0, 1, 1], [], []>} : vector<160x128xbf16>, vector<128x128xbf16>, vector<160x128xf32> -> vector<160x128xf32>
    %46 = arith.addf %39, %45 : vector<160x128xf32>
    %c0_57 = arith.constant 0 : index
    %c2_58 = arith.constant 2 : index
    %c0_59 = arith.constant 0 : index
    %c0_60 = arith.constant 0 : index
    %47 = vector.load %arg14[%c0_57, %c2_58, %c0_59, %c0_60] : memref<1x12x18x128xbf16, #tpu.memory_space<vmem>>, vector<1x10x16x128xbf16>
    %48 = vector.shape_cast %47 : vector<1x10x16x128xbf16> to vector<10x16x128xbf16>
    %49 = vector.shape_cast %48 : vector<10x16x128xbf16> to vector<160x128xbf16>
    %c6 = arith.constant 6 : index
    %c0_61 = arith.constant 0 : index
    %c0_62 = arith.constant 0 : index
    %50 = vector.load %arg4[%c6, %c0_61, %c0_62] : memref<9x128x128xbf16, #tpu.memory_space<vmem>>, vector<1x128x128xbf16>
    %51 = vector.shape_cast %50 : vector<1x128x128xbf16> to vector<128x128xbf16>
    %cst_63 = arith.constant dense<0.000000e+00> : vector<160x128xf32>
    %52 = tpu.matmul %49, %51, %cst_63 {dimension_numbers = #tpu.dot_dimension_numbers<[1], [0], [0], [1], [0, 0, 1, 1], [], []>} : vector<160x128xbf16>, vector<128x128xbf16>, vector<160x128xf32> -> vector<160x128xf32>
    %53 = arith.addf %46, %52 : vector<160x128xf32>
    %c0_64 = arith.constant 0 : index
    %c2_65 = arith.constant 2 : index
    %c1_66 = arith.constant 1 : index
    %c0_67 = arith.constant 0 : index
    %54 = vector.load %arg14[%c0_64, %c2_65, %c1_66, %c0_67] : memref<1x12x18x128xbf16, #tpu.memory_space<vmem>>, vector<1x10x16x128xbf16>
    %55 = vector.shape_cast %54 : vector<1x10x16x128xbf16> to vector<10x16x128xbf16>
    %56 = vector.shape_cast %55 : vector<10x16x128xbf16> to vector<160x128xbf16>
    %c7 = arith.constant 7 : index
    %c0_68 = arith.constant 0 : index
    %c0_69 = arith.constant 0 : index
    %57 = vector.load %arg4[%c7, %c0_68, %c0_69] : memref<9x128x128xbf16, #tpu.memory_space<vmem>>, vector<1x128x128xbf16>
    %58 = vector.shape_cast %57 : vector<1x128x128xbf16> to vector<128x128xbf16>
    %cst_70 = arith.constant dense<0.000000e+00> : vector<160x128xf32>
    %59 = tpu.matmul %56, %58, %cst_70 {dimension_numbers = #tpu.dot_dimension_numbers<[1], [0], [0], [1], [0, 0, 1, 1], [], []>} : vector<160x128xbf16>, vector<128x128xbf16>, vector<160x128xf32> -> vector<160x128xf32>
    %60 = arith.addf %53, %59 : vector<160x128xf32>
    %c0_71 = arith.constant 0 : index
    %c2_72 = arith.constant 2 : index
    %c2_73 = arith.constant 2 : index
    %c0_74 = arith.constant 0 : index
    %61 = vector.load %arg14[%c0_71, %c2_72, %c2_73, %c0_74] : memref<1x12x18x128xbf16, #tpu.memory_space<vmem>>, vector<1x10x16x128xbf16>
    %62 = vector.shape_cast %61 : vector<1x10x16x128xbf16> to vector<10x16x128xbf16>
    %63 = vector.shape_cast %62 : vector<10x16x128xbf16> to vector<160x128xbf16>
    %c8_75 = arith.constant 8 : index
    %c0_76 = arith.constant 0 : index
    %c0_77 = arith.constant 0 : index
    %64 = vector.load %arg4[%c8_75, %c0_76, %c0_77] : memref<9x128x128xbf16, #tpu.memory_space<vmem>>, vector<1x128x128xbf16>
    %65 = vector.shape_cast %64 : vector<1x128x128xbf16> to vector<128x128xbf16>
    %cst_78 = arith.constant dense<0.000000e+00> : vector<160x128xf32>
    %66 = tpu.matmul %63, %65, %cst_78 {dimension_numbers = #tpu.dot_dimension_numbers<[1], [0], [0], [1], [0, 0, 1, 1], [], []>} : vector<160x128xbf16>, vector<128x128xbf16>, vector<160x128xf32> -> vector<160x128xf32>
    %67 = arith.addf %60, %66 : vector<160x128xf32>
    %c0_79 = arith.constant 0 : index
    %c0_80 = arith.constant 0 : index
    %68 = vector.load %arg5[%c0_79, %c0_80] : memref<1x128xf32, #tpu.memory_space<vmem>>, vector<1x128xf32>
    %69 = vector.broadcast %68 : vector<1x128xf32> to vector<160x128xf32>
    %70 = arith.mulf %67, %69 : vector<160x128xf32>
    %c0_81 = arith.constant 0 : index
    %c0_82 = arith.constant 0 : index
    %71 = vector.load %arg6[%c0_81, %c0_82] : memref<1x128xf32, #tpu.memory_space<vmem>>, vector<1x128xf32>
    %72 = vector.broadcast %71 : vector<1x128xf32> to vector<160x128xf32>
    %73 = arith.addf %70, %72 : vector<160x128xf32>
    %cst_83 = arith.constant 2.000000e+01 : f32
    %74 = vector.broadcast %cst_83 : f32 to vector<160x128xf32>
    %75 = arith.cmpf ogt, %73, %74 : vector<160x128xf32>
    %cst_84 = arith.constant 2.000000e+01 : f32
    %76 = vector.broadcast %cst_84 : f32 to vector<160x128xf32>
    %77 = arith.minimumf %73, %76 : vector<160x128xf32>
    %78 = math.exp %77 : vector<160x128xf32>
    %79 = math.log1p %78 : vector<160x128xf32>
    %80 = arith.select %75, %73, %79 : vector<160x128xi1>, vector<160x128xf32>
    %81 = math.tanh %80 : vector<160x128xf32>
    %82 = arith.mulf %73, %81 : vector<160x128xf32>
    %83 = vector.shape_cast %82 : vector<160x128xf32> to vector<10x16x128xf32>
    %cst_85 = arith.constant 0.000000e+00 : bf16
    %84 = vector.broadcast %cst_85 : bf16 to vector<10x1x128xbf16>
    %c0_86 = arith.constant 0 : index
    %c0_87 = arith.constant 0 : index
    %c0_88 = arith.constant 0 : index
    %85 = vector.load %arg15[%c0_86, %c0_87, %c0_88] : memref<10x18x128xbf16, #tpu.memory_space<vmem>>, vector<10x1x128xbf16>
    tpu.vector_store %arg15[%c0_86, %c0_87, %c0_88], %84 {strides = array<i32>} : memref<10x18x128xbf16, #tpu.memory_space<vmem>>, vector<10x1x128xbf16>,
    %c0_89 = arith.constant 0 : index
    %c17 = arith.constant 17 : index
    %c0_90 = arith.constant 0 : index
    %86 = vector.load %arg15[%c0_89, %c17, %c0_90] : memref<10x18x128xbf16, #tpu.memory_space<vmem>>, vector<10x1x128xbf16>
    tpu.vector_store %arg15[%c0_89, %c17, %c0_90], %84 {strides = array<i32>} : memref<10x18x128xbf16, #tpu.memory_space<vmem>>, vector<10x1x128xbf16>,
    %87 = arith.truncf %83 : vector<10x16x128xf32> to vector<10x16x128xbf16>
    %c0_91 = arith.constant 0 : index
    %c1_92 = arith.constant 1 : index
    %c0_93 = arith.constant 0 : index
    %88 = vector.load %arg15[%c0_91, %c1_92, %c0_93] : memref<10x18x128xbf16, #tpu.memory_space<vmem>>, vector<10x16x128xbf16>
    tpu.vector_store %arg15[%c0_91, %c1_92, %c0_93], %87 {strides = array<i32>} : memref<10x18x128xbf16, #tpu.memory_space<vmem>>, vector<10x16x128xbf16>,
    %c0_i32 = arith.constant 0 : i32
    %89 = arith.cmpi eq, %arg1, %c0_i32 : i32
    %90 = arith.extui %89 : i1 to i32
    %c0_i32_94 = arith.constant 0 : i32
    %91 = arith.cmpi ne, %90, %c0_i32_94 : i32
    scf.if %91 {
      %cst_181 = arith.constant 0.000000e+00 : bf16
      %179 = vector.broadcast %cst_181 : bf16 to vector<1x18x128xbf16>
      %c0_182 = arith.constant 0 : index
      %c0_183 = arith.constant 0 : index
      %c0_184 = arith.constant 0 : index
      %180 = vector.load %arg15[%c0_182, %c0_183, %c0_184] : memref<10x18x128xbf16, #tpu.memory_space<vmem>>, vector<1x18x128xbf16>
      tpu.vector_store %arg15[%c0_182, %c0_183, %c0_184], %179 {strides = array<i32>} : memref<10x18x128xbf16, #tpu.memory_space<vmem>>, vector<1x18x128xbf16>,
    } else {
    }
    %c1_i32 = arith.constant 1 : i32
    %92 = arith.cmpi eq, %arg1, %c1_i32 : i32
    %93 = arith.extui %92 : i1 to i32
    %c0_i32_95 = arith.constant 0 : i32
    %94 = arith.cmpi ne, %93, %c0_i32_95 : i32
    scf.if %94 {
      %cst_181 = arith.constant 0.000000e+00 : bf16
      %179 = vector.broadcast %cst_181 : bf16 to vector<1x18x128xbf16>
      %c9 = arith.constant 9 : index
      %c0_182 = arith.constant 0 : index
      %c0_183 = arith.constant 0 : index
      %180 = vector.load %arg15[%c9, %c0_182, %c0_183] : memref<10x18x128xbf16, #tpu.memory_space<vmem>>, vector<1x18x128xbf16>
      tpu.vector_store %arg15[%c9, %c0_182, %c0_183], %179 {strides = array<i32>} : memref<10x18x128xbf16, #tpu.memory_space<vmem>>, vector<1x18x128xbf16>,
    } else {
    }
    %c0_96 = arith.constant 0 : index
    %c2_97 = arith.constant 2 : index
    %c1_98 = arith.constant 1 : index
    %c0_99 = arith.constant 0 : index
    %95 = vector.load %arg14[%c0_96, %c2_97, %c1_98, %c0_99] : memref<1x12x18x128xbf16, #tpu.memory_space<vmem>>, vector<1x8x16x128xbf16>
    %96 = vector.shape_cast %95 : vector<1x8x16x128xbf16> to vector<8x16x128xbf16>
    %97 = vector.shape_cast %96 : vector<8x16x128xbf16> to vector<128x128xbf16>
    %c0_100 = arith.constant 0 : index
    %c0_101 = arith.constant 0 : index
    %98 = vector.load %arg10[%c0_100, %c0_101] : memref<128x128xbf16, #tpu.memory_space<vmem>>, vector<128x128xbf16>
    %cst_102 = arith.constant dense<0.000000e+00> : vector<128x128xf32>
    %99 = tpu.matmul %97, %98, %cst_102 {dimension_numbers = #tpu.dot_dimension_numbers<[1], [0], [0], [1], [0, 0, 1, 1], [], []>} : vector<128x128xbf16>, vector<128x128xbf16>, vector<128x128xf32> -> vector<128x128xf32>
    %c0_103 = arith.constant 0 : index
    %c0_104 = arith.constant 0 : index
    %100 = vector.load %arg11[%c0_103, %c0_104] : memref<1x128xf32, #tpu.memory_space<vmem>>, vector<1x128xf32>
    %101 = vector.broadcast %100 : vector<1x128xf32> to vector<128x128xf32>
    %102 = arith.mulf %99, %101 : vector<128x128xf32>
    %c0_105 = arith.constant 0 : index
    %c0_106 = arith.constant 0 : index
    %103 = vector.load %arg12[%c0_105, %c0_106] : memref<1x128xf32, #tpu.memory_space<vmem>>, vector<1x128xf32>
    %104 = vector.broadcast %103 : vector<1x128xf32> to vector<128x128xf32>
    %105 = arith.addf %102, %104 : vector<128x128xf32>
    %cst_107 = arith.constant 0.000000e+00 : f32
    %106 = vector.broadcast %cst_107 : f32 to vector<128x128xf32>
    %c0_108 = arith.constant 0 : index
    %c0_109 = arith.constant 0 : index
    %c0_110 = arith.constant 0 : index
    %107 = vector.load %arg15[%c0_108, %c0_109, %c0_110] : memref<10x18x128xbf16, #tpu.memory_space<vmem>>, vector<8x16x128xbf16>
    %108 = vector.shape_cast %107 : vector<8x16x128xbf16> to vector<128x128xbf16>
    %c0_111 = arith.constant 0 : index
    %c0_112 = arith.constant 0 : index
    %c0_113 = arith.constant 0 : index
    %109 = vector.load %arg7[%c0_111, %c0_112, %c0_113] : memref<9x128x128xbf16, #tpu.memory_space<vmem>>, vector<1x128x128xbf16>
    %110 = vector.shape_cast %109 : vector<1x128x128xbf16> to vector<128x128xbf16>
    %cst_114 = arith.constant dense<0.000000e+00> : vector<128x128xf32>
    %111 = tpu.matmul %108, %110, %cst_114 {dimension_numbers = #tpu.dot_dimension_numbers<[1], [0], [0], [1], [0, 0, 1, 1], [], []>} : vector<128x128xbf16>, vector<128x128xbf16>, vector<128x128xf32> -> vector<128x128xf32>
    %112 = arith.addf %106, %111 : vector<128x128xf32>
    %c0_115 = arith.constant 0 : index
    %c1_116 = arith.constant 1 : index
    %c0_117 = arith.constant 0 : index
    %113 = vector.load %arg15[%c0_115, %c1_116, %c0_117] : memref<10x18x128xbf16, #tpu.memory_space<vmem>>, vector<8x16x128xbf16>
    %114 = vector.shape_cast %113 : vector<8x16x128xbf16> to vector<128x128xbf16>
    %c1_118 = arith.constant 1 : index
    %c0_119 = arith.constant 0 : index
    %c0_120 = arith.constant 0 : index
    %115 = vector.load %arg7[%c1_118, %c0_119, %c0_120] : memref<9x128x128xbf16, #tpu.memory_space<vmem>>, vector<1x128x128xbf16>
    %116 = vector.shape_cast %115 : vector<1x128x128xbf16> to vector<128x128xbf16>
    %cst_121 = arith.constant dense<0.000000e+00> : vector<128x128xf32>
    %117 = tpu.matmul %114, %116, %cst_121 {dimension_numbers = #tpu.dot_dimension_numbers<[1], [0], [0], [1], [0, 0, 1, 1], [], []>} : vector<128x128xbf16>, vector<128x128xbf16>, vector<128x128xf32> -> vector<128x128xf32>
    %118 = arith.addf %112, %117 : vector<128x128xf32>
    %c0_122 = arith.constant 0 : index
    %c2_123 = arith.constant 2 : index
    %c0_124 = arith.constant 0 : index
    %119 = vector.load %arg15[%c0_122, %c2_123, %c0_124] : memref<10x18x128xbf16, #tpu.memory_space<vmem>>, vector<8x16x128xbf16>
    %120 = vector.shape_cast %119 : vector<8x16x128xbf16> to vector<128x128xbf16>
    %c2_125 = arith.constant 2 : index
    %c0_126 = arith.constant 0 : index
    %c0_127 = arith.constant 0 : index
    %121 = vector.load %arg7[%c2_125, %c0_126, %c0_127] : memref<9x128x128xbf16, #tpu.memory_space<vmem>>, vector<1x128x128xbf16>
    %122 = vector.shape_cast %121 : vector<1x128x128xbf16> to vector<128x128xbf16>
    %cst_128 = arith.constant dense<0.000000e+00> : vector<128x128xf32>
    %123 = tpu.matmul %120, %122, %cst_128 {dimension_numbers = #tpu.dot_dimension_numbers<[1], [0], [0], [1], [0, 0, 1, 1], [], []>} : vector<128x128xbf16>, vector<128x128xbf16>, vector<128x128xf32> -> vector<128x128xf32>
    %124 = arith.addf %118, %123 : vector<128x128xf32>
    %c1_129 = arith.constant 1 : index
    %c0_130 = arith.constant 0 : index
    %c0_131 = arith.constant 0 : index
    %125 = vector.load %arg15[%c1_129, %c0_130, %c0_131] : memref<10x18x128xbf16, #tpu.memory_space<vmem>>, vector<8x16x128xbf16>
    %126 = vector.shape_cast %125 : vector<8x16x128xbf16> to vector<128x128xbf16>
    %c3_132 = arith.constant 3 : index
    %c0_133 = arith.constant 0 : index
    %c0_134 = arith.constant 0 : index
    %127 = vector.load %arg7[%c3_132, %c0_133, %c0_134] : memref<9x128x128xbf16, #tpu.memory_space<vmem>>, vector<1x128x128xbf16>
    %128 = vector.shape_cast %127 : vector<1x128x128xbf16> to vector<128x128xbf16>
    %cst_135 = arith.constant dense<0.000000e+00> : vector<128x128xf32>
    %129 = tpu.matmul %126, %128, %cst_135 {dimension_numbers = #tpu.dot_dimension_numbers<[1], [0], [0], [1], [0, 0, 1, 1], [], []>} : vector<128x128xbf16>, vector<128x128xbf16>, vector<128x128xf32> -> vector<128x128xf32>
    %130 = arith.addf %124, %129 : vector<128x128xf32>
    %c1_136 = arith.constant 1 : index
    %c1_137 = arith.constant 1 : index
    %c0_138 = arith.constant 0 : index
    %131 = vector.load %arg15[%c1_136, %c1_137, %c0_138] : memref<10x18x128xbf16, #tpu.memory_space<vmem>>, vector<8x16x128xbf16>
    %132 = vector.shape_cast %131 : vector<8x16x128xbf16> to vector<128x128xbf16>
    %c4_139 = arith.constant 4 : index
    %c0_140 = arith.constant 0 : index
    %c0_141 = arith.constant 0 : index
    %133 = vector.load %arg7[%c4_139, %c0_140, %c0_141] : memref<9x128x128xbf16, #tpu.memory_space<vmem>>, vector<1x128x128xbf16>
    %134 = vector.shape_cast %133 : vector<1x128x128xbf16> to vector<128x128xbf16>
    %cst_142 = arith.constant dense<0.000000e+00> : vector<128x128xf32>
    %135 = tpu.matmul %132, %134, %cst_142 {dimension_numbers = #tpu.dot_dimension_numbers<[1], [0], [0], [1], [0, 0, 1, 1], [], []>} : vector<128x128xbf16>, vector<128x128xbf16>, vector<128x128xf32> -> vector<128x128xf32>
    %136 = arith.addf %130, %135 : vector<128x128xf32>
    %c1_143 = arith.constant 1 : index
    %c2_144 = arith.constant 2 : index
    %c0_145 = arith.constant 0 : index
    %137 = vector.load %arg15[%c1_143, %c2_144, %c0_145] : memref<10x18x128xbf16, #tpu.memory_space<vmem>>, vector<8x16x128xbf16>
    %138 = vector.shape_cast %137 : vector<8x16x128xbf16> to vector<128x128xbf16>
    %c5_146 = arith.constant 5 : index
    %c0_147 = arith.constant 0 : index
    %c0_148 = arith.constant 0 : index
    %139 = vector.load %arg7[%c5_146, %c0_147, %c0_148] : memref<9x128x128xbf16, #tpu.memory_space<vmem>>, vector<1x128x128xbf16>
    %140 = vector.shape_cast %139 : vector<1x128x128xbf16> to vector<128x128xbf16>
    %cst_149 = arith.constant dense<0.000000e+00> : vector<128x128xf32>
    %141 = tpu.matmul %138, %140, %cst_149 {dimension_numbers = #tpu.dot_dimension_numbers<[1], [0], [0], [1], [0, 0, 1, 1], [], []>} : vector<128x128xbf16>, vector<128x128xbf16>, vector<128x128xf32> -> vector<128x128xf32>
    %142 = arith.addf %136, %141 : vector<128x128xf32>
    %c2_150 = arith.constant 2 : index
    %c0_151 = arith.constant 0 : index
    %c0_152 = arith.constant 0 : index
    %143 = vector.load %arg15[%c2_150, %c0_151, %c0_152] : memref<10x18x128xbf16, #tpu.memory_space<vmem>>, vector<8x16x128xbf16>
    %144 = vector.shape_cast %143 : vector<8x16x128xbf16> to vector<128x128xbf16>
    %c6_153 = arith.constant 6 : index
    %c0_154 = arith.constant 0 : index
    %c0_155 = arith.constant 0 : index
    %145 = vector.load %arg7[%c6_153, %c0_154, %c0_155] : memref<9x128x128xbf16, #tpu.memory_space<vmem>>, vector<1x128x128xbf16>
    %146 = vector.shape_cast %145 : vector<1x128x128xbf16> to vector<128x128xbf16>
    %cst_156 = arith.constant dense<0.000000e+00> : vector<128x128xf32>
    %147 = tpu.matmul %144, %146, %cst_156 {dimension_numbers = #tpu.dot_dimension_numbers<[1], [0], [0], [1], [0, 0, 1, 1], [], []>} : vector<128x128xbf16>, vector<128x128xbf16>, vector<128x128xf32> -> vector<128x128xf32>
    %148 = arith.addf %142, %147 : vector<128x128xf32>
    %c2_157 = arith.constant 2 : index
    %c1_158 = arith.constant 1 : index
    %c0_159 = arith.constant 0 : index
    %149 = vector.load %arg15[%c2_157, %c1_158, %c0_159] : memref<10x18x128xbf16, #tpu.memory_space<vmem>>, vector<8x16x128xbf16>
    %150 = vector.shape_cast %149 : vector<8x16x128xbf16> to vector<128x128xbf16>
    %c7_160 = arith.constant 7 : index
    %c0_161 = arith.constant 0 : index
    %c0_162 = arith.constant 0 : index
    %151 = vector.load %arg7[%c7_160, %c0_161, %c0_162] : memref<9x128x128xbf16, #tpu.memory_space<vmem>>, vector<1x128x128xbf16>
    %152 = vector.shape_cast %151 : vector<1x128x128xbf16> to vector<128x128xbf16>
    %cst_163 = arith.constant dense<0.000000e+00> : vector<128x128xf32>
    %153 = tpu.matmul %150, %152, %cst_163 {dimension_numbers = #tpu.dot_dimension_numbers<[1], [0], [0], [1], [0, 0, 1, 1], [], []>} : vector<128x128xbf16>, vector<128x128xbf16>, vector<128x128xf32> -> vector<128x128xf32>
    %154 = arith.addf %148, %153 : vector<128x128xf32>
    %c2_164 = arith.constant 2 : index
    %c2_165 = arith.constant 2 : index
    %c0_166 = arith.constant 0 : index
    %155 = vector.load %arg15[%c2_164, %c2_165, %c0_166] : memref<10x18x128xbf16, #tpu.memory_space<vmem>>, vector<8x16x128xbf16>
    %156 = vector.shape_cast %155 : vector<8x16x128xbf16> to vector<128x128xbf16>
    %c8_167 = arith.constant 8 : index
    %c0_168 = arith.constant 0 : index
    %c0_169 = arith.constant 0 : index
    %157 = vector.load %arg7[%c8_167, %c0_168, %c0_169] : memref<9x128x128xbf16, #tpu.memory_space<vmem>>, vector<1x128x128xbf16>
    %158 = vector.shape_cast %157 : vector<1x128x128xbf16> to vector<128x128xbf16>
    %cst_170 = arith.constant dense<0.000000e+00> : vector<128x128xf32>
    %159 = tpu.matmul %156, %158, %cst_170 {dimension_numbers = #tpu.dot_dimension_numbers<[1], [0], [0], [1], [0, 0, 1, 1], [], []>} : vector<128x128xbf16>, vector<128x128xbf16>, vector<128x128xf32> -> vector<128x128xf32>
    %160 = arith.addf %154, %159 : vector<128x128xf32>
    %c0_171 = arith.constant 0 : index
    %c0_172 = arith.constant 0 : index
    %161 = vector.load %arg8[%c0_171, %c0_172] : memref<1x128xf32, #tpu.memory_space<vmem>>, vector<1x128xf32>
    %162 = vector.broadcast %161 : vector<1x128xf32> to vector<128x128xf32>
    %163 = arith.mulf %160, %162 : vector<128x128xf32>
    %c0_173 = arith.constant 0 : index
    %c0_174 = arith.constant 0 : index
    %164 = vector.load %arg9[%c0_173, %c0_174] : memref<1x128xf32, #tpu.memory_space<vmem>>, vector<1x128xf32>
    %165 = vector.broadcast %164 : vector<1x128xf32> to vector<128x128xf32>
    %166 = arith.addf %163, %165 : vector<128x128xf32>
    %167 = arith.addf %166, %105 : vector<128x128xf32>
    %cst_175 = arith.constant 2.000000e+01 : f32
    %168 = vector.broadcast %cst_175 : f32 to vector<128x128xf32>
    %169 = arith.cmpf ogt, %167, %168 : vector<128x128xf32>
    %cst_176 = arith.constant 2.000000e+01 : f32
    %170 = vector.broadcast %cst_176 : f32 to vector<128x128xf32>
    %171 = arith.minimumf %167, %170 : vector<128x128xf32>
    %172 = math.exp %171 : vector<128x128xf32>
    %173 = math.log1p %172 : vector<128x128xf32>
    %174 = arith.select %169, %167, %173 : vector<128x128xi1>, vector<128x128xf32>
    %175 = math.tanh %174 : vector<128x128xf32>
    %176 = arith.mulf %167, %175 : vector<128x128xf32>
    %177 = vector.shape_cast %176 : vector<128x128xf32> to vector<1x8x16x128xf32>
    %c0_177 = arith.constant 0 : index
    %c0_178 = arith.constant 0 : index
    %c0_179 = arith.constant 0 : index
    %c0_180 = arith.constant 0 : index
    %178 = vector.load %arg13[%c0_177, %c0_178, %c0_179, %c0_180] : memref<1x8x16x128xf32, #tpu.memory_space<vmem>>, vector<1x8x16x128xf32>
    tpu.vector_store %arg13[%c0_177, %c0_178, %c0_179, %c0_180], %177 {strides = array<i32>} : memref<1x8x16x128xf32, #tpu.memory_space<vmem>>, vector<1x8x16x128xf32>,
    return
  }
  func.func @transform_0(%arg0: i32, %arg1: i32) -> (i32, i32, i32, i32) {
    %c0_i32 = arith.constant 0 : i32
    %c0_i32_0 = arith.constant 0 : i32
    %c0_i32_1 = arith.constant 0 : i32
    return %arg0, %arg1, %c0_i32, %c0_i32_0 : i32, i32, i32, i32
  }
  func.func @transform_1(%arg0: i32, %arg1: i32) -> (i32, i32, i32, i32) {
    %c1_i32 = arith.constant 1 : i32
    %0 = arith.addi %arg1, %c1_i32 : i32
    %c2_i32 = arith.constant 2 : i32
    %1 = arith.muli %0, %c2_i32 : i32
    %c0_i32 = arith.constant 0 : i32
    %c0_i32_0 = arith.constant 0 : i32
    %c0_i32_1 = arith.constant 0 : i32
    return %arg0, %1, %c0_i32, %c0_i32_0 : i32, i32, i32, i32
  }
  func.func @transform_2(%arg0: i32, %arg1: i32) -> (i32, i32, i32) {
    %c0_i32 = arith.constant 0 : i32
    %c0_i32_0 = arith.constant 0 : i32
    %c0_i32_1 = arith.constant 0 : i32
    %c0_i32_2 = arith.constant 0 : i32
    return %c0_i32, %c0_i32_0, %c0_i32_1 : i32, i32, i32
  }
  func.func @transform_3(%arg0: i32, %arg1: i32) -> (i32, i32) {
    %c0_i32 = arith.constant 0 : i32
    %c0_i32_0 = arith.constant 0 : i32
    %c0_i32_1 = arith.constant 0 : i32
    return %c0_i32, %c0_i32_0 : i32, i32
  }
  func.func @transform_4(%arg0: i32, %arg1: i32) -> (i32, i32) {
    %c0_i32 = arith.constant 0 : i32
    %c0_i32_0 = arith.constant 0 : i32
    %c0_i32_1 = arith.constant 0 : i32
    return %c0_i32, %c0_i32_0 : i32, i32
  }
  func.func @transform_5(%arg0: i32, %arg1: i32) -> (i32, i32, i32) {
    %c0_i32 = arith.constant 0 : i32
    %c0_i32_0 = arith.constant 0 : i32
    %c0_i32_1 = arith.constant 0 : i32
    %c0_i32_2 = arith.constant 0 : i32
    return %c0_i32, %c0_i32_0, %c0_i32_1 : i32, i32, i32
  }
  func.func @transform_6(%arg0: i32, %arg1: i32) -> (i32, i32) {
    %c0_i32 = arith.constant 0 : i32
    %c0_i32_0 = arith.constant 0 : i32
    %c0_i32_1 = arith.constant 0 : i32
    return %c0_i32, %c0_i32_0 : i32, i32
  }
  func.func @transform_7(%arg0: i32, %arg1: i32) -> (i32, i32) {
    %c0_i32 = arith.constant 0 : i32
    %c0_i32_0 = arith.constant 0 : i32
    %c0_i32_1 = arith.constant 0 : i32
    return %c0_i32, %c0_i32_0 : i32, i32
  }
  func.func @transform_8(%arg0: i32, %arg1: i32) -> (i32, i32) {
    %c0_i32 = arith.constant 0 : i32
    %c0_i32_0 = arith.constant 0 : i32
    %c0_i32_1 = arith.constant 0 : i32
    return %c0_i32, %c0_i32_0 : i32, i32
  }
  func.func @transform_9(%arg0: i32, %arg1: i32) -> (i32, i32) {
    %c0_i32 = arith.constant 0 : i32
    %c0_i32_0 = arith.constant 0 : i32
    %c0_i32_1 = arith.constant 0 : i32
    return %c0_i32, %c0_i32_0 : i32, i32
  }
  func.func @transform_10(%arg0: i32, %arg1: i32) -> (i32, i32) {
    %c0_i32 = arith.constant 0 : i32
    %c0_i32_0 = arith.constant 0 : i32
    %c0_i32_1 = arith.constant 0 : i32
    return %c0_i32, %c0_i32_0 : i32, i32
  }
  func.func @transform_11(%arg0: i32, %arg1: i32) -> (i32, i32, i32, i32) {
    %c0_i32 = arith.constant 0 : i32
    %c0_i32_0 = arith.constant 0 : i32
    %c0_i32_1 = arith.constant 0 : i32
    return %arg0, %arg1, %c0_i32, %c0_i32_0 : i32, i32, i32, i32
  }
}

</mosaic_0001>

<bundles_post_ra>
// kernel: residual_block_forward.1
= control target key start
LH: loop header
LB: loop body
LE: loop exit
PB: predicated region body
PF: predicated region fallthrough
CT: control target
= control target key end

     0   :  { %s11011_s17 = smov 0   ;;  %s11013_s18 = smov 0   ;;  %s13826_s0 = inlined_call_operand.vmem [shape: bf16[2,20,18,128], index: 0, kind: input, shape index: {}, may-alias: {0,1}]   ;;  %s13827_s1 = inlined_call_operand.vmem [shape: bf16[2,20,18,128], index: 1, kind: input, shape index: {}, may-alias: {0,1}]   ;;  %s13828_s2 = inlined_call_operand.vmem [shape: bf16[9,128,128], index: 2, kind: input, shape index: {}]   ;;  %s13829_s3 = inlined_call_operand.vmem [shape: f32[1,128], index: 3, kind: input, shape index: {}]   ;;  %s13830_s4 = inlined_call_operand.vmem [shape: f32[1,128], index: 4, kind: input, shape index: {}]   ;;  %s13831_s5 = inlined_call_operand.vmem [shape: bf16[9,128,128], index: 5, kind: input, shape index: {}]   ;;  %s13832_s6 = inlined_call_operand.vmem [shape: f32[1,128], index: 6, kind: input, shape index: {}]   ;;  %s13833_s7 = inlined_call_operand.vmem [shape: f32[1,128], index: 7, kind: input, shape index: {}]   ;;  %s13834_s8 = inlined_call_operand.vmem [shape: bf16[128,128], index: 8, kind: input, shape index: {}]   ;;  %s13835_s9 = inlined_call_operand.vmem [shape: f32[1,128], index: 9, kind: input, shape index: {}]   ;;  %s13836_s10 = inlined_call_operand.vmem [shape: f32[1,128], index: 10, kind: input, shape index: {}]   ;;  %s13837_s11 = inlined_call_operand.vmem [shape: f32[2,16,16,128], index: 11, kind: output, shape index: {}]  }
   0x1   :  { %s11015_s19 = smov 0   ;;  %s11017_s20 = smov 0  }
   0x2   :  { %s11019_s21 = smov 0  }
   0x3 LB: > { %s30_s22 = sadd.s32 1, %s10939_s19  ;;  %s33_s23 = sadd.s32 1, %s10943_s20  ;;  %s10947_s21 = sphi %s11019_s21, %s21_s21   ;;  %s10943_s20 = sphi %s11017_s20, %s13902_s20   ;;  %s10939_s19 = sphi %s11015_s19, %s13901_s19   ;;  %s10935_s18 = sphi %s11013_s18, %s13900_s18   ;;  %s10931_s17 = sphi %s11011_s17, %s13899_s17  }
   0x4   : > { %p31_p0 = scmp.ge.s32.totalorder %s30_s22, 2  ;;  %p8468_p1 = scmp.ge.s32.totalorder %s10947_s21, 1 }
   0x5   : > { %p395_p2 = scmp.lt.s32.totalorder %s10947_s21, 5 }
   0x6   : > { %s13904_s22 = smov (%p31_p0, %s30_s22), 0  ;;  %s13906_s23 = smov (!%p31_p0, %s33_s23), %s10943_s20 }
   0x7   : > { %p396_p3 = pnand %p8468_p1, %p395_p2  ;;  %p35_p4 = scmp.ge.s32.totalorder %s13906_s23, 2 }
   0x9   : > { %s13908_s23 = smov (%p35_p4, %s13906_s23), 0  ;;  %399 = sbr.rel (%p396_p3) target bundleno = 1394 (0x572), region = 64 }
  0x10   : > { %v10484_v0 = vld [vmem:[%s13828_s2 + $0x40] sm:$0xff]   ;;  %s11047_s26 = sshll.u32 %s10931_s17, 3  ;;  %v10485_v1 = vld [vmem:[%s13828_s2 + $0x48] sm:$0xff]   ;;  %p468_p5 = scmp.lt.s32.totalorder %s10935_s18, 1  ;;  %v10486_v2 = vld [vmem:[%s13828_s2 + $0x50] sm:$0xff]   ;;  %vm1341_vm3 = vcmask 1042432  }
  0x11   : > { %9491 = vmatprep.subr.bf16.mxu0 %v10484_v0  ;;  %p470_p6 = scmp.lt.s32.totalorder %s11047_s26, 19  ;;  %10135 = vmatprep.subr.bf16.mxu1 %v10484_v0  ;;  %p501_p7 = scmp.lt.s32.totalorder %s11047_s26, 15  ;;  %v10487_v3 = vld [vmem:[%s13828_s2 + $0x58] sm:$0xff]   ;;  %v10488_v4 = vld [vmem:[%s13828_s2 + $0x60] sm:$0xff]   ;;  %v10489_v13 = vld [vmem:[%s13828_s2 + $0x68] sm:$0xff]   ;;  %vm1342_vm4 = vcmask 1046532  }
  0x12   : > { %9492 = vmatpush3.bf16.msra.mxu0 %v10484_v0  ;;  %s13910_s18 = smov (!%p468_p5, %s10935_s18), 1  ;;  %10143 = vmatpush3.bf16.msra.mxu1 %v10484_v0  ;;  %vm629_vm0 = vsmask.f32 3328  ;;  %v10490_v18 = vld [vmem:[%s13828_s2 + $0x70] sm:$0xff]   ;;  %vm630_vm1 = vsmask.f32 7440  ;;  %vm11290_vm5 = vmor %vm1341_vm3, %vm1342_vm4 }
  0x13   : > { %9493 = vmatprep.subr.bf16.mxu0 %v10485_v1  ;;  %s471_s12 = scalar_select %p470_p6, %s11047_s26, 19  ;;  %10136 = vmatprep.subr.bf16.mxu1 %v10485_v1  ;;  %v11120_v34 = vld [vmem:[%s13828_s2 + $0x78] sm:$0xff]   ;;  %vm11133_vm2 = vmor %vm629_vm0, %vm630_vm1  ;;  %v11146_v53 = vld [vmem:[%s13828_s2] sm:$0xff]   ;;  %vm4296_vm6 = vcmask 1040384   ;;  %vm13838_vm7 = vsmask.f32 256 }
  0x14   : > { %s10440_s13 = smul.u32 60, %s13910_s18  ;;  %s8476_s15 = sshll.u32 %s13910_s18, 5  ;;  %vm12067_vm8 = vmand %vm4296_vm6, %vm13838_vm7  ;;  %vm4329_vm9 = vsmask.f32 7938 }
  0x15   : > { %s10439_s14 = smul.u32 3, %s471_s12  ;;  %vm12074_vm10 = vmand %vm4296_vm6, %vm4329_vm9  ;;  %p8820_p9 = scmp.ne.s32.totalorder %s10931_s17, 0 }
  0x16   : > { %9494 = vmatpush3.bf16.msra.mxu0 %v10485_v1  ;;  %10144 = vmatpush3.bf16.msra.mxu1 %v10485_v1 }
  0x17   : > { %9495 = vmatprep.subr.bf16.mxu0 %v10486_v2  ;;  %s474_s24 = sadd.s32 %s10440_s13, %s10439_s14  ;;  %10137 = vmatprep.subr.bf16.mxu1 %v10486_v2 }
  0x18   : > { %s8470_s25 = sshll.u32 %s474_s24, 2 }
  0x19   : > { %s11072_s12 = scalar_lea.vmem %s13826_s0, %s8470_s25 }
  0x1a   : > { %9496 = vmatpush3.bf16.msra.mxu0 %v10486_v2  ;;  %s502_s14 = scalar_select %p501_p7, %s11047_s26, 15  ;;  %v510_v5 = vld [vmem:[%s11072_s12] sm:$0xff]   ;;  %v512_v6 = vld [vmem:[%s11072_s12 + $0x8] sm:$0x1]  ;;  %v513_v7 = vld [vmem:[%s11072_s12 + $0xc] sm:$0xff]   ;;  %10145 = vmatpush3.bf16.msra.mxu1 %v10486_v2 }
  0x1b   : > { %9497 = vmatprep.subr.bf16.mxu0 %v10487_v3  ;;  %534 = vst [vmem:[#allocation2] sm:$0xff] %v510_v5   ;;  %536 = vst [vmem:[#allocation2 + $0x8] sm:$0x1] %v512_v6  ;;  %v515_v8 = vld [vmem:[%s11072_s12 + $0x14] sm:$0x1]  ;;  %v516_v9 = vld [vmem:[%s11072_s12 + $0x18] sm:$0xff]   ;;  %10138 = vmatprep.subr.bf16.mxu1 %v10487_v3 }
  0x1c   : > { %537 = vst [vmem:[#allocation2 + $0xc] sm:$0xff] %v513_v7   ;;  %v518_v10 = vld [vmem:[%s11072_s12 + $0x20] sm:$0x1]  ;;  %s8475_s16 = sshll.u32 %s502_s14, 1  ;;  %539 = vst [vmem:[#allocation2 + $0x14] sm:$0x1] %v515_v8 }
  0x1d   : > { %540 = vst [vmem:[#allocation2 + $0x18] sm:$0xff] %v516_v9   ;;  %542 = vst [vmem:[#allocation2 + $0x20] sm:$0x1] %v518_v10  ;;  %v519_v11 = vld [vmem:[%s11072_s12 + $0x24] sm:$0xff]   ;;  %v521_v12 = vld [vmem:[%s11072_s12 + $0x2c] sm:$0x1]  ;;  %s505_s24 = sadd.s32 %s8476_s15, %s8475_s16 }
  0x1e   : > { %543 = vst [vmem:[#allocation2 + $0x24] sm:$0xff] %v519_v11   ;;  %545 = vst [vmem:[#allocation2 + $0x2c] sm:$0x1] %v521_v12  ;;  %9498 = vmatpush3.bf16.msra.mxu0 %v10487_v3  ;;  %s8477_s28 = sshll.u32 %s505_s24, 3  ;;  %v522_v14 = vld [vmem:[%s11072_s12 + $0x30] sm:$0xff]   ;;  %10146 = vmatpush3.bf16.msra.mxu1 %v10487_v3  ;;  %v525_v16 = vld [vmem:[%s11072_s12 + $0x3c] sm:$0xff]  }
  0x1f   : > { %9499 = vmatprep.subr.bf16.mxu0 %v10488_v4  ;;  %s11091_s14 = scalar_lea.vmem %s13837_s11, %s8477_s28  ;;  %v524_v15 = vld [vmem:[%s11072_s12 + $0x38] sm:$0x1]  ;;  %546 = vst [vmem:[#allocation2 + $0x30] sm:$0xff] %v522_v14   ;;  %v527_v17 = vld [vmem:[%s11072_s12 + $0x44] sm:$0x1]  ;;  %10139 = vmatprep.subr.bf16.mxu1 %v10488_v4  ;;  %549 = vst [vmem:[#allocation2 + $0x3c] sm:$0xff] %v525_v16  }
  0x20   : > { %548 = vst [vmem:[#allocation2 + $0x38] sm:$0x1] %v524_v15  ;;  %551 = vst [vmem:[#allocation2 + $0x44] sm:$0x1] %v527_v17  ;;  %s9168_s24 = sadd.s32 8, %s11047_s26  ;;  %v528_v59 = vld [vmem:[%s11072_s12 + $0x48] sm:$0xff]  }
  0x21   : > { %p11139_p8 = scmp.lt.s32.totalorder %s9168_s24, 19  ;;  %552 = vst [vmem:[#allocation2 + $0x48] sm:$0xff] %v528_v59   ;;  %v531_v2 = vld [vmem:[%s11072_s12 + $0x54] sm:$0xff]  }
  0x22   : > { %9500 = vmatpush3.bf16.msra.mxu0 %v10488_v4  ;;  %v11099_v19 = vld [vmem:[#allocation2] sm:$0xf]  ;;  %v11101_v20 = vld [vmem:[#allocation2 + $0x4] sm:$0xf]  ;;  %v11103_v21 = vld [vmem:[#allocation2 + $0x8] sm:$0x1]  ;;  %10147 = vmatpush3.bf16.msra.mxu1 %v10488_v4 }
  0x23   : > { %9501 = vmatprep.subr.bf16.mxu0 %v10489_v13  ;;  %v633_v22 = vshrl.u32 %v11099_v19, 16  ;;  %v636_v23 = vshll.u32 %v11099_v19, 16  ;;  %v642_v24 = vshll.u32 %v11101_v20, 16  ;;  %v646_v25 = vshrl.u32 %v11101_v20, 16  ;;  %v11109_v26 = vld [vmem:[#allocation2 + $0xc] sm:$0xf]  ;;  %10140 = vmatprep.subr.bf16.mxu1 %v10489_v13 }
  0x24   : > { %v652_v27 = vshll.u32 %v11103_v21, 16  ;;  %v11112_v28 = vld [vmem:[#allocation2 + $0x10] sm:$0xf]  ;;  %v11114_v29 = vld [vmem:[#allocation2 + $0x14] sm:$0x1]  ;;  %v657_v36 = vshrl.u32 %v11109_v26, 16 }
  0x25   : > { %v635_v30 = vrot.slane %v633_v22, 4  ;;  %v638_v31 = vrot.slane %v636_v23, 5  ;;  %v644_v32 = vrot.slane %v642_v24, 5  ;;  %v648_v33 = vrot.slane %v646_v25, 4  ;;  %v11127_v43 = vld [vmem:[#allocation2 + $0x18] sm:$0xf] }
  0x26   : > { %9502 = vmatpush3.bf16.msra.mxu0 %v10489_v13  ;;  %v654_v35 = vrot.slane %v652_v27, 5  ;;  %v660_v37 = vshll.u32 %v11109_v26, 16  ;;  %v666_v38 = vshll.u32 %v11112_v28, 16  ;;  %10148 = vmatpush3.bf16.msra.mxu1 %v10489_v13  ;;  %v670_v41 = vshrl.u32 %v11112_v28, 16  ;;  %v11129_v44 = vld [vmem:[#allocation2 + $0x1c] sm:$0xf] }
  0x27   : > { %9503 = vmatprep.subr.bf16.mxu0 %v10490_v18  ;;  %v639_v39 = vor.u32 %v638_v31, %v635_v30  ;;  %v649_v40 = vor.u32 %v648_v33, %v644_v32  ;;  %v676_v42 = vshll.u32 %v11114_v29, 16  ;;  %10141 = vmatprep.subr.bf16.mxu1 %v10490_v18  ;;  %v659_v46 = vrot.slane %v657_v36, 4  ;;  %v11148_v55 = vld [vmem:[#allocation2 + $0x20] sm:$0x1]  ;;  %v11160_v0 = vld [vmem:[#allocation2 + $0x24] sm:$0xf] }
  0x28   : > { %v662_v47 = vrot.slane %v660_v37, 5  ;;  %v668_v48 = vrot.slane %v666_v38, 5  ;;  %v672_v51 = vrot.slane %v670_v41, 4  ;;  %v681_v56 = vshrl.u32 %v11127_v43, 16  ;;  %v11162_v1 = vld [vmem:[#allocation2 + $0x28] sm:$0xf] }
  0x29   : > { %v640_v49 = vrot.slane %v639_v39, 4  ;;  %v650_v50 = vrot.slane %v649_v40, 4  ;;  %v678_v52 = vrot.slane %v676_v42, 5  ;;  %v684_v57 = vshll.u32 %v11127_v43, 16  ;;  %v11166_v7 = vld [vmem:[#allocation2 + $0x2c] sm:$0x1] }
  0x2a   : > { %9504 = vmatpush3.bf16.msra.mxu0 %v10490_v18  ;;  %v663_v54 = vor.u32 %v662_v47, %v659_v46  ;;  %v690_v58 = vshll.u32 %v11129_v44, 16  ;;  %10149 = vmatpush3.bf16.msra.mxu1 %v10490_v18  ;;  %v673_v62 = vor.u32 %v672_v51, %v668_v48  ;;  %v694_v63 = vshrl.u32 %v11129_v44, 16  ;;  %555 = vst [vmem:[#allocation2 + $0x54] sm:$0xff] %v531_v2   ;;  %s13912_s24 = smov (!%p11139_p8, %s9168_s24), 19  ;;  %v11175_v12 = vld [vmem:[#allocation2 + $0x30] sm:$0xf] }
  0x2b   : > { %9505 = vmatprep.subr.bf16.mxu0 %v11120_v34  ;;  %v645_v60 = vsel %vm11133_vm2, %v640_v49, %v644_v32  ;;  %v655_v61 = vsel %vm11133_vm2, %v650_v50, %v654_v35  ;;  %10142 = vmatprep.subr.bf16.mxu1 %v11120_v34  ;;  %v683_v5 = vrot.slane %v681_v56, 4  ;;  %v686_v6 = vrot.slane %v684_v57, 5  ;;  %v11182_v17 = vld [vmem:[#allocation2 + $0x34] sm:$0xf]  ;;  %v530_v18 = vld [vmem:[%s11072_s12 + $0x50] sm:$0x1] }
  0x2c   : > { %v8494_v3 = vcombine.low %v645_v60, %v655_v61  ;;  %v664_v4 = vrot.slane %v663_v54, 4  ;;  %v674_v8 = vrot.slane %v673_v62, 4  ;;  %v692_v9 = vrot.slane %v690_v58, 5  ;;  %554 = vst [vmem:[#allocation2 + $0x50] sm:$0x1] %v530_v18  ;;  %v10493_v31 = vld [vmem:[%s13828_s2 + $0x8] sm:$0xff]  }
  0x2d   : > { %v696_v10 = vrot.slane %v694_v63, 4  ;;  %v700_v11 = vshll.u32 %v11148_v55, 16  ;;  %v687_v14 = vor.u32 %v686_v6, %v683_v5  ;;  %v705_v15 = vshrl.u32 %v11160_v0, 16  ;;  %v533_v27 = vld [vmem:[%s11072_s12 + $0x5c] sm:$0x1]  ;;  %s10441_s12 = smul.u32 3, %s13912_s24 }
  0x2e   : > { %9506 = vmatpush3.bf16.msra.mxu0 %v11120_v34  ;;  %9507 = vmatprep.mubr.bf16.mxu0 %v8494_v3  ;;  %v669_v13 = vsel %vm11133_vm2, %v664_v4, %v668_v48  ;;  %v708_v16 = vshll.u32 %v11160_v0, 16  ;;  %v679_v22 = vsel %vm11133_vm2, %v674_v8, %v678_v52  ;;  %v714_v25 = vshll.u32 %v11162_v1, 16  ;;  %557 = vst [vmem:[#allocation2 + $0x5c] sm:$0x1] %v533_v27  ;;  %v11198_v41 = vld [vmem:[#allocation2 + $0x38] sm:$0x1] }
  0x2f   : > { %9527 = vmatprep.subr.bf16.mxu0 %v11146_v53  ;;  %v697_v23 = vor.u32 %v696_v10, %v692_v9  ;;  %v702_v24 = vrot.slane %v700_v11, 5  ;;  %10150 = vmatpush3.bf16.msra.mxu1 %v11120_v34  ;;  %v8495_v30 = vcombine.low %v669_v13, %v679_v22  ;;  %v688_v32 = vrot.slane %v687_v14, 4  ;;  %v11202_v47 = vld [vmem:[#allocation2 + $0x3c] sm:$0xf]  ;;  %v11208_v52 = vld [vmem:[#allocation2 + $0x40] sm:$0xf]  ;;  %s11232_s28 = sadd.s32 %s10441_s12, %s10440_s13 }
  0x30   : > { %v707_v33 = vrot.slane %v705_v15, 4  ;;  %v710_v35 = vrot.slane %v708_v16, 5  ;;  %v716_v37 = vrot.slane %v714_v25, 5  ;;  %v718_v38 = vshrl.u32 %v11162_v1, 16  ;;  %v10494_v57 = vld [vmem:[%s13828_s2 + $0x10] sm:$0xff]   ;;  %v10495_v3 = vld [vmem:[%s13828_s2 + $0x18] sm:$0xff]  }
  0x31   : > { %v698_v36 = vrot.slane %v697_v23, 4  ;;  %v724_v39 = vshll.u32 %v11166_v7, 16  ;;  %9508 = vmatmul.mubr.bf16.vlgmr.msra.gmra.mrb[0].mxu0 %v8495_v30  ;;  %v693_v34 = vsel %vm11133_vm2, %v688_v32, %v692_v9  ;;  %v729_v42 = vshrl.u32 %v11175_v12, 16  ;;  %v11225_v8 = vld [vmem:[#allocation2 + $0x48] sm:$0xf]  ;;  %s8473_s18 = sshll.u32 %s11232_s28, 2 }
  0x32   : > { %v711_v40 = vor.u32 %v710_v35, %v707_v33  ;;  %v732_v46 = vshll.u32 %v11175_v12, 16  ;;  %9528 = vmatpush3.bf16.msra.mxu0 %v11146_v53  ;;  %v720_v49 = vrot.slane %v718_v38, 4  ;;  %v738_v51 = vshll.u32 %v11182_v17, 16  ;;  %v11214_v53 = vld [vmem:[#allocation2 + $0x44] sm:$0x1]  ;;  %s11262_s15 = scalar_lea.vmem %s13827_s1, %s8473_s18 }
  0x33   : > { %v703_v48 = vsel %vm11133_vm2, %v698_v36, %v702_v24  ;;  %v726_v50 = vrot.slane %v724_v39, 5  ;;  %9529 = vmatprep.subr.bf16.mxu0 %v10493_v31  ;;  %v731_v58 = vrot.slane %v729_v42, 4  ;;  %v742_v62 = vshrl.u32 %v11182_v17, 16  ;;  %v11228_v14 = vld [vmem:[#allocation2 + $0x4c] sm:$0xf] }
  0x34   : > { %v8496_v54 = vcombine.low %v693_v34, %v703_v48  ;;  %v712_v56 = vrot.slane %v711_v40, 4  ;;  %v734_v59 = vrot.slane %v732_v46, 5  ;;  %v721_v60 = vor.u32 %v720_v49, %v716_v37  ;;  %v11235_v23 = vld [vmem:[#allocation2 + $0x50] sm:$0x1]  ;;  %v11242_v36 = vld [vmem:[#allocation2 + $0x54] sm:$0xf] }
  0x35   : > { %v740_v61 = vrot.slane %v738_v51, 5  ;;  %v748_v63 = vshll.u32 %v11198_v41, 16  ;;  %v753_v5 = vshrl.u32 %v11202_v47, 16  ;;  %v756_v6 = vshll.u32 %v11202_v47, 16  ;;  %v11247_v40 = vld [vmem:[#allocation2 + $0x58] sm:$0xf] }
  0x36   : > { %9511 = vmatprep.mubr.bf16.mxu0 %v8496_v54  ;;  %v717_v2 = vsel %vm11133_vm2, %v712_v56, %v716_v37  ;;  %v735_v4 = vor.u32 %v734_v59, %v731_v58  ;;  %9530 = vmatpush3.bf16.msra.mxu0 %v10493_v31  ;;  %v722_v9 = vrot.slane %v721_v60, 4  ;;  %v744_v10 = vrot.slane %v742_v62, 4  ;;  %v10496_v48 = vld [vmem:[%s13828_s2 + $0x20] sm:$0xff]   ;;  %v11257_v58 = vld [vmem:[#allocation2 + $0x5c] sm:$0x1] }
  0x37   : > { %v750_v11 = vrot.slane %v748_v63, 5  ;;  %v762_v13 = vshll.u32 %v11208_v52, 16  ;;  %9531 = vmatprep.subr.bf16.mxu0 %v10494_v57  ;;  %v755_v16 = vrot.slane %v753_v5, 4  ;;  %v758_v18 = vrot.slane %v756_v6, 5  ;;  %v10497_v63 = vld [vmem:[%s13828_s2 + $0x28] sm:$0xff]  }
  0x38   : > { %v736_v15 = vrot.slane %v735_v4, 4  ;;  %v766_v22 = vshrl.u32 %v11208_v52, 16  ;;  %v727_v24 = vsel %vm11133_vm2, %v722_v9, %v726_v50  ;;  %v745_v25 = vor.u32 %v744_v10, %v740_v61 }
  0x39   : > { %v764_v27 = vrot.slane %v762_v13, 5  ;;  %v772_v30 = vshll.u32 %v11214_v53, 16  ;;  %v8497_v31 = vcombine.low %v717_v2, %v727_v24  ;;  %v759_v33 = vor.u32 %v758_v18, %v755_v16  ;;  %v558_v13 = vld [vmem:[%s11262_s15] sm:$0xff]   ;;  %v561_v24 = vld [vmem:[%s11262_s15 + $0xc] sm:$0xff]  }
  0x3a   : > { %v741_v32 = vsel %vm11133_vm2, %v736_v15, %v740_v61  ;;  %v768_v35 = vrot.slane %v766_v22, 4  ;;  %9532 = vmatpush3.bf16.msra.mxu0 %v10494_v57  ;;  %v746_v37 = vrot.slane %v745_v25, 4  ;;  %v777_v39 = vshrl.u32 %v11225_v8, 16  ;;  %571 = vst [vmem:[#allocation2 + $0x60] sm:$0xff] %v558_v13   ;;  %574 = vst [vmem:[#allocation2 + $0x6c] sm:$0xff] %v561_v24  }
  0x3b   : > { %v774_v38 = vrot.slane %v772_v30, 5  ;;  %v780_v34 = vshll.u32 %v11225_v8, 16  ;;  %9512 = vmatmul.mubr.bf16.gmra.mrb[4].mxu0 %v8497_v31  ;;  %9533 = vmatprep.subr.bf16.mxu0 %v10495_v3  ;;  %v760_v42 = vrot.slane %v759_v33, 4  ;;  %v786_v49 = vshll.u32 %v11228_v14, 16 }
  0x3c   : > { %v769_v46 = vor.u32 %v768_v35, %v764_v27  ;;  %v790_v50 = vshrl.u32 %v11228_v14, 16  ;;  %v751_v51 = vsel %vm11133_vm2, %v746_v37, %v750_v11  ;;  %v779_v54 = vrot.slane %v777_v39, 4  ;;  %v1311_v37 = vld [vmem:[#allocation2] sm:$0xe] }
  0x3d   : > { %v782_v56 = vrot.slane %v780_v34, 5  ;;  %v796_v57 = vshll.u32 %v11235_v23, 16  ;;  %v8498_v59 = vcombine.low %v741_v32, %v751_v51  ;;  %v765_v60 = vsel %vm11133_vm2, %v760_v42, %v764_v27  ;;  %v10498_v42 = vld [vmem:[%s13828_s2 + $0x30] sm:$0xff]  }
  0x3e   : > { %v770_v61 = vrot.slane %v769_v46, 4  ;;  %v788_v62 = vrot.slane %v786_v49, 5  ;;  %9534 = vmatpush3.bf16.msra.mxu0 %v10495_v3  ;;  %v792_v4 = vrot.slane %v790_v50, 4  ;;  %v801_v6 = vshrl.u32 %v11242_v36, 16  ;;  %v1312_v46 = vld [vmem:[#allocation2 + $0xc] sm:$0xe] }
  0x3f   : > { %v783_v2 = vor.u32 %v782_v56, %v779_v54  ;;  %v798_v5 = vrot.slane %v796_v57, 5  ;;  %9515 = vmatprep.mubr.bf16.mxu0 %v8498_v59  ;;  %9535 = vmatprep.subr.bf16.mxu0 %v10496_v48  ;;  %v804_v10 = vshll.u32 %v11242_v36, 16  ;;  %v810_v11 = vshll.u32 %v11247_v40, 16  ;;  %v1313_v56 = vld [vmem:[#allocation2 + $0x18] sm:$0xe] }
  0x40   : > { %v775_v9 = vsel %vm11133_vm2, %v770_v61, %v774_v38  ;;  %v814_v3 = vshrl.u32 %v11247_v40, 16  ;;  %v793_v18 = vor.u32 %v792_v4, %v788_v62  ;;  %v803_v22 = vrot.slane %v801_v6, 4 }
  0x41   : > { %v8499_v15 = vcombine.low %v765_v60, %v775_v9  ;;  %v784_v16 = vrot.slane %v783_v2, 4  ;;  %v806_v25 = vrot.slane %v804_v10, 5  ;;  %v812_v27 = vrot.slane %v810_v11, 5  ;;  %v10499_v2 = vld [vmem:[%s13828_s2 + $0x38] sm:$0xff]   ;;  %v1314_v10 = vld [vmem:[#allocation2 + $0x24] sm:$0xe] }
  0x42   : > { %v816_v30 = vrot.slane %v814_v3, 4  ;;  %v820_v31 = vshll.u32 %v11257_v58, 16  ;;  %v1349_v32 = vrot.slane %v11103_v21, 5  ;;  %9536 = vmatpush3.bf16.msra.mxu0 %v10496_v48  ;;  %v794_v35 = vrot.slane %v793_v18, 4 }
  0x43   : > { %v789_v33 = vsel %vm11133_vm2, %v784_v16, %v788_v62  ;;  %9516 = vmatmul.mubr.bf16.gmra.mrb[8].mxu0 %v8499_v15  ;;  %9537 = vmatprep.subr.bf16.mxu0 %v10497_v63  ;;  %v807_v38 = vor.u32 %v806_v25, %v803_v22  ;;  %v8512_v51 = vcombine.low %v11099_v19, %v11101_v20  ;;  %v8530_v57 = vrot.slane %v1311_v37, 9  ;;  %v1315_v15 = vld [vmem:[#allocation2 + $0x30] sm:$0xe]  ;;  %v10502_v16 = vld [vmem:[%s13828_s2 + $0x80] sm:$0xff]  }
  0x44   : > { %v817_v39 = vor.u32 %v816_v30, %v812_v27  ;;  %v822_v34 = vrot.slane %v820_v31, 5  ;;  %v799_v49 = vsel %vm11133_vm2, %v794_v35, %v798_v5  ;;  %v1346_v59 = vrot.slane %v11101_v20, 5  ;;  %v1316_v31 = vld [vmem:[#allocation2 + $0x3c] sm:$0xe] }
  0x45   : > { %v8500_v21 = vcombine.low %v789_v33, %v799_v49  ;;  %v808_v48 = vrot.slane %v807_v38, 4  ;;  %v8531_v60 = vrot.slane %v1312_v46, 9  ;;  %v1353_v61 = vrot.slane %v11112_v28, 5  ;;  %v1318_v49 = vld [vmem:[#allocation2 + $0x54] sm:$0xe] }
  0x46   : > { %v818_v50 = vrot.slane %v817_v39, 4  ;;  %9538 = vmatpush3.bf16.msra.mxu0 %v10497_v63  ;;  %v8532_v4 = vrot.slane %v1313_v56, 9  ;;  %v1360_v63 = vrot.slane %v11129_v44, 5  ;;  %v1356_v20 = vrot.slane %v11114_v29, 5  ;;  %v1317_v39 = vld [vmem:[#allocation2 + $0x48] sm:$0xe] }
  0x47   : > { %9519 = vmatprep.mubr.bf16.mxu0 %v8500_v21  ;;  %v813_v62 = vsel %vm11133_vm2, %v808_v48, %v812_v27  ;;  %9539 = vmatprep.subr.bf16.mxu0 %v10498_v42  ;;  %v11307_v6 = vsel %vm11290_vm5, %v8530_v57, %v1346_v59  ;;  %v1348_v9 = vrot.slane %v1346_v59, 4  ;;  %v8513_v11 = vcombine.low %v11109_v26, %v11112_v28  ;;  %v10503_v21 = vld [vmem:[%s13828_s2 + $0x88] sm:$0xff]  }
  0x48   : > { %v823_v19 = vsel %vm11133_vm2, %v818_v50, %v822_v34  ;;  %v11317_v13 = vsel %vm11290_vm5, %v8531_v60, %v1353_v61  ;;  %v1355_v29 = vrot.slane %v1353_v61, 4  ;;  %v8514_v18 = vcombine.low %v11127_v43, %v11129_v44 }
  0x49   : > { %v8501_v5 = vcombine.low %v813_v62, %v823_v19  ;;  %v11313_v3 = vsel %vm11290_vm5, %v1348_v9, %v1349_v32  ;;  %v11328_v28 = vsel %vm11290_vm5, %v8532_v4, %v1360_v63  ;;  %v1362_v22 = vrot.slane %v1360_v63, 4 }
  0x4a   : > { %9540 = vmatpush3.bf16.msra.mxu0 %v10498_v42  ;;  %v8556_v26 = vcombine.low %v11307_v6, %v11313_v3  ;;  %v11332_v24 = vsel %vm11290_vm5, %v1355_v29, %v1356_v20  ;;  %v1363_v25 = vrot.slane %v11148_v55, 5  ;;  %v8533_v27 = vrot.slane %v1314_v10, 9  ;;  %v10506_v10 = vld [vmem:[%s13828_s2 + $0x90] sm:$0xff]   ;;  %v10521_v3 = vld [vmem:[%s13828_s2 + $0xd8] sm:$0xff]  }
  0x4b   : > { %9520 = vmatmul.mubr.bf16.gmra.mrb[12].mxu0 %v8501_v5  ;;  %9541 = vmatprep.subr.bf16.mxu0 %v10499_v2  ;;  %v1367_v30 = vrot.slane %v11162_v1, 5  ;;  %v8557_v43 = vcombine.low %v11317_v13, %v11332_v24  ;;  %v1370_v44 = vrot.slane %v11166_v7, 5  ;;  %v8534_v32 = vrot.slane %v1315_v15, 9  ;;  %v563_v5 = vld [vmem:[%s11262_s15 + $0x14] sm:$0x1]  ;;  %v10522_v13 = vld [vmem:[%s13828_s2 + $0xe0] sm:$0xff]  }
  0x4c   : > { %9543 = vmatprep.mubr.bf16.mxu0 %v8512_v51  ;;  %v1374_v33 = vrot.slane %v11182_v17, 5  ;;  %v11342_v35 = vsel %vm11290_vm5, %v1362_v22, %v1363_v25  ;;  %v1377_v38 = vrot.slane %v11198_v41, 5  ;;  %v8535_v46 = vrot.slane %v1316_v31, 9  ;;  %576 = vst [vmem:[#allocation2 + $0x74] sm:$0x1] %v563_v5  ;;  %v10508_v22 = vld [vmem:[%s13828_s2 + $0x98] sm:$0xff]  }
  0x4d   : > { %v11346_v55 = vsel %vm11290_vm5, %v8533_v27, %v1367_v30  ;;  %v1369_v37 = vrot.slane %v1367_v30, 4  ;;  %v8558_v7 = vcombine.low %v11328_v28, %v11342_v35  ;;  %v1381_v48 = vrot.slane %v11208_v52, 5  ;;  %v10514_v31 = vld [vmem:[%s13828_s2 + $0xb0] sm:$0xff]   ;;  %v566_v28 = vld [vmem:[%s11262_s15 + $0x20] sm:$0x1]  ;;  %v10523_v35 = vld [vmem:[%s13828_s2 + $0xe8] sm:$0xff]  }
  0x4e   : > { %9542 = vmatpush3.bf16.msra.mxu0 %v10499_v2  ;;  %v11353_v34 = vsel %vm11290_vm5, %v8534_v32, %v1374_v33  ;;  %v1376_v42 = vrot.slane %v1374_v33, 4  ;;  %v1384_v50 = vrot.slane %v11214_v53, 5  ;;  %v8536_v51 = vrot.slane %v1317_v39, 9  ;;  %v560_v2 = vld [vmem:[%s11262_s15 + $0x8] sm:$0x1]  ;;  %v10520_v6 = vld [vmem:[%s13828_s2 + $0xd0] sm:$0xff]  }
  0x4f   : > { %9563 = vmatprep.subr.bf16.mxu0 %v10502_v16  ;;  %v11360_v41 = vsel %vm11290_vm5, %v1369_v37, %v1370_v44  ;;  %v1388_v59 = vrot.slane %v11228_v14, 5  ;;  %v1391_v60 = vrot.slane %v11235_v23, 5  ;;  %v11376_v62 = vsel %vm11290_vm5, %v8535_v46, %v1381_v48  ;;  %573 = vst [vmem:[#allocation2 + $0x68] sm:$0x1] %v560_v2  ;;  %v599_v44 = vld [vmem:[#allocation2 + $0x60] sm:$0xf] }
  0x50   : > { %v8559_v56 = vcombine.low %v11346_v55, %v11360_v41  ;;  %v11368_v57 = vsel %vm11290_vm5, %v1376_v42, %v1377_v38  ;;  %v1383_v53 = vrot.slane %v1381_v48, 4  ;;  %v8537_v19 = vrot.slane %v1318_v49, 9  ;;  %v600_v32 = vld [vmem:[#allocation2 + $0x64] sm:$0xf]  ;;  %v11437_v33 = vld [vmem:[#allocation2 + $0x6c] sm:$0xf] }
  0x51   : > { %v8560_v61 = vcombine.low %v11353_v34, %v11368_v57  ;;  %v11381_v4 = vsel %vm11290_vm5, %v8536_v51, %v1388_v59  ;;  %v1390_v63 = vrot.slane %v1388_v59, 4  ;;  %v1395_v20 = vrot.slane %v11247_v40, 5  ;;  %v11439_v37 = vld [vmem:[#allocation2 + $0x70] sm:$0xf]  ;;  %v10518_v38 = vld [vmem:[%s13828_s2 + $0xc0] sm:$0xff]   ;;  %v10525_v57 = vld [vmem:[%s13828_s2 + $0xf8] sm:$0xff]  }
  0x52   : > { %v1398_v23 = vrot.slane %v11257_v58, 5  ;;  %v11388_v9 = vsel %vm11290_vm5, %v1383_v53, %v1384_v50  ;;  %v8516_v27 = vcombine.low %v11175_v12, %v11182_v17  ;;  %v8518_v12 = vcombine.low %v11225_v8, %v11228_v14  ;;  %v10513_v17 = vld [vmem:[%s13828_s2 + $0xa8] sm:$0xff]   ;;  %v10517_v14 = vld [vmem:[%s13828_s2 + $0xb8] sm:$0xff]   ;;  %579 = vst [vmem:[#allocation2 + $0x80] sm:$0x1] %v566_v28  ;;  %v10524_v46 = vld [vmem:[%s13828_s2 + $0xf0] sm:$0xff]  }
  0x53   : > { %9544 = vmatmul.mubr.bf16.vlgmr.msra.gmra.mrb[0].mxu0 %v8513_v11  ;;  %v8561_v11 = vcombine.low %v11376_v62, %v11388_v9  ;;  %v11397_v58 = vsel %vm11290_vm5, %v1390_v63, %v1391_v60  ;;  %v11401_v29 = vsel %vm11290_vm5, %v8537_v19, %v1395_v20  ;;  %v1397_v15 = vrot.slane %v1395_v20, 4  ;;  %v1320_v34 = vld [vmem:[#allocation2 + $0x6c] sm:$0xe]  ;;  %v11494_v41 = vld [vmem:[#allocation2 + $0x74] sm:$0x1]  ;;  %v10527_v19 = vld [vmem:[#allocation2 + $0x18] sm:$0xff]  }
  0x54   : > { %9564 = vmatpush3.bf16.msra.mxu0 %v10502_v16  ;;  %9547 = vmatprep.mubr.bf16.mxu0 %v8514_v18  ;;  %v8562_v16 = vcombine.low %v11381_v4, %v11397_v58  ;;  %v8515_v18 = vcombine.low %v11160_v0, %v11162_v1  ;;  %v10510_v0 = vld [vmem:[%s13828_s2 + $0xa0] sm:$0xff]   ;;  %v8517_v1 = vcombine.low %v11202_v47, %v11208_v52  ;;  %v564_v47 = vld [vmem:[%s11262_s15 + $0x18] sm:$0xff]   ;;  %v1409_v42 = vrot.slane %v11439_v37, 5  ;;  %v10526_v53 = vld [vmem:[#allocation2 + $0xc] sm:$0xff]  }
  0x55   : > { %9565 = vmatprep.subr.bf16.mxu0 %v10503_v21  ;;  %v11412_v25 = vsel %vm11290_vm5, %v1397_v15, %v1398_v23  ;;  %577 = vst [vmem:[#allocation2 + $0x78] sm:$0xff] %v564_v47   ;;  %v8519_v52 = vcombine.low %v11242_v36, %v11247_v40  ;;  %v8520_v8 = vcombine.low %v599_v44, %v600_v32  ;;  %v10519_v40 = vld [vmem:[%s13828_s2 + $0xc8] sm:$0xff]   ;;  %v8539_v48 = vrot.slane %v1320_v34, 9  ;;  %v11513_v20 = vld [vmem:[#allocation2 + $0x10] sm:$0xf] }
  0x56   : > { %v8563_v30 = vcombine.low %v11401_v29, %v11412_v25  ;;  %v8521_v36 = vcombine.low %v11437_v33, %v11439_v37  ;;  %v11474_v24 = vld [vmem:[#allocation2 + $0x68] sm:$0x1]  ;;  %v1411_v51 = vrot.slane %v1409_v42, 4  ;;  %v1931_v2 = vld [vmem:[#allocation2 + $0xc] sm:$0xf]  ;;  %v10531_v58 = vld [vmem:[#allocation2 + $0x30] sm:$0xff]  }
  0x57   : > { %v1410_v59 = vsel %vm11290_vm5, %v8539_v48, %v1409_v42  ;;  %v10529_v4 = vld [vmem:[%s13828_s2 + $0x108] sm:$0xff]   ;;  %v11515_v23 = vld [vmem:[#allocation2 + $0x14] sm:$0x1]  ;;  %v1962_v5 = vshrl.u32 %v1931_v2, 16  ;;  %v1965_v9 = vshll.u32 %v1931_v2, 16  ;;  %v1971_v29 = vshll.u32 %v11513_v20, 16 }
  0x58   : > { %9566 = vmatpush3.bf16.msra.mxu0 %v10503_v21  ;;  %v10530_v63 = vld [vmem:[#allocation2 + $0x24] sm:$0xff]   ;;  %v1975_v15 = vshrl.u32 %v11513_v20, 16  ;;  %v10534_v25 = vld [vmem:[%s13828_s2 + $0x118] sm:$0xff]   ;;  %v10540_v48 = vld [vmem:[%s13828_s2 + $0x130] sm:$0xff]  }
  0x59   : > { %9567 = vmatprep.subr.bf16.mxu0 %v10506_v10  ;;  %v11560_v2 = vld [vmem:[#allocation2 + $0x2c] sm:$0x1] }
  0x5b   : > { %9548 = vmatmul.mubr.bf16.gmra.mrb[4].mxu0 %v8515_v18  ;;  %v1981_v18 = vshll.u32 %v11515_v23, 16 }
  0x5c   : > { %9568 = vmatpush3.bf16.msra.mxu0 %v10506_v10  ;;  %9551 = vmatprep.mubr.bf16.mxu0 %v8516_v27  ;;  %v1934_v10 = vld [vmem:[#allocation2 + $0x18] sm:$0xf]  ;;  %v1964_v27 = vrot.slane %v1962_v5, 4 }
  0x5d   : > { %9569 = vmatprep.subr.bf16.mxu0 %v10508_v22  ;;  %v1989_v44 = vshll.u32 %v1934_v10, 16 }
  0x60   : > { %9570 = vmatpush3.bf16.msra.mxu0 %v10508_v22  ;;  %v1986_v22 = vshrl.u32 %v1934_v10, 16 }
  0x61   : > { %9571 = vmatprep.subr.bf16.mxu0 %v10510_v0 }
  0x63   : > { %9552 = vmatmul.mubr.bf16.gmra.mrb[8].mxu0 %v8517_v1  ;;  %v10536_v1 = vld [vmem:[%s13828_s2 + $0x120] sm:$0xff]  }
  0x64   : > { %9572 = vmatpush3.bf16.msra.mxu0 %v10510_v0  ;;  %9555 = vmatprep.mubr.bf16.mxu0 %v8518_v12  ;;  %v11526_v0 = vld [vmem:[#allocation2 + $0x1c] sm:$0xf]  ;;  %v11531_v12 = vrot.slane %v1971_v29, 5 }
  0x65   : > { %9573 = vmatprep.subr.bf16.mxu0 %v10513_v17  ;;  %v1999_v47 = vshrl.u32 %v11526_v0, 16 }
  0x68   : > { %9574 = vmatpush3.bf16.msra.mxu0 %v10513_v17  ;;  %v1977_v17 = vrot.slane %v1975_v15, 4 }
  0x69   : > { %9575 = vmatprep.subr.bf16.mxu0 %v10514_v31 }
  0x6b   : > { %9556 = vmatmul.mubr.bf16.gmra.mrb[12].mxu0 %v8519_v52  ;;  %v10535_v52 = vld [vmem:[#allocation2 + $0x48] sm:$0xff]  }
  0x6c   : > { %9559 = vmatprep.mubr.bf16.mxu0 %v8520_v8  ;;  %9576 = vmatpush3.bf16.msra.mxu0 %v10514_v31  ;;  %v11533_v31 = vrot.slane %v1986_v22, 4  ;;  %v10537_v8 = vld [vmem:[#allocation2 + $0x54] sm:$0xff]  }
  0x6d   : > { %9577 = vmatprep.subr.bf16.mxu0 %v10517_v14 }
  0x70   : > { %9578 = vmatpush3.bf16.msra.mxu0 %v10517_v14  ;;  %v1937_v14 = vld [vmem:[#allocation2 + $0x24] sm:$0xf] }
  0x71   : > { %9599 = vmatprep.subr.bf16.mxu0 %v10518_v38 }
  0x73   : > { %9560 = vmatmul.mubr.bf16.gmra.mrb[16].mxu0 %v8521_v36  ;;  %v10539_v36 = vld [vmem:[%s13828_s2 + $0x128] sm:$0xff]  }
  0x74   : > { %9579 = vmatprep.mubr.bf16.mxu0 %v8556_v26  ;;  %v1402_v26 = vrot.slane %v600_v32, 5  ;;  %v1995_v32 = vshll.u32 %v11526_v0, 16 }
  0x76   : > { %v1404_v39 = vrot.slane %v1402_v26, 4 }
  0x7b   : > { %9580 = vmatmul.mubr.bf16.vlgmr.msra.gmra.mrb[0].mxu0 %v8557_v43  ;;  %v1319_v43 = vld [vmem:[#allocation2 + $0x60] sm:$0xe] }
  0x7c   : > { %9600 = vmatpush3.bf16.msra.mxu0 %v10518_v38  ;;  %9583 = vmatprep.mubr.bf16.mxu0 %v8558_v7  ;;  %v8538_v55 = vrot.slane %v1319_v43, 9  ;;  %v1405_v7 = vrot.slane %v11474_v24, 5  ;;  %v11537_v38 = vld [vmem:[#allocation2 + $0x28] sm:$0xf]  ;;  %v1978_v43 = vor.u32 %v1977_v17, %v11531_v12  ;;  %v2029_v17 = vshll.u32 %v11560_v2, 16 }
  0x7d   : > { %9601 = vmatprep.subr.bf16.mxu0 %v10519_v40  ;;  %v2019_v34 = vshll.u32 %v11537_v38, 16  ;;  %v2023_v42 = vshrl.u32 %v11537_v38, 16 }
  0x7e   : > { %v1403_v49 = vsel %vm11290_vm5, %v8538_v55, %v1402_v26  ;;  %v1406_v21 = vsel %vm11290_vm5, %v1404_v39, %v1405_v7  ;;  %v567_v26 = vld [vmem:[%s11262_s15 + $0x24] sm:$0xff]   ;;  %v2001_v55 = vrot.slane %v1999_v47, 4  ;;  %v2010_v39 = vshrl.u32 %v1937_v14, 16 }
  0x7f   : > { %v8564_v50 = vcombine.low %v1403_v49, %v1406_v21  ;;  %580 = vst [vmem:[#allocation2 + $0x84] sm:$0xff] %v567_v26   ;;  %v2013_v7 = vshll.u32 %v1937_v14, 16  ;;  %v2025_v10 = vrot.slane %v2023_v42, 4  ;;  %v11588_v14 = vld [vmem:[%s13828_s2 + $0x140] sm:$0xff]  }
  0x80   : > { %9602 = vmatpush3.bf16.msra.mxu0 %v10519_v40  ;;  %v1940_v40 = vld [vmem:[#allocation2 + $0x30] sm:$0xf] }
  0x81   : > { %9603 = vmatprep.subr.bf16.mxu0 %v10520_v6  ;;  %v2037_v49 = vshll.u32 %v1940_v40, 16  ;;  %v2015_v5 = vrot.slane %v2013_v7, 5 }
  0x83   : > { %9584 = vmatmul.mubr.bf16.gmra.mrb[4].mxu0 %v8559_v56  ;;  %v1412_v56 = vrot.slane %v11494_v41, 5  ;;  %v2039_v29 = vrot.slane %v2037_v49, 5  ;;  %v11597_v49 = vld [vmem:[#allocation2 + $0x4c] sm:$0xf] }
  0x84   : > { %9604 = vmatpush3.bf16.msra.mxu0 %v10520_v6  ;;  %9587 = vmatprep.mubr.bf16.mxu0 %v8560_v61  ;;  %v10528_v61 = vld [vmem:[%s13828_s2 + $0x100] sm:$0xff]   ;;  %v11542_v6 = vld [vmem:[#allocation2 + $0x34] sm:$0xf] }
  0x85   : > { %9605 = vmatprep.subr.bf16.mxu0 %v10521_v3  ;;  %v1413_v60 = vsel %vm11290_vm5, %v1411_v51, %v1412_v56  ;;  %v2043_v21 = vshll.u32 %v11542_v6, 16  ;;  %v2047_v56 = vshrl.u32 %v11542_v6, 16 }
  0x86   : > { %v8565_v62 = vcombine.low %v1410_v59, %v1413_v60  ;;  %v10538_v59 = vld [vmem:[#allocation2 + $0x60] sm:$0xff]   ;;  %v10541_v60 = vld [vmem:[#allocation2 + $0x6c] sm:$0xff]  }
  0x87   : > { %v11569_v15 = vrot.slane %v2043_v21, 5  ;;  %v2049_v22 = vrot.slane %v2047_v56, 4  ;;  %v1949_v21 = vld [vmem:[#allocation2 + $0x54] sm:$0xf] }
  0x88   : > { %9606 = vmatpush3.bf16.msra.mxu0 %v10521_v3  ;;  %v11544_v3 = vld [vmem:[#allocation2 + $0x20] sm:$0x1] }
  0x89   : > { %9607 = vmatprep.subr.bf16.mxu0 %v10522_v13  ;;  %v2005_v51 = vshll.u32 %v11544_v3, 16 }
  0x8b   : > { %9588 = vmatmul.mubr.bf16.gmra.mrb[8].mxu0 %v8561_v11  ;;  %v10532_v11 = vld [vmem:[%s13828_s2 + $0x110] sm:$0xff]  }
  0x8c   : > { %9608 = vmatpush3.bf16.msra.mxu0 %v10522_v13  ;;  %9591 = vmatprep.mubr.bf16.mxu0 %v8562_v16  ;;  %v10533_v16 = vld [vmem:[#allocation2 + $0x3c] sm:$0xff]   ;;  %v1991_v13 = vrot.slane %v1989_v44, 5 }
  0x8d   : > { %9609 = vmatprep.subr.bf16.mxu0 %v10523_v35 }
  0x90   : > { %9610 = vmatpush3.bf16.msra.mxu0 %v10523_v35  ;;  %v11548_v35 = vrot.slane %v1995_v32, 5 }
  0x91   : > { %9611 = vmatprep.subr.bf16.mxu0 %v10524_v46 }
  0x93   : > { %9592 = vmatmul.mubr.bf16.gmra.mrb[12].mxu0 %v8563_v30  ;;  %v1967_v30 = vrot.slane %v1965_v9, 5  ;;  %v11565_v9 = vrot.slane %v2019_v34, 5 }
  0x94   : > { %9595 = vmatprep.mubr.bf16.mxu0 %v8564_v50  ;;  %9612 = vmatpush3.bf16.msra.mxu0 %v10524_v46  ;;  %v2034_v46 = vshrl.u32 %v1940_v40, 16  ;;  %v1983_v50 = vrot.slane %v1981_v18, 5  ;;  %v2050_v40 = vor.u32 %v2049_v22, %v11569_v15 }
  0x95   : > { %9613 = vmatprep.subr.bf16.mxu0 %v10525_v57  ;;  %v1968_v28 = vor.u32 %v1967_v30, %v1964_v27  ;;  %v2026_v47 = vor.u32 %v2025_v10, %v11565_v9 }
  0x98   : > { %9614 = vmatpush3.bf16.msra.mxu0 %v10525_v57  ;;  %v1943_v57 = vld [vmem:[#allocation2 + $0x3c] sm:$0xf] }
  0x99   : > { %9635 = vmatprep.subr.bf16.mxu0 %v10528_v61  ;;  %v2058_v18 = vshrl.u32 %v1943_v57, 16 }
  0x9b   : > { %9596 = vmatmul.mubr.bf16.gmra.mrb[16].mxu0 %v8565_v62  ;;  %v1979_v62 = vrot.slane %v1978_v43, 4  ;;  %v10542_v43 = vld [vmem:[#allocation2 + $0x78] sm:$0xff]  }
  0x9c   : > { %9615 = vmatprep.mubr.bf16.mxu0 %v10526_v53  ;;  %v1992_v53 = vor.u32 %v1991_v13, %v11533_v31  ;;  %v2060_v13 = vrot.slane %v2058_v18, 4 }
  0x9d   : > { %v1984_v30 = vsel %vm11133_vm2, %v1979_v62, %v1983_v50 }
  0x9e   : > { %v1993_v31 = vrot.slane %v1992_v53, 4  ;;  %v2091_v53 = vshll.u32 %v11597_v49, 16 }
  0xa0   : > { %v1998_v7 = vsel %vm11133_vm2, %v1993_v31, %v11548_v35  ;;  %v11624_v31 = vrot.slane %v2091_v53, 5 }
  0xa3   : > { %9616 = vmatmul.mubr.bf16.vlgmr.msra.gmra.mrb[0].mxu0 %v10527_v19  ;;  %v2002_v19 = vor.u32 %v2001_v55, %v11548_v35 }
  0xa4   : > { %9636 = vmatpush3.bf16.msra.mxu0 %v10528_v61  ;;  %9619 = vmatprep.mubr.bf16.mxu0 %v10530_v63  ;;  %v1969_v61 = vrot.slane %v1968_v28, 4  ;;  %v2012_v63 = vrot.slane %v2010_v39, 4  ;;  %v1946_v28 = vld [vmem:[#allocation2 + $0x48] sm:$0xf]  ;;  %v2031_v39 = vrot.slane %v2029_v17, 5 }
  0xa5   : > { %9637 = vmatprep.subr.bf16.mxu0 %v10529_v4  ;;  %v2003_v44 = vrot.slane %v2002_v19, 4  ;;  %v2085_v56 = vshll.u32 %v1946_v28, 16  ;;  %v2095_v19 = vshrl.u32 %v11597_v49, 16  ;;  %v11622_v17 = vld [vmem:[#allocation2 + $0x50] sm:$0x1] }
  0xa6   : > { %v1974_v27 = vsel %vm11133_vm2, %v1969_v61, %v11531_v12  ;;  %v2016_v32 = vor.u32 %v2015_v5, %v2012_v63  ;;  %v11604_v61 = vld [vmem:[#allocation2 + $0x44] sm:$0x1]  ;;  %v2109_v63 = vshll.u32 %v1949_v21, 16 }
  0xa7   : > { %v8624_v55 = vcombine.low %v1974_v27, %v1984_v30  ;;  %v2077_v22 = vshll.u32 %v11604_v61, 16  ;;  %v2087_v27 = vrot.slane %v2085_v56, 5 }
  0xa8   : > { %9638 = vmatpush3.bf16.msra.mxu0 %v10529_v4  ;;  %v10543_v4 = vld [vmem:[%s13828_s2 + $0x138] sm:$0xff]   ;;  %v2017_v42 = vrot.slane %v2016_v32, 4 }
  0xa9   : > { %9639 = vmatprep.subr.bf16.mxu0 %v10532_v11 }
  0xaa   : > { %v2022_v5 = vsel %vm11133_vm2, %v2017_v42, %v11565_v9 }
  0xab   : > { %9620 = vmatmul.mubr.bf16.gmra.mrb[4].mxu0 %v10531_v58  ;;  %v2036_v58 = vrot.slane %v2034_v46, 4  ;;  %v2027_v46 = vrot.slane %v2026_v47, 4  ;;  %v2111_v47 = vrot.slane %v2109_v63, 5  ;;  %v10546_v63 = vld [vmem:[%s13828_s2 + $0x150] sm:$0xff]  }
  0xac   : > { %9640 = vmatpush3.bf16.msra.mxu0 %v10532_v11  ;;  %9623 = vmatprep.mubr.bf16.mxu0 %v10533_v16  ;;  %v11567_v11 = vld [vmem:[#allocation2 + $0x38] sm:$0x1]  ;;  %v11571_v16 = vld [vmem:[#allocation2 + $0x40] sm:$0xf] }
  0xad   : > { %9641 = vmatprep.subr.bf16.mxu0 %v10534_v25  ;;  %v2071_v12 = vshrl.u32 %v11571_v16, 16  ;;  %v2032_v10 = vsel %vm11133_vm2, %v2027_v46, %v2031_v39  ;;  %v10545_v39 = vld [vmem:[%s13828_s2 + $0x148] sm:$0xff]  }
  0xaf   : > { %v2073_v50 = vrot.slane %v2071_v12, 4  ;;  %v11626_v12 = vld [vmem:[#allocation2 + $0x5c] sm:$0x1] }
  0xb0   : > { %9642 = vmatpush3.bf16.msra.mxu0 %v10534_v25  ;;  %v2061_v25 = vshll.u32 %v1943_v57, 16  ;;  %v11601_v57 = vld [vmem:[#allocation2 + $0x58] sm:$0xf]  ;;  %v2125_v46 = vshll.u32 %v11626_v12, 16 }
  0xb1   : > { %9643 = vmatprep.subr.bf16.mxu0 %v10536_v1 }
  0xb2   : > { %v2063_v26 = vrot.slane %v2061_v25, 5 }
  0xb3   : > { %9624 = vmatmul.mubr.bf16.gmra.mrb[8].mxu0 %v10535_v52  ;;  %v2053_v52 = vshll.u32 %v11567_v11, 16 }
  0xb4   : > { %9644 = vmatpush3.bf16.msra.mxu0 %v10536_v1  ;;  %9627 = vmatprep.mubr.bf16.mxu0 %v10537_v8  ;;  %v11578_v1 = vrot.slane %v2005_v51, 5  ;;  %v2067_v8 = vshll.u32 %v11571_v16, 16  ;;  %v2082_v51 = vshrl.u32 %v1946_v28, 16  ;;  %v2064_v62 = vor.u32 %v2063_v26, %v2060_v13  ;;  %v1952_v13 = vld [vmem:[#allocation2 + $0x60] sm:$0xf] }
  0xb5   : > { %9645 = vmatprep.subr.bf16.mxu0 %v10539_v36  ;;  %v2079_v26 = vrot.slane %v2077_v22, 5  ;;  %v2127_v22 = vrot.slane %v2125_v46, 5 }
  0xb6   : > { %v2008_v34 = vsel %vm11133_vm2, %v2003_v44, %v11578_v1  ;;  %v2084_v25 = vrot.slane %v2082_v51, 4  ;;  %v2065_v1 = vrot.slane %v2064_v62, 4  ;;  %v2097_v44 = vrot.slane %v2095_v19, 4  ;;  %v11638_v51 = vld [vmem:[#allocation2 + $0x70] sm:$0xf] }
  0xb8   : > { %9646 = vmatpush3.bf16.msra.mxu0 %v10539_v36  ;;  %v2040_v36 = vor.u32 %v2039_v29, %v2036_v58  ;;  %v2115_v58 = vshll.u32 %v11601_v57, 16  ;;  %v2119_v29 = vshrl.u32 %v11601_v57, 16  ;;  %v2088_v28 = vor.u32 %v2087_v27, %v2084_v25  ;;  %v11654_v27 = vld [vmem:[#allocation2 + $0x68] sm:$0x1] }
  0xb9   : > { %9647 = vmatprep.subr.bf16.mxu0 %v10540_v48 }
  0xba   : > { %v2041_v35 = vrot.slane %v2040_v36, 4  ;;  %v11628_v36 = vrot.slane %v2115_v58, 5  ;;  %v2089_v19 = vrot.slane %v2088_v28, 4  ;;  %v2163_v58 = vshll.u32 %v11638_v51, 16 }
  0xbb   : > { %9628 = vmatmul.mubr.bf16.gmra.mrb[12].mxu0 %v10538_v59  ;;  %v2051_v59 = vrot.slane %v2050_v40, 4  ;;  %v2121_v40 = vrot.slane %v2119_v29, 4 }
  0xbc   : > { %9631 = vmatprep.mubr.bf16.mxu0 %v10541_v60  ;;  %9648 = vmatpush3.bf16.msra.mxu0 %v10540_v48  ;;  %v11599_v48 = vrot.slane %v2067_v8, 5  ;;  %v2055_v60 = vrot.slane %v2053_v52, 5  ;;  %v2046_v30 = vsel %vm11133_vm2, %v2041_v35, %v11569_v15  ;;  %v8625_v52 = vcombine.low %v1998_v7, %v2008_v34 }
  0xbd   : > { %9649 = vmatprep.subr.bf16.mxu0 %v10543_v4  ;;  %v8626_v8 = vcombine.low %v2022_v5, %v2032_v10  ;;  %v2098_v7 = vor.u32 %v2097_v44, %v11624_v31  ;;  %v2122_v56 = vor.u32 %v2121_v40, %v11628_v36  ;;  %v2133_v35 = vshll.u32 %v1952_v13, 16 }
  0xbe   : > { %v2074_v18 = vor.u32 %v2073_v50, %v11599_v48  ;;  %v2056_v9 = vsel %vm11133_vm2, %v2051_v59, %v2055_v60  ;;  %v1955_v50 = vld [vmem:[#allocation2 + $0x6c] sm:$0xf]  ;;  %v2070_v62 = vsel %vm11133_vm2, %v2065_v1, %v11599_v48  ;;  %v2165_v40 = vrot.slane %v2163_v58, 5 }
  0xbf   : > { %v8627_v42 = vcombine.low %v2046_v30, %v2056_v9  ;;  %v2154_v5 = vshrl.u32 %v1955_v50, 16  ;;  %v2157_v10 = vshll.u32 %v1955_v50, 16  ;;  %v2099_v29 = vrot.slane %v2098_v7, 4 }
  0xc0   : > { %9650 = vmatpush3.bf16.msra.mxu0 %v10543_v4  ;;  %v2106_v4 = vshrl.u32 %v1949_v21, 16  ;;  %v2075_v15 = vrot.slane %v2074_v18, 4  ;;  %v2130_v21 = vshrl.u32 %v1952_v13, 16  ;;  %v2123_v25 = vrot.slane %v2122_v56, 4 }
  0xc1   : > { %9671 = vmatprep.subr.bf16.mxu0 %v11588_v14  ;;  %v2135_v30 = vrot.slane %v2133_v35, 5 }
  0xc2   : > { %v2108_v32 = vrot.slane %v2106_v4, 4  ;;  %v2080_v53 = vsel %vm11133_vm2, %v2075_v15, %v2079_v26  ;;  %v2132_v48 = vrot.slane %v2130_v21, 4  ;;  %v11661_v15 = vld [vmem:[#allocation2 + $0x7c] sm:$0xf]  ;;  %v2094_v26 = vsel %vm11133_vm2, %v2089_v19, %v11624_v31 }
  0xc3   : > { %9632 = vmatmul.mubr.bf16.gmra.mrb[16].mxu0 %v10542_v43  ;;  %v2101_v43 = vshll.u32 %v11622_v17, 16  ;;  %v8628_v44 = vcombine.low %v2070_v62, %v2080_v53  ;;  %v2187_v56 = vshll.u32 %v11661_v15, 16  ;;  %v2191_v35 = vshrl.u32 %v11661_v15, 16 }
  0xc4   : > { %9651 = vmatprep.mubr.bf16.mxu0 %v8624_v55  ;;  %v11631_v55 = vld [vmem:[#allocation2 + $0x64] sm:$0xf]  ;;  %v2112_v34 = vor.u32 %v2111_v47, %v2108_v32  ;;  %v10547_v32 = vld [vmem:[%s13828_s2 + $0x158] sm:$0xff]   ;;  %v2136_v46 = vor.u32 %v2135_v30, %v2132_v48  ;;  %v11687_v30 = vld [vmem:[#allocation2 + $0x80] sm:$0x1] }
  0xc5   : > { %v2139_v59 = vshll.u32 %v11631_v55, 16  ;;  %v2143_v60 = vshrl.u32 %v11631_v55, 16  ;;  %v2103_v4 = vrot.slane %v2101_v43, 5  ;;  %v1958_v47 = vld [vmem:[#allocation2 + $0x78] sm:$0xf]  ;;  %v2149_v43 = vshll.u32 %v11654_v27, 16 }
  0xc6   : > { %v2113_v18 = vrot.slane %v2112_v34, 4  ;;  %v2128_v34 = vsel %vm11133_vm2, %v2123_v25, %v2127_v22  ;;  %v2178_v31 = vshrl.u32 %v1958_v47, 16  ;;  %v2181_v50 = vshll.u32 %v1958_v47, 16 }
  0xc7   : > { %v11656_v9 = vrot.slane %v2139_v59, 5  ;;  %v2145_v1 = vrot.slane %v2143_v60, 4  ;;  %v2104_v28 = vsel %vm11133_vm2, %v2099_v29, %v2103_v4  ;;  %v569_v59 = vld [vmem:[%s11262_s15 + $0x2c] sm:$0x1]  ;;  %v2137_v4 = vrot.slane %v2136_v46, 4 }
  0xc8   : > { %v2118_v7 = vsel %vm11133_vm2, %v2113_v18, %v11628_v36  ;;  %v10548_v36 = vld [vmem:[%s13828_s2 + $0x160] sm:$0xff]   ;;  %582 = vst [vmem:[#allocation2 + $0x8c] sm:$0x1] %v569_v59  ;;  %v8629_v53 = vcombine.low %v2094_v26, %v2104_v28  ;;  %v2183_v58 = vrot.slane %v2181_v50, 5  ;;  %v2193_v29 = vrot.slane %v2191_v35, 4  ;;  %v10549_v18 = vld [vmem:[%s13828_s2 + $0x168] sm:$0xff]  }
  0xc9   : > { %v2146_v21 = vor.u32 %v2145_v1, %v11656_v9  ;;  %v8630_v19 = vcombine.low %v2118_v7, %v2128_v34  ;;  %v2142_v1 = vsel %vm11133_vm2, %v2137_v4, %v11656_v9  ;;  %v2481_v26 = vrot.slane %v11513_v20, 5  ;;  %v2439_v28 = vld [vmem:[#allocation2 + $0xc] sm:$0xe] }
  0xca   : > { %v8642_v50 = vrot.slane %v2439_v28, 9  ;;  %v2488_v59 = vrot.slane %v11526_v0, 5 }
  0xcb   : > { %9652 = vmatmul.mubr.bf16.vlgmr.msra.gmra.mrb[0].mxu0 %v8625_v52  ;;  %v2156_v52 = vrot.slane %v2154_v5, 4  ;;  %v2151_v5 = vrot.slane %v2149_v43, 5 }
  0xcc   : > { %9672 = vmatpush3.bf16.msra.mxu0 %v11588_v14  ;;  %9655 = vmatprep.mubr.bf16.mxu0 %v8626_v8  ;;  %v2167_v14 = vshrl.u32 %v11638_v51, 16  ;;  %v2159_v8 = vrot.slane %v2157_v10, 5  ;;  %v2180_v10 = vrot.slane %v2178_v31, 4  ;;  %v10551_v31 = vld [vmem:[%s13828_s2 + $0x178] sm:$0xff]   ;;  %v2490_v0 = vrot.slane %v2488_v59, 4 }
  0xcd   : > { %9673 = vmatprep.subr.bf16.mxu0 %v10545_v39 }
  0xce   : > { %v2169_v13 = vrot.slane %v2167_v14, 4  ;;  %v2189_v14 = vrot.slane %v2187_v56, 5  ;;  %v2483_v56 = vrot.slane %v2481_v26, 4 }
  0xd0   : > { %9674 = vmatpush3.bf16.msra.mxu0 %v10545_v39  ;;  %v11669_v39 = vld [vmem:[#allocation2 + $0x74] sm:$0x1]  ;;  %v2170_v60 = vor.u32 %v2169_v13, %v2165_v40  ;;  %v2194_v47 = vor.u32 %v2193_v29, %v2189_v14 }
  0xd1   : > { %9675 = vmatprep.subr.bf16.mxu0 %v10546_v63  ;;  %v2173_v62 = vshll.u32 %v11669_v39, 16 }
  0xd2   : > { %v2171_v48 = vrot.slane %v2170_v60, 4  ;;  %v2195_v46 = vrot.slane %v2194_v47, 4  ;;  %v2440_v60 = vld [vmem:[#allocation2 + $0x18] sm:$0xe] }
  0xd3   : > { %9656 = vmatmul.mubr.bf16.gmra.mrb[4].mxu0 %v8627_v42  ;;  %v2160_v42 = vor.u32 %v2159_v8, %v2156_v52  ;;  %v2175_v25 = vrot.slane %v2173_v62, 5  ;;  %v2197_v52 = vshll.u32 %v11687_v30, 16  ;;  %v10550_v8 = vld [vmem:[%s13828_s2 + $0x170] sm:$0xff]   ;;  %v2495_v62 = vrot.slane %v11537_v38, 5 }
  0xd4   : > { %9676 = vmatpush3.bf16.msra.mxu0 %v10546_v63  ;;  %9659 = vmatprep.mubr.bf16.mxu0 %v8628_v44  ;;  %v2147_v63 = vrot.slane %v2146_v21, 4 }
  0xd5   : > { %9677 = vmatprep.subr.bf16.mxu0 %v10547_v32  ;;  %v2161_v22 = vrot.slane %v2160_v42, 4  ;;  %v2176_v9 = vsel %vm11133_vm2, %v2171_v48, %v2175_v25  ;;  %v2199_v21 = vrot.slane %v2197_v52, 5  ;;  %v2442_v48 = vld [vmem:[#allocation2 + $0x30] sm:$0xe]  ;;  %v2509_v25 = vrot.slane %v11571_v16, 5 }
  0xd6   : > { %v2152_v44 = vsel %vm11133_vm2, %v2147_v63, %v2151_v5  ;;  %v8643_v63 = vrot.slane %v2440_v60, 9  ;;  %v2491_v5 = vrot.slane %v11544_v3, 5  ;;  %v2505_v52 = vrot.slane %v11567_v11, 5  ;;  %v2444_v11 = vld [vmem:[#allocation2 + $0x48] sm:$0xe] }
  0xd7   : > { %v2166_v13 = vsel %vm11133_vm2, %v2161_v22, %v2165_v40  ;;  %v8631_v43 = vcombine.low %v2142_v1, %v2152_v44  ;;  %v2484_v40 = vrot.slane %v11515_v23, 5  ;;  %v2200_v35 = vsel %vm11133_vm2, %v2195_v46, %v2199_v21  ;;  %v10552_v23 = vld [vmem:[%s13828_s2 + $0x180] sm:$0xff]  }
  0xd8   : > { %9678 = vmatpush3.bf16.msra.mxu0 %v10547_v32  ;;  %v2184_v32 = vor.u32 %v2183_v58, %v2180_v10  ;;  %v8632_v7 = vcombine.low %v2166_v13, %v2176_v9  ;;  %v2497_v58 = vrot.slane %v2495_v62, 4  ;;  %v2489_v29 = vsel %vm11290_vm5, %v8643_v63, %v2488_v59  ;;  %v10555_v59 = vld [vmem:[%s13828_s2 + $0x198] sm:$0xff]   ;;  %v10706_v63 = vld [vmem:[#allocation2 + $0x60] sm:$0xf] }
  0xd9   : > { %9679 = vmatprep.subr.bf16.mxu0 %v10548_v36  ;;  %v2485_v42 = vsel %vm11290_vm5, %v2483_v56, %v2484_v40  ;;  %v2492_v38 = vsel %vm11290_vm5, %v2490_v0, %v2491_v5  ;;  %v2511_v13 = vrot.slane %v2509_v25, 4  ;;  %v2512_v9 = vrot.slane %v11604_v61, 5  ;;  %v10556_v0 = vld [vmem:[%s13828_s2 + $0x1a0] sm:$0xff]  }
  0xda   : > { %v2185_v34 = vrot.slane %v2184_v32, 4  ;;  %v8669_v1 = vcombine.low %v2489_v29, %v2492_v38  ;;  %v8645_v32 = vrot.slane %v2442_v48, 9  ;;  %v849_v46 = vshrl.u32 %v11437_v33, 16 }
  0xdb   : > { %9660 = vmatmul.mubr.bf16.gmra.mrb[8].mxu0 %v8629_v53  ;;  %v2441_v53 = vld [vmem:[#allocation2 + $0x24] sm:$0xe]  ;;  %v852_v21 = vshll.u32 %v11437_v33, 16  ;;  %v2519_v40 = vrot.slane %v11622_v17, 5  ;;  %v862_v60 = vshrl.u32 %v11439_v37, 16  ;;  %v825_v37 = vshrl.u32 %v10706_v63, 16 }
  0xdc   : > { %9680 = vmatpush3.bf16.msra.mxu0 %v10548_v36  ;;  %9663 = vmatprep.mubr.bf16.mxu0 %v8630_v19  ;;  %v2190_v20 = vsel %vm11133_vm2, %v2185_v34, %v2189_v14  ;;  %v2482_v36 = vsel %vm11290_vm5, %v8642_v50, %v2481_v26  ;;  %v8644_v10 = vrot.slane %v2441_v53, 9  ;;  %v2498_v14 = vrot.slane %v11560_v2, 5  ;;  %v2443_v2 = vld [vmem:[#allocation2 + $0x3c] sm:$0xe] }
  0xdd   : > { %9681 = vmatprep.subr.bf16.mxu0 %v10549_v18  ;;  %v8633_v19 = vcombine.low %v2190_v20, %v2200_v35  ;;  %v8668_v4 = vcombine.low %v2482_v36, %v2485_v42  ;;  %v2516_v26 = vrot.slane %v11597_v49, 5  ;;  %v2513_v49 = vsel %vm11290_vm5, %v2511_v13, %v2512_v9  ;;  %v2446_v42 = vld [vmem:[#allocation2 + $0x60] sm:$0xe] }
  0xde   : > { %v2496_v22 = vsel %vm11290_vm5, %v8644_v10, %v2495_v62  ;;  %v2499_v3 = vsel %vm11290_vm5, %v2497_v58, %v2498_v14  ;;  %v2523_v34 = vrot.slane %v11601_v57, 5  ;;  %v8647_v50 = vrot.slane %v2444_v11, 9  ;;  %v10707_v14 = vld [vmem:[#allocation2 + $0x64] sm:$0xf] }
  0xdf   : > { %v8670_v44 = vcombine.low %v2496_v22, %v2499_v3  ;;  %v2518_v56 = vrot.slane %v2516_v26, 4  ;;  %v2526_v57 = vrot.slane %v11626_v12, 5  ;;  %v851_v33 = vrot.slane %v849_v46, 4 }
  0xe0   : > { %9682 = vmatpush3.bf16.msra.mxu0 %v10549_v18  ;;  %v2502_v18 = vrot.slane %v11542_v6, 5  ;;  %v10553_v6 = vld [vmem:[%s13828_s2 + $0x188] sm:$0xff]   ;;  %v2525_v36 = vrot.slane %v2523_v34, 4  ;;  %v2517_v17 = vsel %vm11290_vm5, %v8647_v50, %v2516_v26  ;;  %v2530_v12 = vrot.slane %v11631_v55, 5 }
  0xe1   : > { %9683 = vmatprep.subr.bf16.mxu0 %v10550_v8  ;;  %v2520_v62 = vsel %vm11290_vm5, %v2518_v56, %v2519_v40  ;;  %v2537_v10 = vrot.slane %v11638_v51, 5  ;;  %v828_v58 = vshll.u32 %v10706_v63, 16  ;;  %v834_v29 = vshll.u32 %v10707_v14, 16  ;;  %v10557_v51 = vld [vmem:[%s13828_s2 + $0x1a8] sm:$0xff]   ;;  %v10564_v63 = vld [vmem:[#allocation2 + $0x30] sm:$0xff]  }
  0xe2   : > { %v2504_v47 = vrot.slane %v2502_v18, 4  ;;  %v2503_v16 = vsel %vm11290_vm5, %v8645_v32, %v2502_v18  ;;  %v2527_v5 = vsel %vm11290_vm5, %v2525_v36, %v2526_v57  ;;  %v8673_v38 = vcombine.low %v2517_v17, %v2520_v62 }
  0xe3   : > { %9664 = vmatmul.mubr.bf16.gmra.mrb[12].mxu0 %v8631_v43  ;;  %v10554_v43 = vld [vmem:[%s13828_s2 + $0x190] sm:$0xff]   ;;  %v2533_v18 = vrot.slane %v11654_v27, 5  ;;  %v827_v55 = vrot.slane %v825_v37, 4  ;;  %v838_v22 = vshrl.u32 %v10707_v14, 16  ;;  %v2540_v48 = vrot.slane %v11669_v39, 5  ;;  %v10563_v37 = vld [vmem:[%s13828_s2 + $0x1c8] sm:$0xff]  }
  0xe4   : > { %9667 = vmatprep.mubr.bf16.mxu0 %v8632_v7  ;;  %9684 = vmatpush3.bf16.msra.mxu0 %v10550_v8  ;;  %v8646_v8 = vrot.slane %v2443_v2, 9  ;;  %v2506_v28 = vsel %vm11290_vm5, %v2504_v47, %v2505_v52  ;;  %v2445_v7 = vld [vmem:[#allocation2 + $0x54] sm:$0xe]  ;;  %v836_v2 = vrot.slane %v834_v29, 5  ;;  %v844_v47 = vshll.u32 %v11474_v24, 16  ;;  %v10567_v14 = vld [vmem:[#allocation2 + $0x48] sm:$0xff]  }
  0xe5   : > { %9685 = vmatprep.subr.bf16.mxu0 %v10551_v31  ;;  %v8648_v35 = vrot.slane %v2445_v7, 9  ;;  %v840_v32 = vrot.slane %v838_v22, 4  ;;  %v2539_v52 = vrot.slane %v2537_v10, 4  ;;  %v864_v26 = vrot.slane %v862_v60, 4  ;;  %v10568_v29 = vld [vmem:[%s13828_s2 + $0x1d8] sm:$0xff]  }
  0xe6   : > { %v2510_v61 = vsel %vm11290_vm5, %v8646_v8, %v2509_v25  ;;  %v830_v25 = vrot.slane %v828_v58, 5  ;;  %v10708_v8 = vld [vmem:[#allocation2 + $0x70] sm:$0xf]  ;;  %v846_v39 = vrot.slane %v844_v47, 5  ;;  %v2544_v7 = vrot.slane %v11661_v15, 5 }
  0xe7   : > { %v8672_v20 = vcombine.low %v2510_v61, %v2513_v49  ;;  %v2524_v53 = vsel %vm11290_vm5, %v8648_v35, %v2523_v34  ;;  %v858_v13 = vshll.u32 %v10708_v8, 16  ;;  %v841_v9 = vor.u32 %v840_v32, %v836_v2  ;;  %v11815_v58 = vld [vmem:[#allocation2 + $0x1c] sm:$0xf] }
  0xe8   : > { %9686 = vmatpush3.bf16.msra.mxu0 %v10551_v31  ;;  %v8671_v31 = vcombine.low %v2503_v16, %v2506_v28  ;;  %v831_v27 = vor.u32 %v830_v25, %v827_v55  ;;  %v868_v16 = vshll.u32 %v11494_v41, 16  ;;  %v10558_v41 = vld [vmem:[%s13828_s2 + $0x1b0] sm:$0xff]   ;;  %v2541_v46 = vsel %vm11290_vm5, %v2539_v52, %v2540_v48  ;;  %v11822_v48 = vld [vmem:[#allocation2 + $0x28] sm:$0xf]  ;;  %v10570_v25 = vld [vmem:[%s13828_s2 + $0x1e0] sm:$0xff]  }
  0xe9   : > { %9707 = vmatprep.subr.bf16.mxu0 %v10552_v23  ;;  %v842_v34 = vrot.slane %v841_v9, 4  ;;  %v2547_v60 = vrot.slane %v11687_v30, 5  ;;  %v10562_v30 = vld [vmem:[%s13828_s2 + $0x1c0] sm:$0xff]   ;;  %v3106_v55 = vshll.u32 %v11815_v58, 16  ;;  %v3110_v22 = vshrl.u32 %v11815_v58, 16 }
  0xea   : > { %v832_v24 = vrot.slane %v831_v27, 4  ;;  %v870_v56 = vrot.slane %v868_v16, 5  ;;  %v10569_v27 = vld [vmem:[#allocation2 + $0x54] sm:$0xff]   ;;  %v3134_v8 = vshrl.u32 %v11822_v48, 16  ;;  %v10571_v9 = vld [vmem:[#allocation2 + $0x60] sm:$0xff]  }
  0xeb   : > { %9668 = vmatmul.mubr.bf16.gmra.mrb[16].mxu0 %v8633_v19  ;;  %v8649_v19 = vrot.slane %v2446_v42, 9  ;;  %v847_v40 = vsel %vm11133_vm2, %v842_v34, %v846_v39  ;;  %v2546_v42 = vrot.slane %v2544_v7, 4  ;;  %v3112_v52 = vrot.slane %v3110_v22, 4  ;;  %v11833_v39 = vld [vmem:[#allocation2 + $0x34] sm:$0xf] }
  0xec   : > { %9687 = vmatprep.mubr.bf16.mxu0 %v8668_v4  ;;  %v2447_v4 = vld [vmem:[#allocation2 + $0x6c] sm:$0xe] }
  0xed   : > { %v8650_v3 = vrot.slane %v2447_v4, 9  ;;  %v2531_v28 = vsel %vm11290_vm5, %v8649_v19, %v2530_v12  ;;  %v10561_v4 = vld [vmem:[#allocation2 + $0x24] sm:$0xff]  }
  0xef   : > { %v2538_v49 = vsel %vm11290_vm5, %v8650_v3, %v2537_v10  ;;  %v3066_v10 = vld [vmem:[#allocation2 + $0x18] sm:$0xf]  ;;  %v3069_v3 = vld [vmem:[#allocation2 + $0x24] sm:$0xf] }
  0xf0   : > { %v8676_v36 = vcombine.low %v2538_v49, %v2541_v46  ;;  %v11840_v49 = vld [vmem:[#allocation2 + $0x2c] sm:$0x1] }
  0xf3   : > { %9688 = vmatmul.mubr.bf16.vlgmr.msra.gmra.mrb[0].mxu0 %v8669_v1  ;;  %v8674_v1 = vcombine.low %v2524_v53, %v2527_v5  ;;  %v2548_v53 = vsel %vm11290_vm5, %v2546_v42, %v2547_v60  ;;  %v10565_v5 = vld [vmem:[#allocation2 + $0x3c] sm:$0xff]  }
  0xf4   : > { %9708 = vmatpush3.bf16.msra.mxu0 %v10552_v23  ;;  %9691 = vmatprep.mubr.bf16.mxu0 %v8670_v44  ;;  %v854_v23 = vrot.slane %v852_v21, 5  ;;  %v2532_v44 = vrot.slane %v2530_v12, 4  ;;  %v2448_v21 = vld [vmem:[#allocation2 + $0x78] sm:$0xe] }
  0xf5   : > { %9709 = vmatprep.subr.bf16.mxu0 %v10553_v6  ;;  %v8651_v57 = vrot.slane %v2448_v21, 9  ;;  %v10560_v12 = vld [vmem:[#allocation2 + $0x18] sm:$0xff]   ;;  %v3136_v21 = vrot.slane %v3134_v8, 4 }
  0xf6   : > { %v2534_v61 = vsel %vm11290_vm5, %v2532_v44, %v2533_v18  ;;  %v3100_v18 = vshll.u32 %v3066_v10, 16  ;;  %v11827_v44 = vld [vmem:[#allocation2 + $0x20] sm:$0x1] }
  0xf7   : > { %v2545_v62 = vsel %vm11290_vm5, %v8651_v57, %v2544_v7  ;;  %v3116_v16 = vshll.u32 %v11827_v44, 16 }
  0xf8   : > { %9710 = vmatpush3.bf16.msra.mxu0 %v10553_v6  ;;  %v855_v6 = vor.u32 %v854_v23, %v851_v33  ;;  %v10559_v33 = vld [vmem:[%s13828_s2 + $0x1b8] sm:$0xff]   ;;  %v8677_v19 = vcombine.low %v2545_v62, %v2548_v53  ;;  %v3102_v47 = vrot.slane %v3100_v18, 5 }
  0xf9   : > { %9711 = vmatprep.subr.bf16.mxu0 %v10554_v43  ;;  %v10575_v62 = vld [vmem:[#allocation2 + $0x78] sm:$0xff]  }
  0xfa   : > { %v856_v11 = vrot.slane %v855_v6, 4  ;;  %v3130_v6 = vshll.u32 %v11822_v48, 16  ;;  %v10577_v53 = vld [vmem:[%s13828_s2 + $0x1f8] sm:$0xff]  }
  0xfb   : > { %9692 = vmatmul.mubr.bf16.gmra.mrb[4].mxu0 %v8671_v31  ;;  %v837_v31 = vsel %vm11133_vm2, %v832_v24, %v836_v2  ;;  %v3121_v2 = vshrl.u32 %v3069_v3, 16 }
  0xfc   : > { %9712 = vmatpush3.bf16.msra.mxu0 %v10554_v43  ;;  %9695 = vmatprep.mubr.bf16.mxu0 %v8672_v20  ;;  %v860_v43 = vrot.slane %v858_v13, 5  ;;  %v8675_v20 = vcombine.low %v2531_v28, %v2534_v61  ;;  %v8502_v15 = vcombine.low %v837_v31, %v847_v40  ;;  %v3072_v13 = vld [vmem:[#allocation2 + $0x30] sm:$0xf]  ;;  %v11844_v46 = vrot.slane %v3130_v6, 5  ;;  %v11885_v6 = vld [vmem:[%s13828_s2 + $0x200] sm:$0xff]  }
  0xfd   : > { %9713 = vmatprep.subr.bf16.mxu0 %v10555_v59  ;;  %v3123_v28 = vrot.slane %v3121_v2, 4  ;;  %v3145_v7 = vshrl.u32 %v3072_v13, 16  ;;  %v3148_v34 = vshll.u32 %v3072_v13, 16  ;;  %v3154_v31 = vshll.u32 %v11833_v39, 16 }
  0xfe   : > { %v865_v50 = vor.u32 %v864_v26, %v860_v43  ;;  %v861_v35 = vsel %vm11133_vm2, %v856_v11, %v860_v43  ;;  %9523 = vmatprep.mubr.bf16.mxu1 %v8502_v15  ;;  %v10573_v26 = vld [vmem:[%s13828_s2 + $0x1e8] sm:$0xff]   ;;  %v3075_v11 = vld [vmem:[#allocation2 + $0x3c] sm:$0xf]  ;;  %v3118_v15 = vrot.slane %v3116_v16, 5  ;;  %v3081_v16 = vld [vmem:[#allocation2 + $0x54] sm:$0xf] }
  0xff   : > { %v3172_v40 = vshll.u32 %v3075_v11, 16  ;;  %v3147_v60 = vrot.slane %v3145_v7, 4 }
 0x100   : > { %9714 = vmatpush3.bf16.msra.mxu0 %v10555_v59  ;;  %v866_v59 = vrot.slane %v865_v50, 4  ;;  %v3158_v50 = vshrl.u32 %v11833_v39, 16 }
 0x101   : > { %9715 = vmatprep.subr.bf16.mxu0 %v10556_v0 }
 0x102   : > { %v871_v23 = vsel %vm11133_vm2, %v866_v59, %v870_v56  ;;  %v3169_v56 = vshrl.u32 %v3075_v11, 16 }
 0x103   : > { %9696 = vmatmul.mubr.bf16.gmra.mrb[8].mxu0 %v8673_v38  ;;  %v8503_v17 = vcombine.low %v861_v35, %v871_v23  ;;  %v3097_v38 = vshrl.u32 %v3066_v10, 16  ;;  %v3140_v35 = vshll.u32 %v11840_v49, 16  ;;  %v3078_v23 = vld [vmem:[#allocation2 + $0x48] sm:$0xf] }
 0x104   : > { %9716 = vmatpush3.bf16.msra.mxu0 %v10556_v0  ;;  %9699 = vmatprep.mubr.bf16.mxu0 %v8674_v1  ;;  %v10566_v0 = vld [vmem:[%s13828_s2 + $0x1d0] sm:$0xff]   ;;  %v3124_v1 = vshll.u32 %v3069_v3, 16  ;;  %v3196_v18 = vshll.u32 %v3078_v23, 16 }
 0x105   : > { %9717 = vmatprep.subr.bf16.mxu0 %v10557_v51  ;;  %9524 = vmatmul.mubr.bf16.vlgmr.msra.gmra.mrb[0].mxu1 %v8503_v17  ;;  %v3099_v32 = vrot.slane %v3097_v38, 4  ;;  %v10572_v17 = vld [vmem:[#allocation2 + $0x6c] sm:$0xff]   ;;  %v3193_v38 = vshrl.u32 %v3078_v23, 16  ;;  %v11873_v3 = vrot.slane %v3140_v35, 5 }
 0x106   : > { %v3126_v24 = vrot.slane %v3124_v1, 5 }
 0x107   : > { %v3103_v43 = vor.u32 %v3102_v47, %v3099_v32 }
 0x108   : > { %9718 = vmatpush3.bf16.msra.mxu0 %v10557_v51  ;;  %v11829_v51 = vrot.slane %v3106_v55, 5  ;;  %v3127_v42 = vor.u32 %v3126_v24, %v3123_v28  ;;  %v10576_v28 = vld [vmem:[#allocation2 + $0x84] sm:$0xff]  }
 0x109   : > { %9719 = vmatprep.subr.bf16.mxu0 %v10558_v41  ;;  %v3104_v57 = vrot.slane %v3103_v43, 4 }
 0x10a   : > { %v3113_v61 = vor.u32 %v3112_v52, %v11829_v51  ;;  %v11871_v22 = vrot.slane %v3127_v42, 4 }
 0x10b   : > { %9700 = vmatmul.mubr.bf16.gmra.mrb[12].mxu0 %v8675_v20  ;;  %v10574_v20 = vld [vmem:[%s13828_s2 + $0x1f0] sm:$0xff]   ;;  %v3109_v55 = vsel %vm11133_vm2, %v3104_v57, %v11829_v51 }
 0x10c   : > { %9703 = vmatprep.mubr.bf16.mxu0 %v8676_v36  ;;  %9720 = vmatpush3.bf16.msra.mxu0 %v10558_v41  ;;  %v11842_v41 = vld [vmem:[#allocation2 + $0x40] sm:$0xf]  ;;  %v3133_v43 = vsel %vm11133_vm2, %v11871_v22, %v11844_v46 }
 0x10d   : > { %9721 = vmatprep.subr.bf16.mxu0 %v10559_v33  ;;  %v3178_v59 = vshll.u32 %v11842_v41, 16  ;;  %v3182_v36 = vshrl.u32 %v11842_v41, 16 }
 0x10f   : > { %v11864_v10 = vrot.slane %v3178_v59, 5 }
 0x110   : > { %9722 = vmatpush3.bf16.msra.mxu0 %v10559_v33  ;;  %v3150_v33 = vrot.slane %v3148_v34, 5 }
 0x111   : > { %9743 = vmatprep.subr.bf16.mxu0 %v10562_v30 }
 0x113   : > { %9704 = vmatmul.mubr.bf16.gmra.mrb[16].mxu0 %v8677_v19  ;;  %v3137_v19 = vor.u32 %v3136_v21, %v11844_v46  ;;  %v11895_v21 = vld [vmem:[#allocation2 + $0x58] sm:$0xf] }
 0x114   : > { %9723 = vmatprep.mubr.bf16.mxu0 %v10560_v12  ;;  %v11858_v12 = vrot.slane %v3154_v31, 5  ;;  %v3084_v31 = vld [vmem:[#allocation2 + $0x60] sm:$0xf]  ;;  %v3226_v42 = vshll.u32 %v11895_v21, 16 }
 0x115   : > { %v3138_v1 = vrot.slane %v3137_v19, 4  ;;  %v3244_v23 = vshll.u32 %v3084_v31, 16 }
 0x11b   : > { %9724 = vmatmul.mubr.bf16.vlgmr.msra.gmra.mrb[0].mxu0 %v10561_v4  ;;  %v3160_v4 = vrot.slane %v3158_v50, 4 }
 0x11c   : > { %9744 = vmatpush3.bf16.msra.mxu0 %v10562_v30  ;;  %9727 = vmatprep.mubr.bf16.mxu0 %v10564_v63  ;;  %v3114_v30 = vrot.slane %v3113_v61, 4  ;;  %v11860_v63 = vld [vmem:[#allocation2 + $0x38] sm:$0x1]  ;;  %v3143_v61 = vsel %vm11133_vm2, %v3138_v1, %v11873_v3 }
 0x11d   : > { %9745 = vmatprep.subr.bf16.mxu0 %v10563_v37  ;;  %v3161_v32 = vor.u32 %v3160_v4, %v11858_v12  ;;  %v3164_v47 = vshll.u32 %v11860_v63, 16 }
 0x11e   : > { %v3119_v2 = vsel %vm11133_vm2, %v3114_v30, %v3118_v15  ;;  %v11899_v15 = vld [vmem:[#allocation2 + $0x64] sm:$0xf] }
 0x11f   : > { %v8736_v24 = vcombine.low %v3109_v55, %v3119_v2  ;;  %v3162_v7 = vrot.slane %v3161_v32, 4  ;;  %v3166_v34 = vrot.slane %v3164_v47, 5  ;;  %v3254_v30 = vshrl.u32 %v11899_v15, 16  ;;  %v11924_v32 = vld [vmem:[#allocation2 + $0x68] sm:$0x1] }
 0x120   : > { %9746 = vmatpush3.bf16.msra.mxu0 %v10563_v37  ;;  %v11862_v37 = vld [vmem:[#allocation2 + $0x44] sm:$0x1]  ;;  %v11922_v55 = vrot.slane %v3226_v42, 5  ;;  %v8737_v2 = vcombine.low %v3133_v43, %v3143_v61  ;;  %v3090_v61 = vld [vmem:[#allocation2 + $0x78] sm:$0xf] }
 0x121   : > { %9747 = vmatprep.subr.bf16.mxu0 %v10566_v0  ;;  %v3188_v52 = vshll.u32 %v11862_v37, 16  ;;  %v3289_v42 = vshrl.u32 %v3090_v61, 16 }
 0x123   : > { %9728 = vmatmul.mubr.bf16.gmra.mrb[4].mxu0 %v10565_v5  ;;  %v3174_v5 = vrot.slane %v3172_v40, 5  ;;  %v3217_v40 = vshrl.u32 %v3081_v16, 16  ;;  %v3190_v59 = vrot.slane %v3188_v52, 5  ;;  %v3256_v52 = vrot.slane %v3254_v30, 4 }
 0x124   : > { %9748 = vmatpush3.bf16.msra.mxu0 %v10566_v0  ;;  %9731 = vmatprep.mubr.bf16.mxu0 %v10567_v14  ;;  %v3171_v0 = vrot.slane %v3169_v56, 4  ;;  %v3184_v14 = vrot.slane %v3182_v36, 4  ;;  %v11902_v36 = vld [vmem:[#allocation2 + $0x50] sm:$0x1] }
 0x125   : > { %9749 = vmatprep.subr.bf16.mxu0 %v10568_v29  ;;  %v3212_v4 = vshll.u32 %v11902_v36, 16 }
 0x126   : > { %v3175_v8 = vor.u32 %v3174_v5, %v3171_v0  ;;  %v3185_v13 = vor.u32 %v3184_v14, %v11864_v10  ;;  %v3219_v0 = vrot.slane %v3217_v40, 4 }
 0x128   : > { %9750 = vmatpush3.bf16.msra.mxu0 %v10568_v29  ;;  %v11866_v29 = vld [vmem:[#allocation2 + $0x4c] sm:$0xf]  ;;  %v3176_v46 = vrot.slane %v3175_v8, 4  ;;  %v3186_v35 = vrot.slane %v3185_v13, 4 }
 0x129   : > { %9751 = vmatprep.subr.bf16.mxu0 %v10570_v25  ;;  %v3202_v51 = vshll.u32 %v11866_v29, 16 }
 0x12a   : > { %v3181_v14 = vsel %vm11133_vm2, %v3176_v46, %v11864_v10 }
 0x12b   : > { %9732 = vmatmul.mubr.bf16.gmra.mrb[8].mxu0 %v10569_v27  ;;  %v3206_v27 = vshrl.u32 %v11866_v29, 16  ;;  %v11897_v50 = vrot.slane %v3202_v51, 5  ;;  %v3087_v51 = vld [vmem:[#allocation2 + $0x6c] sm:$0xf] }
 0x12c   : > { %9752 = vmatpush3.bf16.msra.mxu0 %v10570_v25  ;;  %9735 = vmatprep.mubr.bf16.mxu0 %v10571_v9  ;;  %v3151_v25 = vor.u32 %v3150_v33, %v3147_v60  ;;  %v3195_v9 = vrot.slane %v3193_v38, 4  ;;  %v3230_v60 = vshrl.u32 %v11895_v21, 16  ;;  %v3241_v33 = vshrl.u32 %v3084_v31, 16 }
 0x12d   : > { %9753 = vmatprep.subr.bf16.mxu0 %v10573_v26  ;;  %v3208_v56 = vrot.slane %v3206_v27, 4  ;;  %v3214_v27 = vrot.slane %v3212_v4, 5  ;;  %v3265_v43 = vshrl.u32 %v3087_v51, 16  ;;  %v3268_v31 = vshll.u32 %v3087_v51, 16 }
 0x12e   : > { %v3152_v11 = vrot.slane %v3151_v25, 4  ;;  %v3232_v22 = vrot.slane %v3230_v60, 4  ;;  %v3243_v3 = vrot.slane %v3241_v33, 4  ;;  %v3246_v25 = vrot.slane %v3244_v23, 5 }
 0x12f   : > { %v3209_v19 = vor.u32 %v3208_v56, %v11897_v50  ;;  %v3292_v60 = vshll.u32 %v3090_v61, 16  ;;  %v3270_v30 = vrot.slane %v3268_v31, 5 }
 0x130   : > { %9754 = vmatpush3.bf16.msra.mxu0 %v10573_v26  ;;  %v3198_v26 = vrot.slane %v3196_v18, 5  ;;  %v11920_v18 = vld [vmem:[#allocation2 + $0x5c] sm:$0x1] }
 0x131   : > { %9755 = vmatprep.subr.bf16.mxu0 %v10574_v20  ;;  %v3210_v10 = vrot.slane %v3209_v19, 4  ;;  %v3236_v13 = vshll.u32 %v11920_v18, 16 }
 0x132   : > { %v3199_v57 = vor.u32 %v3198_v26, %v3195_v9  ;;  %v11929_v9 = vld [vmem:[#allocation2 + $0x70] sm:$0xf]  ;;  %v10579_v26 = vld [vmem:[%s13828_s2 + $0x208] sm:$0xff]  }
 0x133   : > { %9736 = vmatmul.mubr.bf16.gmra.mrb[12].mxu0 %v10572_v17  ;;  %v3157_v17 = vsel %vm11133_vm2, %v3152_v11, %v11858_v12  ;;  %v3191_v12 = vsel %vm11133_vm2, %v3186_v35, %v3190_v59  ;;  %v3260_v11 = vshll.u32 %v11924_v32, 16  ;;  %v3274_v56 = vshll.u32 %v11929_v9, 16 }
 0x134   : > { %9739 = vmatprep.mubr.bf16.mxu0 %v10575_v62  ;;  %9756 = vmatpush3.bf16.msra.mxu0 %v10574_v20  ;;  %v3220_v20 = vshll.u32 %v3081_v16, 16  ;;  %v3167_v62 = vsel %vm11133_vm2, %v3162_v7, %v3166_v34  ;;  %v3200_v38 = vrot.slane %v3199_v57, 4  ;;  %v8739_v16 = vcombine.low %v3181_v14, %v3191_v12  ;;  %v11936_v7 = vld [vmem:[#allocation2 + $0x7c] sm:$0xf]  ;;  %v10580_v57 = vld [vmem:[%s13828_s2 + $0x210] sm:$0xff]  }
 0x135   : > { %9757 = vmatprep.subr.bf16.mxu0 %v10577_v53  ;;  %v8738_v1 = vcombine.low %v3157_v17, %v3167_v62  ;;  %v3278_v40 = vshrl.u32 %v11929_v9, 16  ;;  %v3215_v46 = vsel %vm11133_vm2, %v3210_v10, %v3214_v27  ;;  %v3238_v59 = vrot.slane %v3236_v13, 5  ;;  %v11957_v14 = vld [vmem:[#allocation2 + $0x74] sm:$0x1]  ;;  %v3093_v12 = vld [vmem:[#allocation2 + $0x84] sm:$0xf] }
 0x136   : > { %v3222_v5 = vrot.slane %v3220_v20, 5  ;;  %v3205_v20 = vsel %vm11133_vm2, %v3200_v38, %v11897_v50  ;;  %v3298_v33 = vshll.u32 %v11936_v7, 16  ;;  %v3262_v62 = vrot.slane %v3260_v11, 5  ;;  %v11969_v10 = vld [vmem:[#allocation2 + $0x80] sm:$0x1] }
 0x137   : > { %v3267_v50 = vrot.slane %v3265_v43, 4  ;;  %v11952_v19 = vrot.slane %v3274_v56, 5  ;;  %v3280_v4 = vrot.slane %v3278_v40, 4  ;;  %v3291_v38 = vrot.slane %v3289_v42, 4  ;;  %v10583_v42 = vld [vmem:[%s13828_s2 + $0x228] sm:$0xff]  }
 0x138   : > { %9758 = vmatpush3.bf16.msra.mxu0 %v10577_v53  ;;  %v3250_v53 = vshll.u32 %v11899_v15, 16  ;;  %v3223_v8 = vor.u32 %v3222_v5, %v3219_v0  ;;  %v8740_v0 = vcombine.low %v3205_v20, %v3215_v46  ;;  %v10581_v5 = vld [vmem:[%s13828_s2 + $0x218] sm:$0xff]   ;;  %v3308_v61 = vshll.u32 %v11969_v10, 16 }
 0x139   : > { %9779 = vmatprep.subr.bf16.mxu0 %v11885_v6  ;;  %v3281_v13 = vor.u32 %v3280_v4, %v11952_v19  ;;  %v10584_v4 = vld [vmem:[%s13828_s2 + $0x230] sm:$0xff]  }
 0x13a   : > { %v11926_v47 = vrot.slane %v3250_v53, 5  ;;  %v3224_v35 = vrot.slane %v3223_v8, 4  ;;  %v3271_v8 = vor.u32 %v3270_v30, %v3267_v50 }
 0x13b   : > { %9740 = vmatmul.mubr.bf16.gmra.mrb[16].mxu0 %v10576_v28  ;;  %v3233_v28 = vor.u32 %v3232_v22, %v11922_v55  ;;  %v3294_v22 = vrot.slane %v3292_v60, 5  ;;  %v3282_v40 = vrot.slane %v3281_v13, 4 }
 0x13c   : > { %9759 = vmatprep.mubr.bf16.mxu0 %v8736_v24  ;;  %v3247_v24 = vor.u32 %v3246_v25, %v3243_v3  ;;  %v3257_v34 = vor.u32 %v3256_v52, %v11926_v47  ;;  %v3300_v3 = vrot.slane %v3298_v33, 5  ;;  %v3272_v56 = vrot.slane %v3271_v8, 4 }
 0x13d   : > { %v3234_v23 = vrot.slane %v3233_v28, 4  ;;  %v3316_v28 = vshll.u32 %v3093_v12, 16 }
 0x13e   : > { %v3248_v17 = vrot.slane %v3247_v24, 4  ;;  %v3258_v53 = vrot.slane %v3257_v34, 4 }
 0x13f   : > { %v3239_v52 = vsel %vm11133_vm2, %v3234_v23, %v3238_v59  ;;  %v11984_v23 = vld [vmem:[#allocation2 + $0x8c] sm:$0x1] }
 0x140   : > { %v3253_v51 = vsel %vm11133_vm2, %v3248_v17, %v11926_v47  ;;  %v3263_v27 = vsel %vm11133_vm2, %v3258_v53, %v3262_v62  ;;  %v10582_v47 = vld [vmem:[%s13828_s2 + $0x220] sm:$0xff]   ;;  %v3277_v17 = vsel %vm11133_vm2, %v3272_v56, %v11952_v19  ;;  %v3332_v30 = vshll.u32 %v11984_v23, 16 }
 0x141   : > { %v8742_v31 = vcombine.low %v3253_v51, %v3263_v27  ;;  %v10585_v51 = vld [vmem:[%s13828_s2 + $0x238] sm:$0xff]   ;;  %v3633_v56 = vrot.slane %v11860_v63, 5  ;;  %v3578_v63 = vld [vmem:[#allocation2 + $0x48] sm:$0xe] }
 0x143   : > { %9760 = vmatmul.mubr.bf16.vlgmr.msra.gmra.mrb[0].mxu0 %v8737_v2  ;;  %v11959_v2 = vld [vmem:[#allocation2 + $0x88] sm:$0xf] }
 0x144   : > { %9780 = vmatpush3.bf16.msra.mxu0 %v11885_v6  ;;  %9763 = vmatprep.mubr.bf16.mxu0 %v8738_v1  ;;  %v3302_v6 = vshrl.u32 %v11936_v7, 16  ;;  %v3229_v1 = vsel %vm11133_vm2, %v3224_v35, %v11922_v55  ;;  %v3313_v55 = vshrl.u32 %v3093_v12, 16  ;;  %v3322_v24 = vshll.u32 %v11959_v2, 16  ;;  %v3574_v12 = vld [vmem:[#allocation2 + $0x18] sm:$0xe] }
 0x145   : > { %9781 = vmatprep.subr.bf16.mxu0 %v10579_v26  ;;  %v3326_v11 = vshrl.u32 %v11959_v2, 16  ;;  %v8741_v34 = vcombine.low %v3229_v1, %v3239_v52  ;;  %v3318_v35 = vrot.slane %v3316_v28, 5  ;;  %v3334_v52 = vrot.slane %v3332_v30, 5 }
 0x146   : > { %v3304_v25 = vrot.slane %v3302_v6, 4  ;;  %v3315_v46 = vrot.slane %v3313_v55, 4  ;;  %v3324_v59 = vrot.slane %v3322_v24, 5  ;;  %v3310_v6 = vrot.slane %v3308_v61, 5  ;;  %v3575_v24 = vld [vmem:[#allocation2 + $0x24] sm:$0xe] }
 0x147   : > { %v8754_v27 = vrot.slane %v3574_v12, 9 }
 0x148   : > { %9782 = vmatpush3.bf16.msra.mxu0 %v10579_v26  ;;  %v3284_v26 = vshll.u32 %v11957_v14, 16  ;;  %v3305_v43 = vor.u32 %v3304_v25, %v3300_v3  ;;  %v3319_v50 = vor.u32 %v3318_v35, %v3315_v46  ;;  %v3577_v35 = vld [vmem:[#allocation2 + $0x3c] sm:$0xe] }
 0x149   : > { %9783 = vmatprep.subr.bf16.mxu0 %v10580_v57 }
 0x14a   : > { %v3286_v20 = vrot.slane %v3284_v26, 5  ;;  %v3306_v33 = vrot.slane %v3305_v43, 4  ;;  %v3320_v25 = vrot.slane %v3319_v50, 4  ;;  %v3623_v26 = vrot.slane %v11822_v48, 5 }
 0x14b   : > { %9764 = vmatmul.mubr.bf16.gmra.mrb[4].mxu0 %v8739_v16  ;;  %v3295_v16 = vor.u32 %v3294_v22, %v3291_v38  ;;  %v8755_v43 = vrot.slane %v3575_v24, 9 }
 0x14c   : > { %9784 = vmatpush3.bf16.msra.mxu0 %v10580_v57  ;;  %9767 = vmatprep.mubr.bf16.mxu0 %v8740_v0  ;;  %v3328_v57 = vrot.slane %v3326_v11, 4  ;;  %v3287_v62 = vsel %vm11133_vm2, %v3282_v40, %v3286_v20  ;;  %v3311_v19 = vsel %vm11133_vm2, %v3306_v33, %v3310_v6  ;;  %v3576_v11 = vld [vmem:[#allocation2 + $0x30] sm:$0xe]  ;;  %v3625_v61 = vrot.slane %v3623_v26, 4 }
 0x14d   : > { %9785 = vmatprep.subr.bf16.mxu0 %v10581_v5  ;;  %v3296_v60 = vrot.slane %v3295_v16, 4  ;;  %v8743_v38 = vcombine.low %v3277_v17, %v3287_v62  ;;  %v3624_v40 = vsel %vm11290_vm5, %v8755_v43, %v3623_v26  ;;  %v3637_v20 = vrot.slane %v11842_v41, 5  ;;  %v3583_v43 = vld [vmem:[#allocation2 + $0x84] sm:$0xe] }
 0x14e   : > { %v3329_v53 = vor.u32 %v3328_v57, %v3324_v59  ;;  %v3640_v6 = vrot.slane %v11862_v37, 5  ;;  %v8758_v17 = vrot.slane %v3578_v63, 9  ;;  %v3647_v41 = vrot.slane %v11902_v36, 5  ;;  %v3580_v36 = vld [vmem:[#allocation2 + $0x60] sm:$0xe] }
 0x14f   : > { %v3301_v0 = vsel %vm11133_vm2, %v3296_v60, %v3300_v3  ;;  %v3619_v3 = vrot.slane %v11827_v44, 5  ;;  %v3630_v44 = vrot.slane %v11833_v39, 5  ;;  %v8757_v60 = vrot.slane %v3577_v35, 9 }
 0x150   : > { %9786 = vmatpush3.bf16.msra.mxu0 %v10581_v5  ;;  %v3616_v5 = vrot.slane %v11815_v58, 5  ;;  %v8744_v22 = vcombine.low %v3301_v0, %v3311_v19  ;;  %v3330_v1 = vrot.slane %v3329_v53, 4  ;;  %v3325_v58 = vsel %vm11133_vm2, %v3320_v25, %v3324_v59 }
 0x151   : > { %9787 = vmatprep.subr.bf16.mxu0 %v10582_v47  ;;  %v3632_v48 = vrot.slane %v3630_v44, 4  ;;  %v3644_v59 = vrot.slane %v11866_v29, 5  ;;  %v3639_v33 = vrot.slane %v3637_v20, 4  ;;  %v3638_v50 = vsel %vm11290_vm5, %v8757_v60, %v3637_v20  ;;  %v4302_v20 = vld [vmem:[#allocation3 + $0xc] sm:$0x1] }
 0x152   : > { %v3618_v8 = vrot.slane %v3616_v5, 4  ;;  %v3335_v13 = vsel %vm11133_vm2, %v3330_v1, %v3334_v52  ;;  %v3617_v55 = vsel %vm11290_vm5, %v8754_v27, %v3616_v5  ;;  %v3651_v29 = vrot.slane %v11895_v21, 5  ;;  %v4308_v60 = vld [vmem:[#allocation3 + $0x24] sm:$0x1] }
 0x153   : > { %9768 = vmatmul.mubr.bf16.gmra.mrb[8].mxu0 %v8741_v34  ;;  %v3626_v34 = vrot.slane %v11840_v49, 5  ;;  %v3634_v49 = vsel %vm11290_vm5, %v3632_v48, %v3633_v56  ;;  %v3646_v62 = vrot.slane %v3644_v59, 4  ;;  %v3641_v53 = vsel %vm11290_vm5, %v3639_v33, %v3640_v6  ;;  %v4305_v6 = vld [vmem:[#allocation3 + $0x18] sm:$0x1] }
 0x154   : > { %9788 = vmatpush3.bf16.msra.mxu0 %v10582_v47  ;;  %9771 = vmatprep.mubr.bf16.mxu0 %v8742_v31  ;;  %v3620_v28 = vsel %vm11290_vm5, %v3618_v8, %v3619_v3  ;;  %v8745_v47 = vcombine.low %v3325_v58, %v3335_v13  ;;  %v8756_v31 = vrot.slane %v3576_v11, 9  ;;  %v3645_v30 = vsel %vm11290_vm5, %v8758_v17, %v3644_v59  ;;  %v3581_v8 = vld [vmem:[#allocation2 + $0x6c] sm:$0xe]  ;;  %v4334_v59 = vld [vmem:[#allocation3 + $0x14] sm:$0x1] }
 0x155   : > { %9789 = vmatprep.subr.bf16.mxu0 %v10583_v42  ;;  %v8780_v16 = vcombine.low %v3617_v55, %v3620_v28  ;;  %v3627_v39 = vsel %vm11290_vm5, %v3625_v61, %v3626_v34  ;;  %v3648_v37 = vsel %vm11290_vm5, %v3646_v62, %v3647_v41  ;;  %v3658_v0 = vrot.slane %v11899_v15, 5  ;;  %v4340_v62 = vld [vmem:[#allocation3 + $0x2c] sm:$0x1] }
 0x156   : > { %v3631_v46 = vsel %vm11290_vm5, %v8756_v31, %v3630_v44  ;;  %v8781_v57 = vcombine.low %v3624_v40, %v3627_v39  ;;  %v8783_v19 = vcombine.low %v3638_v50, %v3641_v53  ;;  %v8784_v5 = vcombine.low %v3645_v30, %v3648_v37  ;;  %v4337_v50 = vld [vmem:[#allocation3 + $0x20] sm:$0x1] }
 0x157   : > { %v8760_v25 = vrot.slane %v3580_v36, 9  ;;  %v3660_v1 = vrot.slane %v3658_v0, 4  ;;  %v3661_v21 = vrot.slane %v11924_v32, 5  ;;  %v3665_v15 = vrot.slane %v11929_v9, 5  ;;  %v3582_v32 = vld [vmem:[#allocation2 + $0x78] sm:$0xe] }
 0x158   : > { %9790 = vmatpush3.bf16.msra.mxu0 %v10583_v42  ;;  %v8782_v42 = vcombine.low %v3631_v46, %v3634_v49  ;;  %v3672_v3 = vrot.slane %v11936_v7, 5  ;;  %v8761_v26 = vrot.slane %v3581_v8, 9  ;;  %v3668_v28 = vrot.slane %v11957_v14, 5  ;;  %v4299_v46 = vld [vmem:[#allocation3] sm:$0x1] }
 0x159   : > { %9791 = vmatprep.subr.bf16.mxu0 %v10584_v4  ;;  %v3659_v27 = vsel %vm11290_vm5, %v8760_v25, %v3658_v0  ;;  %v3667_v55 = vrot.slane %v3665_v15, 4  ;;  %v8762_v24 = vrot.slane %v3582_v32, 9  ;;  %v3675_v9 = vrot.slane %v11969_v10, 5  ;;  %v12117_v8 = vld [vmem:[%s13829_s3] ss:$0 sm:$0xff] }
 0x15a   : > { %v3674_v44 = vrot.slane %v3672_v3, 4  ;;  %v3666_v11 = vsel %vm11290_vm5, %v8761_v26, %v3665_v15  ;;  %v3679_v7 = vrot.slane %v11959_v2, 5  ;;  %v8763_v10 = vrot.slane %v3583_v43, 9  ;;  %v4352_v15 = vld [vmem:[#allocation3 + $0x5c] sm:$0x1] }
 0x15b   : > { %9772 = vmatmul.mubr.bf16.gmra.mrb[12].mxu0 %v8743_v38  ;;  %v3653_v38 = vrot.slane %v3651_v29, 4  ;;  %v3682_v48 = vrot.slane %v11984_v23, 5  ;;  %v4303_v23 = vsel %vm12067_vm8, 0, %v4302_v20  ;;  %v4300_v35 = vsel %vm12067_vm8, 0, %v4299_v46  ;;  %v4323_v46 = vld [vmem:[#allocation3 + $0x60] sm:$0x1] }
 0x15c   : > { %9775 = vmatprep.mubr.bf16.mxu0 %v8744_v22  ;;  %9792 = vmatpush3.bf16.msra.mxu0 %v10584_v4  ;;  %v3579_v4 = vld [vmem:[#allocation2 + $0x54] sm:$0xe]  ;;  %v3654_v22 = vrot.slane %v11920_v18, 5  ;;  %v3662_v18 = vsel %vm11290_vm5, %v3660_v1, %v3661_v21  ;;  %v3676_v14 = vsel %vm11290_vm5, %v3674_v44, %v3675_v9  ;;  %v3681_v31 = vrot.slane %v3679_v7, 4  ;;  %4304 = vst [vmem:[#allocation3 + $0xc] sm:$0x1] %v4303_v23 }
 0x15d   : > { %9793 = vmatprep.subr.bf16.mxu0 %v10585_v51  ;;  %v8759_v12 = vrot.slane %v3579_v4, 9  ;;  %v8786_v13 = vcombine.low %v3659_v27, %v3662_v18  ;;  %v3680_v56 = vsel %vm11290_vm5, %v8763_v10, %v3679_v7  ;;  %4301 = vst [vmem:[#allocation3] sm:$0x1] %v4300_v35  ;;  %v4335_v63 = vsel %vm12074_vm10, 0, %v4334_v59  ;;  %v4320_v1 = vld [vmem:[#allocation3 + $0x54] sm:$0x1] }
 0x15e   : > { %v3683_v2 = vsel %vm11290_vm5, %v3681_v31, %v3682_v48  ;;  %4336 = vst [vmem:[#allocation3 + $0x14] sm:$0x1] %v4335_v63  ;;  %v4309_v33 = vsel %vm12067_vm8, 0, %v4308_v60  ;;  %v4306_v17 = vsel %vm12067_vm8, 0, %v4305_v6  ;;  %v4341_v41 = vsel %vm12074_vm10, 0, %v4340_v62 }
 0x15f   : > { %v3652_v52 = vsel %vm11290_vm5, %v8759_v12, %v3651_v29  ;;  %v8789_v40 = vcombine.low %v3680_v56, %v3683_v2  ;;  %4310 = vst [vmem:[#allocation3 + $0x24] sm:$0x1] %v4309_v33  ;;  %4307 = vst [vmem:[#allocation3 + $0x18] sm:$0x1] %v4306_v17  ;;  %v4338_v53 = vsel %vm12074_vm10, 0, %v4337_v50  ;;  %v4321_v21 = vsel %vm12067_vm8, 0, %v4320_v1 }
 0x160   : > { %9794 = vmatpush3.bf16.msra.mxu0 %v10585_v51  ;;  %v3655_v51 = vsel %vm11290_vm5, %v3653_v38, %v3654_v22  ;;  %4342 = vst [vmem:[#allocation3 + $0x2c] sm:$0x1] %v4341_v41  ;;  %4339 = vst [vmem:[#allocation3 + $0x20] sm:$0x1] %v4338_v53  ;;  %v4314_v29 = vld [vmem:[#allocation3 + $0x3c] sm:$0x1] }
 0x161   : > { %v8785_v58 = vcombine.low %v3652_v52, %v3655_v51  ;;  %v4315_v37 = vsel %vm12067_vm8, 0, %v4314_v29  ;;  %v4346_v12 = vld [vmem:[#allocation3 + $0x44] sm:$0x1]  ;;  %v4343_v22 = vld [vmem:[#allocation3 + $0x38] sm:$0x1]  ;;  %v4353_v27 = vsel %vm12074_vm10, 0, %v4352_v15 }
 0x162   : > { %4316 = vst [vmem:[#allocation3 + $0x3c] sm:$0x1] %v4315_v37  ;;  %v4347_v38 = vsel %vm12074_vm10, 0, %v4346_v12  ;;  %v4344_v25 = vsel %vm12074_vm10, 0, %v4343_v22  ;;  %4322 = vst [vmem:[#allocation3 + $0x54] sm:$0x1] %v4321_v21 }
 0x163   : > { %9776 = vmatmul.mubr.bf16.gmra.mrb[16].mxu0 %v8745_v47  ;;  %v3669_v47 = vsel %vm11290_vm5, %v3667_v55, %v3668_v28  ;;  %4348 = vst [vmem:[#allocation3 + $0x44] sm:$0x1] %v4347_v38  ;;  %4345 = vst [vmem:[#allocation3 + $0x38] sm:$0x1] %v4344_v25  ;;  %v4317_v52 = vld [vmem:[#allocation3 + $0x48] sm:$0x1] }
 0x164   : > { %9795 = vmatprep.mubr.bf16.mxu0 %v8780_v16  ;;  %v3673_v16 = vsel %vm11290_vm5, %v8762_v24, %v3672_v3  ;;  %v8787_v61 = vcombine.low %v3666_v11, %v3669_v47  ;;  %v4318_v51 = vsel %vm12067_vm8, 0, %v4317_v52  ;;  %4354 = vst [vmem:[#allocation3 + $0x5c] sm:$0x1] %v4353_v27  ;;  %v4349_v18 = vld [vmem:[#allocation3 + $0x50] sm:$0x1] }
 0x165   : > { %v8788_v34 = vcombine.low %v3673_v16, %v3676_v14  ;;  %4319 = vst [vmem:[#allocation3 + $0x48] sm:$0x1] %v4318_v51  ;;  %v4350_v3 = vsel %vm12074_vm10, 0, %v4349_v18  ;;  %v4326_v7 = vld [vmem:[#allocation3 + $0x6c] sm:$0x1] }
 0x166   : > { %4351 = vst [vmem:[#allocation3 + $0x50] sm:$0x1] %v4350_v3  ;;  %v4327_v43 = vsel %vm12067_vm8, 0, %v4326_v7 }
 0x167   : > { %4328 = vst [vmem:[#allocation3 + $0x6c] sm:$0x1] %v4327_v43 }
 0x16b   : > { %9796 = vmatmul.mubr.bf16.vlgmr.msra.gmra.mrb[0].mxu0 %v8781_v57  ;;  %v4331_v57 = vld [vmem:[#allocation3 + $0x8] sm:$0x1] }
 0x16c   : > { %9799 = vmatprep.mubr.bf16.mxu0 %v8782_v42  ;;  %v4332_v42 = vsel %vm12074_vm10, 0, %v4331_v57  ;;  %v4324_v57 = vsel %vm12067_vm8, 0, %v4323_v46 }
 0x16d   : > { %4333 = vst [vmem:[#allocation3 + $0x8] sm:$0x1] %v4332_v42  ;;  %4325 = vst [vmem:[#allocation3 + $0x60] sm:$0x1] %v4324_v57 }
 0x173   : > { %9800 = vmatmul.mubr.bf16.gmra.mrb[4].mxu0 %v8783_v19  ;;  %v4311_v19 = vld [vmem:[#allocation3 + $0x30] sm:$0x1] }
 0x174   : > { %9803 = vmatprep.mubr.bf16.mxu0 %v8784_v5  ;;  %v4312_v5 = vsel %vm12067_vm8, 0, %v4311_v19 }
 0x175   : > { %4313 = vst [vmem:[#allocation3 + $0x30] sm:$0x1] %v4312_v5 }
 0x17b   : > { %9804 = vmatmul.mubr.bf16.gmra.mrb[8].mxu0 %v8785_v58  ;;  %v12124_v58 = vld [vmem:[%s13830_s4] ss:$0 sm:$0xff] }
 0x17c   : > { %9807 = vmatprep.mubr.bf16.mxu0 %v8786_v13 }
 0x183   : > { %9808 = vmatmul.mubr.bf16.gmra.mrb[12].mxu0 %v8787_v61 }
 0x184   : > { %9811 = vmatprep.mubr.bf16.mxu0 %v8788_v34 }
 0x18b   : > { %9812 = vmatmul.mubr.bf16.gmra.mrb[16].mxu0 %v8789_v40 }
 0x1d8   : > { %v12092_v30 = vpop.f32.mrb[0].mxu1 }
 0x1d9   : > { %v12096_v4 = vpop.f32.mrb[1].mxu1 }
 0x1da   : > { %v12098_v0 = vpop.f32.mrb[2].mxu1 }
 0x1db   : > { %v12100_v36 = vpop.f32.mrb[3].mxu1 }
 0x23e   : > { %v9797_v32 = vpop.f32.mrb[0].mxu0 }
 0x23f   : > { %v3931_v13 = vmul.f32 %v9797_v32, %v12117_v8  ;;  %v3823_v26 = vpop.f32.mrb[1].mxu0 }
 0x240   : > { %v3929_v55 = vmul.f32 %v12117_v8, %v3823_v26  ;;  %v9798_v28 = vpop.f32.mrb[2].mxu0 }
 0x241   : > { %v12129_v24 = vadd.f32 %v12124_v58, %v3931_v13  ;;  %v3932_v44 = vmul.f32 %v9798_v28, %v12117_v8  ;;  %v3826_v9 = vpop.f32.mrb[3].mxu0 }
 0x242   : > { %v12133_v11 = vadd.f32 %v12124_v58, %v3929_v55  ;;  %v3930_v47 = vmul.f32 %v12117_v8, %v3826_v9 }
 0x243   : > { %v3998_v16 = vmin.f32 %v12129_v24, 20.0  ;;  %v12138_v14 = vadd.f32 %v12124_v58, %v3932_v44  ;;  %vm3978_vm11 = vcmp.gt.f32.partialorder %v12129_v24, 20.0 }
 0x244   : > { %v3996_v61 = vmin.f32 %v12133_v11, 20.0  ;;  %v12144_v34 = vadd.f32 %v12124_v58, %v3930_v47  ;;  %vm3976_vm14 = vcmp.gt.f32.partialorder %v12133_v11, 20.0 }
 0x245   : > { %v4020_v10 = vmul.f32 1.442695, %v3998_v16  ;;  %v3999_v31 = vmin.f32 %v12138_v14, 20.0  ;;  %vm3979_vm15 = vcmp.gt.f32.partialorder %v12138_v14, 20.0 }
 0x246   : > { %v4016_v48 = vmul.f32 1.442695, %v3996_v61  ;;  %v3997_v56 = vmin.f32 %v12144_v34, 20.0  ;;  %v9801_v2 = vpop.f32.mrb[4].mxu0  ;;  %vm3977_vm1 = vcmp.gt.f32.partialorder %v12144_v34, 20.0 }
 0x247   : > { %10586 = vpow2.f32 %v4020_v10  ;;  %v4022_v40 = vmul.f32 1.442695, %v3999_v31  ;;  %v3935_v20 = vmul.f32 %v9801_v2, %v12117_v8  ;;  %v3839_v23 = vpop.f32.mrb[5].mxu0 }
 0x248   : > { %10588 = vpow2.f32 %v4016_v48  ;;  %v4018_v35 = vmul.f32 1.442695, %v3997_v56  ;;  %v3933_v59 = vmul.f32 %v12117_v8, %v3839_v23  ;;  %v9802_v63 = vpop.f32.mrb[6].mxu0 }
 0x249   : > { %10590 = vpow2.f32 %v4022_v40  ;;  %v12153_v42 = vadd.f32 %v12124_v58, %v3935_v20  ;;  %v3936_v60 = vmul.f32 %v9802_v63, %v12117_v8  ;;  %v3842_v33 = vpop.f32.mrb[7].mxu0 }
 0x24a   : > { %10592 = vpow2.f32 %v4018_v35  ;;  %v12157_v6 = vadd.f32 %v12124_v58, %v3933_v59  ;;  %v3934_v17 = vmul.f32 %v12117_v8, %v3842_v33 }
 0x24b   : > { %v4002_v62 = vmin.f32 %v12153_v42, 20.0  ;;  %v12162_v41 = vadd.f32 %v12124_v58, %v3936_v60  ;;  %vm3982_vm6 = vcmp.gt.f32.partialorder %v12153_v42, 20.0 }
 0x24c   : > { %v4000_v50 = vmin.f32 %v12157_v6, 20.0  ;;  %v12166_v53 = vadd.f32 %v12124_v58, %v3934_v17 }
 0x24d   : > { %v4028_v29 = vmul.f32 1.442695, %v4002_v62  ;;  %v4003_v37 = vmin.f32 %v12162_v41, 20.0 }
 0x24e   : > { %v4024_v19 = vmul.f32 1.442695, %v4000_v50  ;;  %v4001_v5 = vmin.f32 %v12166_v53, 20.0  ;;  %v9805_v12 = vpop.f32.mrb[8].mxu0 }
 0x24f   : > { %10594 = vpow2.f32 %v4028_v29  ;;  %v4030_v38 = vmul.f32 1.442695, %v4003_v37  ;;  %v3855_v22 = vpop.f32.mrb[9].mxu0  ;;  %v3939_v18 = vmul.f32 %v9805_v12, %v12117_v8 }
 0x250   : > { %10596 = vpow2.f32 %v4024_v19  ;;  %v4026_v25 = vmul.f32 1.442695, %v4001_v5  ;;  %v9806_v1 = vpop.f32.mrb[10].mxu0  ;;  %v3937_v56 = vmul.f32 %v12117_v8, %v3855_v22 }
 0x251   : > { %v10587_v21 = vpop.eup %10586  ;;  %10598 = vpow2.f32 %v4030_v38  ;;  %v12170_v52 = vpop.f32.mrb[11].mxu0  ;;  %v12174_v43 = vadd.f32 %v12124_v58, %v3939_v18  ;;  %v3940_v2 = vmul.f32 %v9806_v1, %v12117_v8 }
 0x252   : > { %v10589_v51 = vpop.eup %10588  ;;  %v4074_v15 = vadd.f32 1.0, %v10587_v21  ;;  %v4077_v27 = vmul.f32 -0.5, %v10587_v21  ;;  %10600 = vpow2.f32 %v4026_v25  ;;  %v4080_v55 = vand.u32 2147483647, %v10587_v21 }
 0x253   : > { %v10591_v3 = vpop.eup %10590  ;;  %v4056_v32 = vadd.f32 1.0, %v10589_v51  ;;  %v4059_v13 = vmul.f32 -0.5, %v10589_v51  ;;  %v4062_v9 = vand.u32 2147483647, %v10589_v51  ;;  %v4006_v62 = vmin.f32 %v12174_v43, 20.0 }
 0x254   : > { %v10593_v26 = vpop.eup %10592  ;;  %10602 = vlog2.f32 %v4074_v15  ;;  %v4083_v28 = vadd.f32 1.0, %v10591_v3  ;;  %v4078_v44 = vadd.f32 1.0, %v4077_v27  ;;  %v4086_v47 = vmul.f32 -0.5, %v10591_v3 }
 0x255   : > { %10604 = vlog2.f32 %v4056_v32  ;;  %v4060_v7 = vadd.f32 1.0, %v4059_v13  ;;  %v4065_v16 = vadd.f32 1.0, %v10593_v26  ;;  %v4089_v10 = vand.u32 2147483647, %v10591_v3 }
 0x256   : > { %10606 = vlog2.f32 %v4083_v28  ;;  %v12176_v61 = vpop.f32.mrb[12].mxu0  ;;  %v4068_v31 = vmul.f32 -0.5, %v10593_v26  ;;  %v4079_v23 = vmul.f32 %v10587_v21, %v4078_v44  ;;  %vm12187_vm12 = vcmp.lt.f32.partialorder %v4080_v55, 0.0004427343 }
 0x257   : > { %v12178_v48 = vpop.f32.mrb[13].mxu0  ;;  %10608 = vlog2.f32 %v4065_v16  ;;  %vm12191_vm13 = vcmp.lt.f32.partialorder %v4062_v9, 0.0004427343  ;;  %v4087_v59 = vadd.f32 1.0, %v4086_v47  ;;  %v4061_v60 = vmul.f32 %v10589_v51, %v4060_v7 }
 0x258   : > { %v12182_v40 = vpop.f32.mrb[14].mxu0  ;;  %v4071_v33 = vand.u32 2147483647, %v10593_v26  ;;  %vm12205_vm0 = vcmp.lt.f32.partialorder %v4089_v10, 0.0004427343  ;;  %v4069_v37 = vadd.f32 1.0, %v4068_v31  ;;  %v12219_v51 = vadd.f32 %v12124_v58, %v3937_v56 }
 0x259   : > { %v12184_v20 = vpop.eup %10594  ;;  %v12195_v63 = vpop.f32.mrb[15].mxu0  ;;  %v4088_v1 = vmul.f32 %v10591_v3, %v4087_v59  ;;  %v4036_v32 = vmul.f32 1.442695, %v4006_v62  ;;  %v12229_v9 = vadd.f32 %v12124_v58, %v3940_v2 }
 0x25a   : > { %v12197_v57 = vpop.eup %10596  ;;  %v4110_v17 = vadd.f32 1.0, %v12184_v20  ;;  %v4113_v19 = vmul.f32 -0.5, %v12184_v20  ;;  %v4116_v38 = vand.u32 2147483647, %v12184_v20  ;;  %vm12221_vm3 = vcmp.lt.f32.partialorder %v4071_v33, 0.0004427343 }
 0x25b   : > { %v12202_v50 = vpop.eup %10598  ;;  %v4092_v5 = vadd.f32 1.0, %v12197_v57  ;;  %v4095_v22 = vmul.f32 -0.5, %v12197_v57  ;;  %v4098_v21 = vand.u32 2147483647, %v12197_v57  ;;  %v4070_v28 = vmul.f32 %v10593_v26, %v4069_v37 }
 0x25c   : > { %v12211_v12 = vpop.eup %10600  ;;  %10610 = vlog2.f32 %v4110_v17  ;;  %v4119_v25 = vadd.f32 1.0, %v12202_v50  ;;  %v4114_v44 = vadd.f32 1.0, %v4113_v19  ;;  %vm12233_vm4 = vcmp.lt.f32.partialorder %v4116_v38, 0.0004427343 }
 0x25d   : > { %10612 = vlog2.f32 %v4092_v5  ;;  %v4101_v18 = vadd.f32 1.0, %v12211_v12  ;;  %v4096_v31 = vadd.f32 1.0, %v4095_v22  ;;  %v4122_v56 = vmul.f32 -0.5, %v12202_v50 }
 0x25e   : > { %v10603_v15 = vpop.eup %10602  ;;  %10614 = vlog2.f32 %v4119_v25  ;;  %v12226_v13 = vpop.f32.mrb[16].mxu0  ;;  %vm12241_vm7 = vcmp.lt.f32.partialorder %v4098_v21, 0.0004427343  ;;  %v4104_v33 = vmul.f32 -0.5, %v12211_v12  ;;  %v4004_v29 = vmin.f32 %v12219_v51, 20.0 }
 0x25f   : > { %v10605_v3 = vpop.eup %10604  ;;  %v4076_v55 = vmul.f32 0.6931472, %v10603_v15  ;;  %v12231_v47 = vpop.f32.mrb[17].mxu0  ;;  %10616 = vlog2.f32 %v4101_v18  ;;  %v4123_v25 = vadd.f32 1.0, %v4122_v56 }
 0x260   : > { %v10607_v7 = vpop.eup %10606  ;;  %v4058_v16 = vmul.f32 0.6931472, %v10605_v3  ;;  %v12246_v17 = vpop.f32.mrb[18].mxu0  ;;  %10618 = vpow2.f32 %v4036_v32  ;;  %v4105_v15 = vadd.f32 1.0, %v4104_v33  ;;  %v4097_v32 = vmul.f32 %v12197_v57, %v4096_v31 }
 0x261   : > { %v4082_v59 = vsel %vm12187_vm12, %v4079_v23, %v4076_v55  ;;  %v4085_v26 = vmul.f32 0.6931472, %v10607_v7  ;;  %v10609_v62 = vpop.eup %10608  ;;  %vm3980_vm12 = vcmp.gt.f32.partialorder %v12157_v6, 20.0  ;;  %v4125_v23 = vand.u32 2147483647, %v12202_v50  ;;  %v12255_v19 = vpop.f32.mrb[19].mxu0 }
 0x262   : > { %v4238_v37 = vsel %vm3978_vm11, %v12129_v24, %v4082_v59  ;;  %v4064_v46 = vsel %vm12191_vm13, %v4061_v60, %v4058_v16  ;;  %v4067_v22 = vmul.f32 0.6931472, %v10609_v62  ;;  %vm3983_vm11 = vcmp.gt.f32.partialorder %v12162_v41, 20.0 }
 0x263   : > { %10620 = vtanh.f32 %v4238_v37  ;;  %v4236_v5 = vsel %vm3976_vm14, %v12133_v11, %v4064_v46  ;;  %v4091_v38 = vsel %vm12205_vm0, %v4088_v1, %v4085_v26  ;;  %v4115_v60 = vmul.f32 %v12184_v20, %v4114_v44 }
 0x264   : > { %10622 = vtanh.f32 %v4236_v5  ;;  %v4239_v35 = vsel %vm3979_vm15, %v12138_v14, %v4091_v38  ;;  %v4073_v21 = vsel %vm12221_vm3, %v4070_v28, %v4067_v22  ;;  %vm3981_vm13 = vcmp.gt.f32.partialorder %v12166_v53, 20.0 }
 0x265   : > { %10624 = vtanh.f32 %v4239_v35  ;;  %v4237_v18 = vsel %vm3977_vm1, %v12144_v34, %v4073_v21  ;;  %v3938_v20 = vmul.f32 %v12117_v8, %v12170_v52  ;;  %v3943_v3 = vmul.f32 %v12176_v61, %v12117_v8 }
 0x266   : > { %v10611_v1 = vpop.eup %10610  ;;  %10626 = vtanh.f32 %v4237_v18  ;;  %vm12279_vm14 = vcmp.lt.f32.partialorder %v4125_v23, 0.0004427343  ;;  %v4032_v44 = vmul.f32 1.442695, %v4004_v29  ;;  %v4124_v56 = vmul.f32 %v12202_v50, %v4123_v25 }
 0x267   : > { %v10613_v27 = vpop.eup %10612  ;;  %v4112_v55 = vmul.f32 0.6931472, %v10611_v1  ;;  %v4107_v57 = vand.u32 2147483647, %v12211_v12  ;;  %v12286_v31 = vadd.f32 %v12124_v58, %v3938_v20  ;;  %v4106_v59 = vmul.f32 %v12211_v12, %v4105_v15 }
 0x268   : > { %v10615_v7 = vpop.eup %10614  ;;  %v4094_v16 = vmul.f32 0.6931472, %v10613_v27  ;;  %10628 = vpow2.f32 %v4032_v44  ;;  %vm4623_vm15 = vcmask 1043456   ;;  %v4007_v62 = vmin.f32 %v12229_v9, 20.0 }
 0x269   : > { %v4118_v52 = vsel %vm12233_vm4, %v4115_v60, %v4112_v55  ;;  %v4121_v61 = vmul.f32 0.6931472, %v10615_v7  ;;  %v10617_v26 = vpop.eup %10616  ;;  %v12298_v37 = vadd.f32 %v12124_v58, %v3943_v3  ;;  %v4005_v5 = vmin.f32 %v12286_v31, 20.0  ;;  %vm12327_vm1 = vmand %vm4623_vm15, %vm4329_vm9 }
 0x26a   : > { %v4242_v33 = vsel %vm3982_vm6, %v12153_v42, %v4118_v52  ;;  %v4100_v50 = vsel %vm12241_vm7, %v4097_v32, %v4094_v16  ;;  %v4103_v46 = vmul.f32 0.6931472, %v10617_v26  ;;  %v10619_v23 = vpop.eup %10618  ;;  %vm4108_vm7 = vcmp.lt.f32.partialorder %v4107_v57, 0.0004427343 }
 0x26b   : > { %10630 = vtanh.f32 %v4242_v33  ;;  %v4240_v12 = vsel %vm3980_vm12, %v12157_v6, %v4100_v50  ;;  %v4127_v10 = vsel %vm12279_vm14, %v4124_v56, %v4121_v61  ;;  %v4146_v35 = vadd.f32 1.0, %v10619_v23 }
 0x26c   : > { %10632 = vtanh.f32 %v4240_v12  ;;  %v4243_v2 = vsel %vm3983_vm11, %v12162_v41, %v4127_v10  ;;  %v4109_v22 = vsel %vm4108_vm7, %v4106_v59, %v4103_v46  ;;  %v4149_v60 = vmul.f32 -0.5, %v10619_v23 }
 0x26d   : > { %v10621_v38 = vpop.eup %10620  ;;  %10634 = vtanh.f32 %v4243_v2  ;;  %v4241_v15 = vsel %vm3981_vm13, %v12166_v53, %v4109_v22  ;;  %v4038_v29 = vmul.f32 1.442695, %v4007_v62  ;;  %v4034_v1 = vmul.f32 1.442695, %v4005_v5 }
 0x26e   : > { %v10623_v25 = vpop.eup %10622  ;;  %v4278_v21 = vmul.f32 %v10621_v38, %v12129_v24  ;;  %10636 = vtanh.f32 %v4241_v15  ;;  %v4150_v20 = vadd.f32 1.0, %v4149_v60  ;;  %v4010_v3 = vmin.f32 %v12298_v37, 20.0 }
 0x26f   : > { %v10625_v18 = vpop.eup %10624  ;;  %v4276_v32 = vmul.f32 %v10623_v25, %v12133_v11  ;;  %vm4421_vm0 = vsmask.f32 4368  ;;  %10638 = vlog2.f32 %v4146_v35  ;;  %v4152_v44 = vand.u32 2147483647, %v10619_v23  ;;  %v4625_v35 = vld [vmem:[#allocation3] sm:$0xf] }
 0x270   : > { %v9149_v27 = vpack.c.bf16 %v4278_v21, %v4278_v21  ;;  %v4279_v55 = vmul.f32 %v10625_v18, %v12138_v14  ;;  %v10627_v28 = vpop.eup %10626  ;;  %v4044_v7 = vmul.f32 1.442695, %v4010_v3  ;;  %v12318_v16 = vmul.f32 %v12117_v8, %v12178_v48  ;;  %v4636_v18 = vld [vmem:[#allocation3 + $0x14] sm:$0x1] }
 0x271   : > { %v9147_v24 = vpack.c.bf16 %v4276_v32, %v4276_v32  ;;  %v4277_v11 = vmul.f32 %v10627_v28, %v12144_v34  ;;  %10640 = vpow2.f32 %v4038_v29  ;;  %v12323_v14 = vmul.f32 %v10619_v23, %v4150_v20  ;;  %v4632_v34 = vld [vmem:[#allocation3 + $0xc] sm:$0xf] }
 0x272   : > { %v4441_v56 = vshrl.u32 %v9149_v27, 16  ;;  %v9150_v57 = vpack.c.bf16 %v4279_v55, %v4279_v55  ;;  %v12321_v52 = vpop.eup %10628  ;;  %v4444_v61 = vshll.u32 %v9149_v27, 16  ;;  %10642 = vpow2.f32 %v4034_v1 }
 0x273   : > { %v4424_v59 = vshrl.u32 %v9147_v24, 16  ;;  %v4427_v33 = vshll.u32 %v9147_v24, 16  ;;  %v9148_v62 = vpack.c.bf16 %v4277_v11, %v4277_v11  ;;  %vm12331_vm3 = vcmp.lt.f32.partialorder %v4152_v44, 0.0004427343 }
 0x274   : > { %v4443_v26 = vrot.slane %v4441_v56, 7  ;;  %v4449_v50 = vshrl.u32 %v9150_v57, 16  ;;  %v4452_v46 = vshll.u32 %v9150_v57, 16  ;;  %v4128_v23 = vadd.f32 1.0, %v12321_v52 }
 0x275   : > { %v10631_v12 = vpop.eup %10630  ;;  %v4426_v10 = vrot.slane %v4424_v59, 7  ;;  %10644 = vpow2.f32 %v4044_v7  ;;  %v4432_v25 = vshrl.u32 %v9148_v62, 16  ;;  %vm13866_vm9 = vsmask.f32 256  ;;  %v4629_v7 = vld [vmem:[#allocation3 + $0x8] sm:$0x1] }
 0x276   : > { %v10633_v5 = vpop.eup %10632  ;;  %v4446_v38 = vor.u32 %v4444_v61, %v4443_v26  ;;  %v4447_v22 = vrot.slane %v4443_v26, 4  ;;  %v4451_v60 = vrot.slane %v4449_v50, 7  ;;  %vm12338_vm4 = vmor %vm13866_vm9, %vm4421_vm0  ;;  %v4435_v32 = vshll.u32 %v9148_v62, 16 }
 0x277   : > { %v10635_v21 = vpop.eup %10634  ;;  %v4429_v15 = vor.u32 %v4427_v33, %v4426_v10  ;;  %v4430_v29 = vrot.slane %v4426_v10, 4  ;;  %v4282_v20 = vmul.f32 %v10631_v12, %v12153_v42  ;;  %vm3986_vm6 = vcmp.gt.f32.partialorder %v12174_v43, 20.0 }
 0x278   : > { %v4633_v3 = vsel %vm12327_vm1, %v4446_v38, %v4632_v34  ;;  %v4454_v27 = vor.u32 %v4452_v46, %v4451_v60  ;;  %v4456_v55 = vrot.slane %v4451_v60, 4  ;;  %v4434_v28 = vrot.slane %v4432_v25, 7  ;;  %v10637_v24 = vpop.eup %10636 }
 0x279   : > { %4634 = vst [vmem:[#allocation3 + $0xc] sm:$0xf] %v4633_v3  ;;  %v4626_v44 = vsel %vm12327_vm1, %v4429_v15, %v4625_v35  ;;  %v9153_v56 = vpack.c.bf16 %v4282_v20, %v4282_v20  ;;  %v4280_v57 = vmul.f32 %v10633_v5, %v12157_v6  ;;  %v4283_v11 = vmul.f32 %v10635_v21, %v12162_v41  ;;  %v10639_v42 = vpop.eup %10638  ;;  %v4646_v21 = vld [vmem:[#allocation3 + $0x24] sm:$0xf] }
 0x27a   : > { %4627 = vst [vmem:[#allocation3] sm:$0xf] %v4626_v44  ;;  %v4455_v61 = vsel %vm12338_vm4, %v4447_v22, %v4454_v27  ;;  %v4637_v59 = vsel %vm12067_vm8, %v4456_v55, %v4636_v18  ;;  %v4437_v26 = vor.u32 %v4435_v32, %v4434_v28  ;;  %v4439_v33 = vrot.slane %v4434_v28, 4  ;;  %v4639_v28 = vld [vmem:[#allocation3 + $0x18] sm:$0xf] }
 0x27b   : > { %4635 = vst [vmem:[#allocation3 + $0x10] sm:$0xf] %v4455_v61  ;;  %4638 = vst [vmem:[#allocation3 + $0x14] sm:$0x1] %v4637_v59  ;;  %v4475_v50 = vshrl.u32 %v9153_v56, 16  ;;  %v9151_v62 = vpack.c.bf16 %v4280_v57, %v4280_v57  ;;  %v9154_v12 = vpack.c.bf16 %v4283_v11, %v4283_v11  ;;  %v4131_v34 = vmul.f32 -0.5, %v12321_v52  ;;  %v12355_v6 = vpop.eup %10640 }
 0x27c   : > { %v4438_v41 = vsel %vm12338_vm4, %v4430_v29, %v4437_v26  ;;  %v4630_v10 = vsel %vm12067_vm8, %v4439_v33, %v4629_v7  ;;  %v4281_v46 = vmul.f32 %v10637_v24, %v12166_v53  ;;  %v4148_v5 = vmul.f32 0.6931472, %v10639_v42  ;;  %v12362_v38 = vpop.eup %10642 }
 0x27d   : > { %4628 = vst [vmem:[#allocation3 + $0x4] sm:$0xf] %v4438_v41  ;;  %4631 = vst [vmem:[#allocation3 + $0x8] sm:$0x1] %v4630_v10  ;;  %v4477_v22 = vrot.slane %v4475_v50, 7  ;;  %v4478_v35 = vshll.u32 %v9153_v56, 16  ;;  %10646 = vlog2.f32 %v4128_v23 }
 0x27e   : > { %v4458_v60 = vshrl.u32 %v9151_v62, 16  ;;  %v4483_v25 = vshrl.u32 %v9154_v12, 16  ;;  %v4461_v15 = vshll.u32 %v9151_v62, 16  ;;  %v9152_v18 = vpack.c.bf16 %v4281_v46, %v4281_v46  ;;  %v4650_v56 = vld [vmem:[#allocation3 + $0x2c] sm:$0x1] }
 0x27f   : > { %v4154_v29 = vsel %vm12331_vm3, %v12323_v14, %v4148_v5  ;;  %v12367_v32 = vpop.eup %10644  ;;  %v4480_v53 = vor.u32 %v4478_v35, %v4477_v22  ;;  %v4486_v27 = vshll.u32 %v9154_v12, 16  ;;  %v4481_v55 = vrot.slane %v4477_v22, 4  ;;  %v4643_v50 = vld [vmem:[#allocation3 + $0x20] sm:$0x1] }
 0x280   : > { %v4460_v20 = vrot.slane %v4458_v60, 7  ;;  %v4485_v3 = vrot.slane %v4483_v25, 7  ;;  %v4466_v24 = vshrl.u32 %v9152_v18, 16  ;;  %v4246_v44 = vsel %vm3986_vm6, %v12174_v43, %v4154_v29 }
 0x281   : > { %v4134_v7 = vand.u32 2147483647, %v12321_v52  ;;  %v4647_v2 = vsel %vm12327_vm1, %v4480_v53, %v4646_v21  ;;  %v4469_v57 = vshll.u32 %v9152_v18, 16  ;;  %10648 = vtanh.f32 %v4246_v44 }
 0x282   : > { %v4463_v14 = vor.u32 %v4461_v15, %v4460_v20  ;;  %v4488_v23 = vor.u32 %v4486_v27, %v4485_v3  ;;  %4648 = vst [vmem:[#allocation3 + $0x24] sm:$0xf] %v4647_v2  ;;  %v4490_v11 = vrot.slane %v4485_v3, 4  ;;  %v4468_v42 = vrot.slane %v4466_v24, 7 }
 0x283   : > { %v4132_v61 = vadd.f32 1.0, %v4131_v34  ;;  %v4464_v59 = vrot.slane %v4460_v20, 4  ;;  %v4155_v62 = vadd.f32 1.0, %v12355_v6  ;;  %v4158_v46 = vmul.f32 -0.5, %v12355_v6 }
 0x284   : > { %v4640_v26 = vsel %vm12327_vm1, %v4463_v14, %v4639_v28  ;;  %v4489_v33 = vsel %vm12338_vm4, %v4481_v55, %v4488_v23  ;;  %v4651_v12 = vsel %vm12067_vm8, %v4490_v11, %v4650_v56  ;;  %v4471_v41 = vor.u32 %v4469_v57, %v4468_v42 }
 0x285   : > { %4641 = vst [vmem:[#allocation3 + $0x18] sm:$0xf] %v4640_v26  ;;  %4649 = vst [vmem:[#allocation3 + $0x28] sm:$0xf] %v4489_v33  ;;  %v4473_v10 = vrot.slane %v4468_v42, 4  ;;  %10650 = vlog2.f32 %v4155_v62  ;;  %v4137_v5 = vadd.f32 1.0, %v12362_v38  ;;  %v12387_v22 = vadd.f32 %v12124_v58, %v12318_v16 }
 0x286   : > { %4652 = vst [vmem:[#allocation3 + $0x2c] sm:$0x1] %v4651_v12  ;;  %v4161_v34 = vand.u32 2147483647, %v12355_v6  ;;  %v4472_v35 = vsel %vm12338_vm4, %v4464_v59, %v4471_v41  ;;  %v4159_v25 = vadd.f32 1.0, %v4158_v46  ;;  %v4140_v21 = vmul.f32 -0.5, %v12362_v38 }
 0x287   : > { %v4644_v60 = vsel %vm12067_vm8, %v4473_v10, %v4643_v50  ;;  %4642 = vst [vmem:[#allocation3 + $0x1c] sm:$0xf] %v4472_v35  ;;  %vm3984_vm12 = vcmp.gt.f32.partialorder %v12219_v51, 20.0  ;;  %10652 = vlog2.f32 %v4137_v5  ;;  %v4182_v15 = vadd.f32 1.0, %v12367_v32  ;;  %v10647_v18 = vpop.eup %10646 }
 0x288   : > { %4645 = vst [vmem:[#allocation3 + $0x20] sm:$0x1] %v4644_v60  ;;  %v4133_v16 = vmul.f32 %v12321_v52, %v4132_v61  ;;  %vm12397_vm11 = vcmp.lt.f32.partialorder %v4134_v7, 0.0004427343  ;;  %v4143_v53 = vand.u32 2147483647, %v12362_v38  ;;  %v4160_v52 = vmul.f32 %v12355_v6, %v4159_v25 }
 0x289   : > { %v4185_v20 = vmul.f32 -0.5, %v12367_v32  ;;  %v4130_v3 = vmul.f32 0.6931472, %v10647_v18  ;;  %vm12403_vm13 = vcmp.lt.f32.partialorder %v4161_v34, 0.0004427343  ;;  %10654 = vlog2.f32 %v4182_v15 }
 0x28a   : > { %v4008_v55 = vmin.f32 %v12387_v22, 20.0  ;;  %vm3987_vm14 = vcmp.gt.f32.partialorder %v12229_v9, 20.0  ;;  %v4141_v28 = vadd.f32 1.0, %v4140_v21  ;;  %v3944_v24 = vmul.f32 %v12182_v40, %v12117_v8  ;;  %v4660_v18 = vld [vmem:[#allocation3 + $0x3c] sm:$0xf] }
 0x28b   : > { %v3942_v44 = vmul.f32 %v12117_v8, %v12195_v63  ;;  %v4136_v7 = vsel %vm12397_vm11, %v4133_v16, %v4130_v3  ;;  %v10151_v14 = vadd.f32 %v12226_v13, %v12092_v30  ;;  %v10152_v23 = vadd.f32 %v12231_v47, %v12096_v4  ;;  %v10649_v56 = vpop.eup %10648  ;;  %v4358_v13 = vld [vmem:[#allocation3 + $0x74] sm:$0x1] }
 0x28c   : > { %v4040_v2 = vmul.f32 1.442695, %v4008_v55  ;;  %v4244_v6 = vsel %vm3984_vm12, %v12219_v51, %v4136_v7  ;;  %vm3985_vm15 = vcmp.gt.f32.partialorder %v12286_v31, 20.0  ;;  %v4186_v40 = vadd.f32 1.0, %v4185_v20 }
 0x28d   : > { %v12425_v63 = vadd.f32 %v12124_v58, %v3944_v24  ;;  %v12428_v57 = vadd.f32 %v12124_v58, %v3942_v44  ;;  %v4286_v11 = vmul.f32 %v10649_v56, %v12174_v43  ;;  %10656 = vtanh.f32 %v4244_v6  ;;  %v4355_v56 = vld [vmem:[#allocation3 + $0x68] sm:$0x1] }
 0x28e   : > { %v3947_v30 = vmul.f32 %v10151_v14, %v12117_v8  ;;  %v3945_v4 = vmul.f32 %v10152_v23, %v12117_v8  ;;  %vm12433_vm7 = vcmp.lt.f32.partialorder %v4143_v53, 0.0004427343  ;;  %vm3990_vm0 = vcmp.gt.f32.partialorder %v12298_v37, 20.0 }
 0x28f   : > { %v4188_v42 = vand.u32 2147483647, %v12367_v32  ;;  %10658 = vpow2.f32 %v4040_v2  ;;  %v4011_v61 = vmin.f32 %v12425_v63, 20.0  ;;  %v10651_v59 = vpop.eup %10650  ;;  %v9157_v26 = vpack.c.bf16 %v4286_v11, %v4286_v11 }
 0x290   : > { %v4142_v43 = vmul.f32 %v12362_v38, %v4141_v28  ;;  %v4009_v33 = vmin.f32 %v12428_v57, 20.0  ;;  %v12443_v50 = vadd.f32 %v12124_v58, %v3947_v30  ;;  %v4157_v62 = vmul.f32 0.6931472, %v10651_v59 }
 0x291   : > { %v4046_v12 = vmul.f32 1.442695, %v4011_v61  ;;  %v10153_v41 = vadd.f32 %v12246_v17, %v12098_v0  ;;  %v4359_v10 = vsel %vm12074_vm10, 0, %v4358_v13  ;;  %v10653_v46 = vpop.eup %10652  ;;  %v4509_v34 = vshrl.u32 %v9157_v26, 16 }
 0x292   : > { %v4187_v5 = vmul.f32 %v12367_v32, %v4186_v40  ;;  %v4042_v35 = vmul.f32 1.442695, %v4009_v33  ;;  %v12451_v38 = vadd.f32 %v12124_v58, %v3945_v4  ;;  %4360 = vst [vmem:[#allocation3 + $0x74] sm:$0x1] %v4359_v10  ;;  %v4163_v60 = vsel %vm12403_vm13, %v4160_v52, %v4157_v62 }
 0x293   : > { %v4139_v25 = vmul.f32 0.6931472, %v10653_v46  ;;  %10660 = vpow2.f32 %v4046_v12  ;;  %v4014_v21 = vmin.f32 %v12443_v50, 20.0  ;;  %v10655_v0 = vpop.eup %10654  ;;  %v12456_v17 = vrot.slane %v4509_v34, 7 }
 0x294   : > { %v4512_v15 = vshll.u32 %v9157_v26, 16  ;;  %v4247_v32 = vsel %vm3987_vm14, %v12229_v9, %v4163_v60  ;;  %10662 = vpow2.f32 %v4042_v35  ;;  %v4184_v29 = vmul.f32 0.6931472, %v10655_v0 }
 0x295   : > { %10664 = vtanh.f32 %v4247_v32  ;;  %v4145_v16 = vsel %vm12433_vm7, %v4142_v43, %v4139_v25  ;;  %v4052_v53 = vmul.f32 1.442695, %v4014_v21  ;;  %vm4189_vm3 = vcmp.lt.f32.partialorder %v4188_v42, 0.0004427343 }
 0x296   : > { %v4514_v20 = vor.u32 %v4512_v15, %v12456_v17  ;;  %v4245_v3 = vsel %vm3985_vm15, %v12286_v31, %v4145_v16  ;;  %v4012_v27 = vmin.f32 %v12451_v38, 20.0  ;;  %v4190_v55 = vsel %vm4189_vm3, %v4187_v5, %v4184_v29 }
 0x297   : > { %10666 = vtanh.f32 %v4245_v3  ;;  %v3948_v52 = vmul.f32 %v10153_v41, %v12117_v8  ;;  %v10154_v28 = vadd.f32 %v12255_v19, %v12100_v36  ;;  %v10657_v24 = vpop.eup %10656  ;;  %v4250_v7 = vsel %vm3990_vm0, %v12298_v37, %v4190_v55  ;;  %v4653_v41 = vld [vmem:[#allocation3 + $0x30] sm:$0xf] }
 0x298   : > { %v4661_v44 = vsel %vm12327_vm1, %v4514_v20, %v4660_v18  ;;  %10668 = vpow2.f32 %v4052_v53  ;;  %v4048_v2 = vmul.f32 1.442695, %v4012_v27  ;;  %v4284_v23 = vmul.f32 %v10657_v24, %v12219_v51 }
 0x299   : > { %v10659_v14 = vpop.eup %10658  ;;  %4662 = vst [vmem:[#allocation3 + $0x3c] sm:$0xf] %v4661_v44  ;;  %10670 = vtanh.f32 %v4250_v7  ;;  %v12478_v36 = vadd.f32 %v12124_v58, %v3948_v52  ;;  %v3946_v11 = vmul.f32 %v10154_v28, %v12117_v8  ;;  %v4356_v30 = vsel %vm12074_vm10, 0, %v4355_v56 }
 0x29a   : > { %v4164_v6 = vadd.f32 1.0, %v10659_v14  ;;  %v4167_v40 = vmul.f32 -0.5, %v10659_v14  ;;  %10672 = vpow2.f32 %v4048_v2  ;;  %v9155_v19 = vpack.c.bf16 %v4284_v23, %v4284_v23  ;;  %4357 = vst [vmem:[#allocation3 + $0x68] sm:$0x1] %v4356_v30  ;;  %v4664_v23 = vld [vmem:[#allocation3 + $0x44] sm:$0x1] }
 0x29b   : > { %v4515_v13 = vrot.slane %v12456_v17, 4  ;;  %v4170_v51 = vand.u32 2147483647, %v10659_v14  ;;  %v4015_v43 = vmin.f32 %v12478_v36, 20.0  ;;  %v12488_v49 = vadd.f32 %v12124_v58, %v3946_v11 }
 0x29c   : > { %10674 = vlog2.f32 %v4164_v6  ;;  %v4492_v47 = vshrl.u32 %v9155_v19, 16  ;;  %v4168_v61 = vadd.f32 1.0, %v4167_v40  ;;  %v4495_v8 = vshll.u32 %v9155_v19, 16 }
 0x29d   : > { %v10661_v4 = vpop.eup %10660  ;;  %vm12492_vm10 = vcmp.lt.f32.partialorder %v4170_v51, 0.0004427343  ;;  %vm3988_vm9 = vcmp.gt.f32.partialorder %v12387_v22, 20.0  ;;  %v12500_v15 = vmul.f32 1.442695, %v4015_v43  ;;  %vm3991_vm12 = vcmp.gt.f32.partialorder %v12425_v63, 20.0 }
 0x29e   : > { %v10663_v42 = vpop.eup %10662  ;;  %v4191_v59 = vadd.f32 1.0, %v10661_v4  ;;  %v4194_v26 = vmul.f32 -0.5, %v10661_v4  ;;  %v12485_v62 = vrot.slane %v4492_v47, 7  ;;  %v4197_v46 = vand.u32 2147483647, %v10661_v4 }
 0x29f   : > { %v10665_v33 = vpop.eup %10664  ;;  %v4173_v12 = vadd.f32 1.0, %v10663_v42  ;;  %v4176_v34 = vmul.f32 -0.5, %v10663_v42  ;;  %v4179_v29 = vand.u32 2147483647, %v10663_v42  ;;  %vm3989_vm11 = vcmp.gt.f32.partialorder %v12428_v57, 20.0 }
 0x2a0   : > { %v4287_v10 = vmul.f32 %v10665_v33, %v12229_v9  ;;  %10676 = vlog2.f32 %v4191_v59  ;;  %v4497_v35 = vor.u32 %v4495_v8, %v12485_v62  ;;  %v4195_v25 = vadd.f32 1.0, %v4194_v26  ;;  %v4657_v51 = vld [vmem:[#allocation3 + $0x38] sm:$0x1] }
 0x2a1   : > { %v10667_v5 = vpop.eup %10666  ;;  %10678 = vlog2.f32 %v4173_v12  ;;  %v4169_v9 = vmul.f32 %v10659_v14, %v4168_v61  ;;  %v4498_v18 = vrot.slane %v12485_v62, 4  ;;  %vm12509_vm6 = vcmp.lt.f32.partialorder %v4197_v46, 0.0004427343 }
 0x2a2   : > { %v12496_v21 = vpop.eup %10668  ;;  %v9158_v0 = vpack.c.bf16 %v4287_v10, %v4287_v10  ;;  %v4285_v58 = vmul.f32 %v10667_v5, %v12286_v31  ;;  %v4654_v16 = vsel %vm12327_vm1, %v4497_v35, %v4653_v41  ;;  %v4177_v52 = vadd.f32 1.0, %v4176_v34  ;;  %v4674_v35 = vld [vmem:[#allocation3 + $0x54] sm:$0xf] }
 0x2a3   : > { %v10671_v32 = vpop.eup %10670  ;;  %v4218_v53 = vadd.f32 1.0, %v12496_v21  ;;  %4655 = vst [vmem:[#allocation3 + $0x30] sm:$0xf] %v4654_v16  ;;  %v4196_v28 = vmul.f32 %v10661_v4, %v4195_v25  ;;  %v4221_v24 = vmul.f32 -0.5, %v12496_v21  ;;  %vm12517_vm13 = vcmp.lt.f32.partialorder %v4179_v29, 0.0004427343 }
 0x2a4   : > { %v12506_v20 = vpop.eup %10672  ;;  %v4517_v3 = vshrl.u32 %v9158_v0, 16  ;;  %v9156_v27 = vpack.c.bf16 %v4285_v58, %v4285_v58  ;;  %v4290_v31 = vmul.f32 %v10671_v32, %v12298_v37  ;;  %v4520_v14 = vshll.u32 %v9158_v0, 16 }
 0x2a5   : > { %10680 = vlog2.f32 %v4218_v53  ;;  %v4200_v44 = vadd.f32 1.0, %v12506_v20  ;;  %v4178_v59 = vmul.f32 %v10663_v42, %v4177_v52  ;;  %v4222_v26 = vadd.f32 1.0, %v4221_v24 }
 0x2a6   : > { %v10675_v7 = vpop.eup %10674  ;;  %v4519_v2 = vrot.slane %v4517_v3, 7  ;;  %v4500_v56 = vshrl.u32 %v9156_v27, 16  ;;  %v9161_v6 = vpack.c.bf16 %v4290_v31, %v4290_v31  ;;  %v4503_v37 = vshll.u32 %v9156_v27, 16 }
 0x2a7   : > { %v4166_v40 = vmul.f32 0.6931472, %v10675_v7  ;;  %10682 = vlog2.f32 %v4200_v44  ;;  %v4203_v43 = vmul.f32 -0.5, %v12506_v20  ;;  %v4224_v58 = vand.u32 2147483647, %v12496_v21 }
 0x2a8   : > { %v4522_v11 = vor.u32 %v4520_v14, %v4519_v2  ;;  %v4524_v30 = vrot.slane %v4519_v2, 4  ;;  %v4502_v4 = vrot.slane %v4500_v56, 7  ;;  %v4543_v47 = vshrl.u32 %v9161_v6, 16 }
 0x2a9   : > { %v4172_v61 = vsel %vm12492_vm10, %v4169_v9, %v4166_v40  ;;  %v4546_v42 = vshll.u32 %v9161_v6, 16  ;;  %v4206_v9 = vand.u32 2147483647, %v12506_v20  ;;  %v4204_v16 = vadd.f32 1.0, %v4203_v43 }
 0x2aa   : > { %v10677_v33 = vpop.eup %10676  ;;  %v4523_v62 = vsel %vm12338_vm4, %v4515_v13, %v4522_v11  ;;  %v4665_v8 = vsel %vm12067_vm8, %v4524_v30, %v4664_v23  ;;  %v4505_v12 = vor.u32 %v4503_v37, %v4502_v4  ;;  %v4507_v41 = vrot.slane %v4502_v4, 4 }
 0x2ab   : > { %v10679_v10 = vpop.eup %10678  ;;  %4663 = vst [vmem:[#allocation3 + $0x40] sm:$0xf] %v4523_v62  ;;  %4666 = vst [vmem:[#allocation3 + $0x44] sm:$0x1] %v4665_v8  ;;  %v12530_v46 = vrot.slane %v4543_v47, 7  ;;  %v4248_v34 = vsel %vm3988_vm9, %v12387_v22, %v4172_v61  ;;  %v4013_v27 = vmin.f32 %v12488_v49, 20.0  ;;  %v4223_v55 = vmul.f32 %v12496_v21, %v4222_v26 }
 0x2ac   : > { %v4193_v5 = vmul.f32 0.6931472, %v10677_v33  ;;  %v4506_v17 = vsel %vm12338_vm4, %v4498_v18, %v4505_v12  ;;  %v4658_v13 = vsel %vm12067_vm8, %v4507_v41, %v4657_v51  ;;  %10684 = vtanh.f32 %v4248_v34  ;;  %v4667_v33 = vld [vmem:[#allocation3 + $0x48] sm:$0xf] }
 0x2ad   : > { %v4175_v60 = vmul.f32 0.6931472, %v10679_v10  ;;  %4656 = vst [vmem:[#allocation3 + $0x34] sm:$0xf] %v4506_v17  ;;  %4659 = vst [vmem:[#allocation3 + $0x38] sm:$0x1] %v4658_v13  ;;  %v4548_v25 = vor.u32 %v4546_v42, %v12530_v46  ;;  %10686 = vpow2.f32 %v12500_v15  ;;  %v4205_v44 = vmul.f32 %v12506_v20, %v4204_v16 }
 0x2ae   : > { %v4199_v0 = vsel %vm12509_vm6, %v4196_v28, %v4193_v5  ;;  %vm4225_vm14 = vcmp.lt.f32.partialorder %v4224_v58, 0.0004427343  ;;  %v4050_v28 = vmul.f32 1.442695, %v4013_v27  ;;  %vm3994_vm15 = vcmp.gt.f32.partialorder %v12443_v50, 20.0 }
 0x2af   : > { %v4251_v32 = vsel %vm3991_vm12, %v12425_v63, %v4199_v0  ;;  %v4181_v18 = vsel %vm12517_vm13, %v4178_v59, %v4175_v60  ;;  %v10681_v29 = vpop.eup %10680  ;;  %v4675_v53 = vsel %vm12327_vm1, %v4548_v25, %v4674_v35  ;;  %vm4207_vm7 = vcmp.lt.f32.partialorder %v4206_v9, 0.0004427343  ;;  %v4678_v13 = vld [vmem:[#allocation3 + $0x5c] sm:$0x1]  ;;  %v4671_v9 = vld [vmem:[#allocation3 + $0x50] sm:$0x1] }
 0x2b0   : > { %10688 = vtanh.f32 %v4251_v32  ;;  %v4249_v3 = vsel %vm3989_vm11, %v12428_v57, %v4181_v18  ;;  %4676 = vst [vmem:[#allocation3 + $0x54] sm:$0xf] %v4675_v53  ;;  %v4220_v31 = vmul.f32 0.6931472, %v10681_v29  ;;  %vm3992_vm0 = vcmp.gt.f32.partialorder %v12451_v38, 20.0 }
 0x2b1   : > { %10690 = vtanh.f32 %v4249_v3  ;;  %v10683_v52 = vpop.eup %10682  ;;  %vm3995_vm10 = vcmp.gt.f32.partialorder %v12478_v36, 20.0  ;;  %vm3993_vm6 = vcmp.gt.f32.partialorder %v12488_v49, 20.0 }
 0x2b2   : > { %v4226_v15 = vsel %vm4225_vm14, %v4223_v55, %v4220_v31  ;;  %v4202_v24 = vmul.f32 0.6931472, %v10683_v52  ;;  %10692 = vpow2.f32 %v4050_v28 }
 0x2b3   : > { %v4254_v7 = vsel %vm3994_vm15, %v12443_v50, %v4226_v15 }
 0x2b4   : > { %10694 = vtanh.f32 %v4254_v7  ;;  %v4208_v2 = vsel %vm4207_vm7, %v4205_v44, %v4202_v24  ;;  %v4688_v24 = vld [vmem:[#allocation3 + $0x6c] sm:$0xf] }
 0x2b5   : > { %v4252_v14 = vsel %vm3992_vm0, %v12451_v38, %v4208_v2 }
 0x2b6   : > { %v10685_v21 = vpop.eup %10684  ;;  %10696 = vtanh.f32 %v4252_v14 }
 0x2b7   : > { %v4288_v23 = vmul.f32 %v10685_v21, %v12387_v22  ;;  %v10687_v56 = vpop.eup %10686  ;;  %v4549_v22 = vrot.slane %v12530_v46, 4 }
 0x2b8   : > { %v4227_v40 = vadd.f32 1.0, %v10687_v56  ;;  %v4230_v4 = vmul.f32 -0.5, %v10687_v56  ;;  %v4233_v10 = vand.u32 2147483647, %v10687_v56 }
 0x2b9   : > { %v9159_v37 = vpack.c.bf16 %v4288_v23, %v4288_v23 }
 0x2ba   : > { %v10689_v6 = vpop.eup %10688  ;;  %10698 = vlog2.f32 %v4227_v40  ;;  %v4231_v41 = vadd.f32 1.0, %v4230_v4  ;;  %vm4234_vm3 = vcmp.lt.f32.partialorder %v4233_v10, 0.0004427343 }
 0x2bb   : > { %v10691_v19 = vpop.eup %10690  ;;  %v4291_v20 = vmul.f32 %v10689_v6, %v12425_v63  ;;  %v4526_v11 = vshrl.u32 %v9159_v37, 16  ;;  %v4529_v59 = vshll.u32 %v9159_v37, 16  ;;  %v4681_v6 = vld [vmem:[#allocation3 + $0x60] sm:$0xf] }
 0x2bc   : > { %v4289_v30 = vmul.f32 %v10691_v19, %v12428_v57  ;;  %v12565_v51 = vpop.eup %10692  ;;  %v4232_v7 = vmul.f32 %v10687_v56, %v4231_v41 }
 0x2bd   : > { %v9162_v47 = vpack.c.bf16 %v4291_v20, %v4291_v20  ;;  %v4528_v61 = vrot.slane %v4526_v11, 7  ;;  %v4209_v8 = vadd.f32 1.0, %v12565_v51  ;;  %v4215_v40 = vand.u32 2147483647, %v12565_v51 }
 0x2be   : > { %v9160_v26 = vpack.c.bf16 %v4289_v30, %v4289_v30  ;;  %v10695_v43 = vpop.eup %10694 }
 0x2bf   : > { %v4551_v62 = vshrl.u32 %v9162_v47, 16  ;;  %v4531_v12 = vor.u32 %v4529_v59, %v4528_v61  ;;  %v4554_v34 = vshll.u32 %v9162_v47, 16  ;;  %v4294_v5 = vmul.f32 %v10695_v43, %v12443_v50 }
 0x2c0   : > { %v4534_v63 = vshrl.u32 %v9160_v26, 16  ;;  %v10697_v57 = vpop.eup %10696  ;;  %10700 = vlog2.f32 %v4209_v8  ;;  %v4537_v46 = vshll.u32 %v9160_v26, 16  ;;  %v4532_v25 = vrot.slane %v4528_v61, 4 }
 0x2c1   : > { %v4553_v42 = vrot.slane %v4551_v62, 7  ;;  %v4668_v17 = vsel %vm12327_vm1, %v4531_v12, %v4667_v33  ;;  %v4292_v60 = vmul.f32 %v10697_v57, %v12451_v38  ;;  %v9165_v32 = vpack.c.bf16 %v4294_v5, %v4294_v5 }
 0x2c2   : > { %v4536_v35 = vrot.slane %v4534_v63, 7  ;;  %4669 = vst [vmem:[#allocation3 + $0x48] sm:$0xf] %v4668_v17  ;;  %v4212_v50 = vmul.f32 -0.5, %v12565_v51  ;;  %vm4216_vm9 = vcmp.lt.f32.partialorder %v4215_v40, 0.0004427343 }
 0x2c3   : > { %v4556_v0 = vor.u32 %v4554_v34, %v4553_v42  ;;  %v4558_v58 = vrot.slane %v4553_v42, 4  ;;  %v9163_v29 = vpack.c.bf16 %v4292_v60, %v4292_v60  ;;  %v4577_v27 = vshrl.u32 %v9165_v32, 16  ;;  %v4692_v63 = vld [vmem:[#allocation3 + $0x74] sm:$0x1] }
 0x2c4   : > { %v4539_v18 = vor.u32 %v4537_v46, %v4536_v35  ;;  %v4541_v16 = vrot.slane %v4536_v35, 4  ;;  %v10699_v31 = vpop.eup %10698  ;;  %v4580_v15 = vshll.u32 %v9165_v32, 16  ;;  %v4213_v21 = vadd.f32 1.0, %v4212_v50 }
 0x2c5   : > { %v4557_v53 = vsel %vm12338_vm4, %v4549_v22, %v4556_v0  ;;  %v4679_v3 = vsel %vm12067_vm8, %v4558_v58, %v4678_v13  ;;  %v4560_v52 = vshrl.u32 %v9163_v29, 16  ;;  %v4579_v28 = vrot.slane %v4577_v27, 7  ;;  %v4685_v13 = vld [vmem:[#allocation3 + $0x68] sm:$0x1] }
 0x2c6   : > { %4677 = vst [vmem:[#allocation3 + $0x58] sm:$0xf] %v4557_v53  ;;  %4680 = vst [vmem:[#allocation3 + $0x5c] sm:$0x1] %v4679_v3  ;;  %v4540_v38 = vsel %vm12338_vm4, %v4532_v25, %v4539_v18  ;;  %v4672_v55 = vsel %vm12067_vm8, %v4541_v16, %v4671_v9  ;;  %v4229_v44 = vmul.f32 0.6931472, %v10699_v31  ;;  %v4214_v47 = vmul.f32 %v12565_v51, %v4213_v21 }
 0x2c7   : > { %4670 = vst [vmem:[#allocation3 + $0x4c] sm:$0xf] %v4540_v38  ;;  %4673 = vst [vmem:[#allocation3 + $0x50] sm:$0x1] %v4672_v55  ;;  %v4562_v2 = vrot.slane %v4560_v52, 7  ;;  %v4563_v14 = vshll.u32 %v9163_v29, 16  ;;  %v4582_v23 = vor.u32 %v4580_v15, %v4579_v28 }
 0x2c8   : > { %v4235_v37 = vsel %vm4234_vm3, %v4232_v7, %v4229_v44  ;;  %v4583_v41 = vrot.slane %v4579_v28, 4  ;;  %v10949_v0 = vmov (!%p8820_p9), 0  }
 0x2c9   : > { %v4565_v19 = vor.u32 %v4563_v14, %v4562_v2  ;;  %v4255_v20 = vsel %vm3995_vm10, %v12478_v36, %v4235_v37  ;;  %v4689_v30 = vsel %vm12327_vm1, %v4582_v23, %v4688_v24  ;;  %4699 = vst [vmem:[#allocation3] sm:$0xf] (!%p8820_p9), %v10949_v0  ;;  %4700 = vst [vmem:[#allocation3 + $0x4] sm:$0xf] (!%p8820_p9), %v10949_v0 }
 0x2ca   : > { %v10701_v11 = vpop.eup %10700  ;;  %10702 = vtanh.f32 %v4255_v20  ;;  %4690 = vst [vmem:[#allocation3 + $0x6c] sm:$0xf] %v4689_v30  ;;  %4701 = vst [vmem:[#allocation3 + $0x8] sm:$0x1] (!%p8820_p9), %v10949_v0 }
 0x2cb   : > { %v4682_v56 = vsel %vm12327_vm1, %v4565_v19, %v4681_v6  ;;  %v4211_v4 = vmul.f32 0.6931472, %v10701_v11 }
 0x2cc   : > { %4683 = vst [vmem:[#allocation3 + $0x60] sm:$0xf] %v4682_v56 }
 0x2cd   : > { %v4217_v61 = vsel %vm4216_vm9, %v4214_v47, %v4211_v4 }
 0x2ce   : > { %v4253_v59 = vsel %vm3993_vm6, %v12488_v49, %v4217_v61 }
 0x2cf   : > { %10704 = vtanh.f32 %v4253_v59 }
 0x2d4   : > { %v10703_v26 = vpop.eup %10702 }
 0x2d5   : > { %v4295_v43 = vmul.f32 %v10703_v26, %v12478_v36 }
 0x2d7   : > { %v9166_v22 = vpack.c.bf16 %v4295_v43, %v4295_v43 }
 0x2d9   : > { %v10705_v33 = vpop.eup %10704  ;;  %v4585_v62 = vshrl.u32 %v9166_v22, 16  ;;  %v4588_v12 = vshll.u32 %v9166_v22, 16 }
 0x2da   : > { %v4293_v48 = vmul.f32 %v10705_v33, %v12488_v49  ;;  %v4566_v49 = vrot.slane %v4562_v2, 4 }
 0x2db   : > { %v4587_v8 = vrot.slane %v4585_v62, 7 }
 0x2dc   : > { %v9164_v51 = vpack.c.bf16 %v4293_v48, %v4293_v48 }
 0x2dd   : > { %v4590_v10 = vor.u32 %v4588_v12, %v4587_v8  ;;  %v4592_v57 = vrot.slane %v4587_v8, 4 }
 0x2de   : > { %v4568_v42 = vshrl.u32 %v9164_v51, 16  ;;  %v4571_v17 = vshll.u32 %v9164_v51, 16 }
 0x2df   : > { %v4591_v34 = vsel %vm12338_vm4, %v4583_v41, %v4590_v10  ;;  %v4693_v5 = vsel %vm12067_vm8, %v4592_v57, %v4692_v63  ;;  %4698 = sbr.rel (%p8820_p9) target bundleno = 742 (0x2e6), region = 68 }
 0x2e0   : > { %4691 = vst [vmem:[#allocation3 + $0x70] sm:$0xf] %v4591_v34  ;;  %4694 = vst [vmem:[#allocation3 + $0x74] sm:$0x1] %v4693_v5  ;;  %v4570_v36 = vrot.slane %v4568_v42, 7 }
 0x2e2   : > { %v4573_v35 = vor.u32 %v4571_v17, %v4570_v36  ;;  %v4575_v46 = vrot.slane %v4570_v36, 4 }
 0x2e4   : > { %v4574_v60 = vsel %vm12338_vm4, %v4566_v49, %v4573_v35  ;;  %v4686_v25 = vsel %vm12067_vm8, %v4575_v46, %v4685_v13 }
 0x2e5   : > { %4684 = vst [vmem:[#allocation3 + $0x64] sm:$0xf] %v4574_v60  ;;  %4687 = vst [vmem:[#allocation3 + $0x68] sm:$0x1] %v4686_v25 }
 0x2e6 PF: > { %p8821_p10 = scmp.ne.s32.totalorder %s10931_s17, 1 }
 0x2e7   : > { %v10950_v58 = vmov (!%p8821_p10), 0  }
 0x2e8   : > { %4705 = sbr.rel (%p8821_p10) target bundleno = 751 (0x2ef), region = 72  ;;  %4707 = vst [vmem:[#allocation3 + $0x6c] sm:$0xf] (!%p8821_p10), %v10950_v58  ;;  %4708 = vst [vmem:[#allocation3 + $0x70] sm:$0xf] (!%p8821_p10), %v10950_v58 }
 0x2e9   : > { %4709 = vst [vmem:[#allocation3 + $0x74] sm:$0x1] (!%p8821_p10), %v10950_v58 }
 0x2ef PF: > { %v10709_v39 = vld [vmem:[%s13834_s8] sm:$0xff]   ;;  %v10710_v1 = vld [vmem:[%s13834_s8 + $0x8] sm:$0xff]   ;;  %v10711_v9 = vld [vmem:[%s13834_s8 + $0x10] sm:$0xff]  }
 0x2f0   : > { %9815 = vmatprep.subr.bf16.mxu1 %v10709_v39  ;;  %v10712_v32 = vld [vmem:[%s13834_s8 + $0x18] sm:$0xff]   ;;  %v4712_v29 = vld [vmem:[#allocation2 + $0x20] sm:$0x1]  ;;  %v4713_v31 = vld [vmem:[#allocation2 + $0x24] sm:$0xf] }
 0x2f1   : > { %9816 = vmatpush3.bf16.msra.mxu1 %v10709_v39  ;;  %v4710_v18 = vld [vmem:[#allocation2 + $0x18] sm:$0xf]  ;;  %v4711_v16 = vld [vmem:[#allocation2 + $0x1c] sm:$0xf]  ;;  %v10713_v38 = vld [vmem:[%s13834_s8 + $0x20] sm:$0xff]   ;;  %v4754_v55 = vshll.u32 %v4712_v29, 16 }
 0x2f2   : > { %9817 = vmatprep.subr.bf16.mxu1 %v10710_v1  ;;  %v4735_v50 = vshrl.u32 %v4710_v18, 16  ;;  %v4738_v53 = vshll.u32 %v4710_v18, 16  ;;  %v4744_v3 = vshll.u32 %v4711_v16, 16  ;;  %v4748_v27 = vshrl.u32 %v4711_v16, 16  ;;  %v4714_v52 = vld [vmem:[#allocation2 + $0x28] sm:$0xf] }
 0x2f3   : > { %v4715_v28 = vld [vmem:[#allocation2 + $0x2c] sm:$0x1]  ;;  %v4759_v15 = vshrl.u32 %v4713_v31, 16  ;;  %v4756_v14 = vrot.slane %v4754_v55, 5  ;;  %v4762_v23 = vshll.u32 %v4713_v31, 16  ;;  %v4768_v6 = vshll.u32 %v4714_v52, 16 }
 0x2f4   : > { %v4737_v24 = vrot.slane %v4735_v50, 4  ;;  %v4740_v44 = vrot.slane %v4738_v53, 5  ;;  %v4746_v7 = vrot.slane %v4744_v3, 5  ;;  %v4750_v2 = vrot.slane %v4748_v27, 4  ;;  %v4716_v56 = vld [vmem:[#allocation2 + $0x30] sm:$0xf] }
 0x2f5   : > { %9818 = vmatpush3.bf16.msra.mxu1 %v10710_v1  ;;  %v4761_v21 = vrot.slane %v4759_v15, 4  ;;  %v4772_v19 = vshrl.u32 %v4714_v52, 16  ;;  %v4778_v20 = vshll.u32 %v4715_v28, 16  ;;  %v4764_v11 = vrot.slane %v4762_v23, 5  ;;  %v4717_v26 = vld [vmem:[#allocation2 + $0x34] sm:$0xf] }
 0x2f6   : > { %9819 = vmatprep.subr.bf16.mxu1 %v10711_v9  ;;  %v4741_v37 = vor.u32 %v4740_v44, %v4737_v24  ;;  %v4751_v40 = vor.u32 %v4750_v2, %v4746_v7  ;;  %v4770_v30 = vrot.slane %v4768_v6, 5  ;;  %v10714_v43 = vld [vmem:[%s13834_s8 + $0x28] sm:$0xff]   ;;  %v4718_v33 = vld [vmem:[#allocation2 + $0x38] sm:$0x1]  ;;  %v4783_v62 = vshrl.u32 %v4716_v56, 16  ;;  %v10715_v42 = vld [vmem:[%s13834_s8 + $0x30] sm:$0xff]  }
 0x2f7   : > { %v4774_v61 = vrot.slane %v4772_v19, 4  ;;  %v4780_v59 = vrot.slane %v4778_v20, 5  ;;  %v4765_v22 = vor.u32 %v4764_v11, %v4761_v21  ;;  %v4786_v48 = vshll.u32 %v4716_v56, 16  ;;  %v4719_v10 = vld [vmem:[#allocation2 + $0x3c] sm:$0xf] }
 0x2f8   : > { %v4742_v4 = vrot.slane %v4741_v37, 4  ;;  %v4752_v47 = vrot.slane %v4751_v40, 4  ;;  %v4792_v8 = vshll.u32 %v4717_v26, 16  ;;  %v4796_v41 = vshrl.u32 %v4717_v26, 16  ;;  %v4720_v57 = vld [vmem:[#allocation2 + $0x40] sm:$0xf] }
 0x2f9   : > { %9820 = vmatpush3.bf16.msra.mxu1 %v10711_v9  ;;  %v4775_v51 = vor.u32 %v4774_v61, %v4770_v30  ;;  %v4766_v5 = vrot.slane %v4765_v22, 4  ;;  %v4785_v36 = vrot.slane %v4783_v62, 4  ;;  %v4788_v17 = vrot.slane %v4786_v48, 5  ;;  %v4721_v13 = vld [vmem:[#allocation2 + $0x44] sm:$0x1]  ;;  %v10716_v31 = vld [vmem:[%s13834_s8 + $0x38] sm:$0xff]  }
 0x2fa   : > { %9821 = vmatprep.subr.bf16.mxu1 %v10712_v32  ;;  %v4747_v12 = vsel %vm11133_vm2, %v4742_v4, %v4746_v7  ;;  %v4757_v63 = vsel %vm11133_vm2, %v4752_v47, %v4756_v14  ;;  %v4794_v35 = vrot.slane %v4792_v8, 5  ;;  %v4798_v46 = vrot.slane %v4796_v41, 4  ;;  %v4722_v16 = vld [vmem:[#allocation2 + $0x48] sm:$0xf]  ;;  %v4723_v27 = vld [vmem:[#allocation2 + $0x4c] sm:$0xf] }
 0x2fb   : > { %v8822_v34 = vcombine.low %v4747_v12, %v4757_v63  ;;  %v4776_v49 = vrot.slane %v4775_v51, 4  ;;  %v4802_v60 = vshll.u32 %v4718_v33, 16  ;;  %v4771_v25 = vsel %vm11133_vm2, %v4766_v5, %v4770_v30  ;;  %v4724_v44 = vld [vmem:[#allocation2 + $0x50] sm:$0x1]  ;;  %v4725_v14 = vld [vmem:[#allocation2 + $0x54] sm:$0xf] }
 0x2fc   : > { %v4789_v0 = vor.u32 %v4788_v17, %v4785_v36  ;;  %v4807_v58 = vshrl.u32 %v4719_v10, 16  ;;  %v4810_v39 = vshll.u32 %v4719_v10, 16  ;;  %v4799_v9 = vor.u32 %v4798_v46, %v4794_v35  ;;  %v4726_v40 = vld [vmem:[#allocation2 + $0x58] sm:$0xf]  ;;  %v4727_v56 = vld [vmem:[#allocation2 + $0x5c] sm:$0x1] }
 0x2fd   : > { %9822 = vmatpush3.bf16.msra.mxu1 %v10712_v32  ;;  %9831 = vmatprep.mubr.bf16.mxu1 %v8822_v34  ;;  %v4781_v1 = vsel %vm11133_vm2, %v4776_v49, %v4780_v59  ;;  %v4804_v32 = vrot.slane %v4802_v60, 5  ;;  %v4816_v18 = vshll.u32 %v4720_v57, 16  ;;  %v4820_v52 = vshrl.u32 %v4720_v57, 16  ;;  %v10717_v4 = vld [vmem:[%s13831_s5 + $0x40] sm:$0xff]   ;;  %v10718_v49 = vld [vmem:[%s13831_s5 + $0x48] sm:$0xff]  }
 0x2fe   : > { %9823 = vmatprep.subr.bf16.mxu1 %v10713_v38  ;;  %v12633_v29 = vcombine.low %v4771_v25, %v4781_v1  ;;  %v4790_v50 = vrot.slane %v4789_v0, 4  ;;  %v4809_v53 = vrot.slane %v4807_v58, 4  ;;  %v4812_v3 = vrot.slane %v4810_v39, 5  ;;  %v4730_v0 = vld [vmem:[#allocation2 + $0x68] sm:$0x1] }
 0x2ff   : > { %v4818_v55 = vrot.slane %v4816_v18, 5  ;;  %v4826_v28 = vshll.u32 %v4721_v13, 16  ;;  %v4831_v7 = vshrl.u32 %v4722_v16, 16  ;;  %v4834_v2 = vshll.u32 %v4722_v16, 16  ;;  %v4729_v13 = vld [vmem:[#allocation2 + $0x64] sm:$0xf] }
 0x300   : > { %v4795_v15 = vsel %vm11133_vm2, %v4790_v50, %v4794_v35  ;;  %v4813_v24 = vor.u32 %v4812_v3, %v4809_v53  ;;  %v4822_v23 = vrot.slane %v4820_v52, 4  ;;  %v4840_v37 = vshll.u32 %v4723_v27, 16  ;;  %v4731_v58 = vld [vmem:[#allocation2 + $0x6c] sm:$0xf]  ;;  %v4732_v18 = vld [vmem:[#allocation2 + $0x70] sm:$0xf] }
 0x301   : > { %9824 = vmatpush3.bf16.msra.mxu1 %v10713_v38  ;;  %v4800_v38 = vrot.slane %v4799_v9, 4  ;;  %v4828_v6 = vrot.slane %v4826_v28, 5  ;;  %v4833_v11 = vrot.slane %v4831_v7, 4  ;;  %v4836_v30 = vrot.slane %v4834_v2, 5  ;;  %v10719_v52 = vld [vmem:[%s13831_s5 + $0x50] sm:$0xff]  }
 0x302   : > { %9825 = vmatprep.subr.bf16.mxu1 %v10714_v43  ;;  %v4814_v20 = vrot.slane %v4813_v24, 4  ;;  %v4823_v47 = vor.u32 %v4822_v23, %v4818_v55  ;;  %v4842_v61 = vrot.slane %v4840_v37, 5  ;;  %v4844_v59 = vshrl.u32 %v4723_v27, 16  ;;  %v13504_v54 = vld [vmem:[%s13836_s10] ss:$0 sm:$0xff] }
 0x303   : > { %v4805_v21 = vsel %vm11133_vm2, %v4800_v38, %v4804_v32  ;;  %v4850_v26 = vshll.u32 %v4724_v44, 16  ;;  %v4837_v22 = vor.u32 %v4836_v30, %v4833_v11  ;;  %v4855_v33 = vshrl.u32 %v4725_v14, 16 }
 0x304   : > { %v8824_v19 = vcombine.low %v4795_v15, %v4805_v21  ;;  %v4858_v62 = vshll.u32 %v4725_v14, 16  ;;  %v4824_v48 = vrot.slane %v4823_v47, 4  ;;  %v4846_v8 = vrot.slane %v4844_v59, 4  ;;  %v4733_v14 = vld [vmem:[#allocation2 + $0x74] sm:$0x1] }
 0x305   : > { %9826 = vmatpush3.bf16.msra.mxu1 %v10714_v43  ;;  %v4819_v43 = vsel %vm11133_vm2, %v4814_v20, %v4818_v55  ;;  %v4852_v12 = vrot.slane %v4850_v26, 5  ;;  %v4864_v63 = vshll.u32 %v4726_v40, 16  ;;  %v4838_v51 = vrot.slane %v4837_v22, 4  ;;  %v10720_v20 = vld [vmem:[%s13831_s5 + $0x58] sm:$0xff]   ;;  %v12669_v47 = vld [vmem:[#allocation3 + $0x4] sm:$0xf] }
 0x306   : > { %9827 = vmatprep.subr.bf16.mxu1 %v10715_v42  ;;  %v4857_v41 = vrot.slane %v4855_v33, 4  ;;  %v4860_v10 = vrot.slane %v4858_v62, 5  ;;  %v4868_v57 = vshrl.u32 %v4726_v40, 16  ;;  %v4829_v34 = vsel %vm11133_vm2, %v4824_v48, %v4828_v6  ;;  %v12671_v22 = vld [vmem:[#allocation3 + $0x8] sm:$0x1] }
 0x307   : > { %v4847_v5 = vor.u32 %v4846_v8, %v4842_v61  ;;  %v4866_v36 = vrot.slane %v4864_v63, 5  ;;  %v4874_v17 = vshll.u32 %v4727_v56, 16  ;;  %v8825_v35 = vcombine.low %v4819_v43, %v4829_v34  ;;  %v12673_v33 = vld [vmem:[#allocation3 + $0xc] sm:$0xf]  ;;  %v12679_v63 = vld [vmem:[#allocation3 + $0x10] sm:$0xf] }
 0x308   : > { %v4843_v46 = vsel %vm11133_vm2, %v4838_v51, %v4842_v61  ;;  %v4861_v60 = vor.u32 %v4860_v10, %v4857_v41  ;;  %v4870_v25 = vrot.slane %v4868_v57, 4  ;;  %v4888_v53 = vshll.u32 %v4729_v13, 16 }
 0x309   : > { %9828 = vmatpush3.bf16.msra.mxu1 %v10715_v42  ;;  %v4728_v42 = vld [vmem:[#allocation2 + $0x60] sm:$0xf]  ;;  %v4848_v39 = vrot.slane %v4847_v5, 4  ;;  %v4876_v1 = vrot.slane %v4874_v17, 5  ;;  %v4892_v3 = vshrl.u32 %v4729_v13, 16  ;;  %v4898_v55 = vshll.u32 %v4730_v0, 16 }
 0x30a   : > { %9829 = vmatprep.subr.bf16.mxu1 %v10716_v31  ;;  %v4879_v9 = vshrl.u32 %v4728_v42, 16  ;;  %v4882_v32 = vshll.u32 %v4728_v42, 16  ;;  %v4862_v16 = vrot.slane %v4861_v60, 4  ;;  %v4871_v50 = vor.u32 %v4870_v25, %v4866_v36  ;;  %v10721_v17 = vld [vmem:[%s13831_s5 + $0x60] sm:$0xff]  }
 0x30b   : > { %v4853_v27 = vsel %vm11133_vm2, %v4848_v39, %v4852_v12  ;;  %v4890_v24 = vrot.slane %v4888_v53, 5  ;;  %v4894_v7 = vrot.slane %v4892_v3, 4  ;;  %v4900_v2 = vrot.slane %v4898_v55, 5 }
 0x30c   : > { %v4884_v38 = vrot.slane %v4882_v32, 5  ;;  %v8826_v28 = vcombine.low %v4843_v46, %v4853_v27  ;;  %v4872_v15 = vrot.slane %v4871_v50, 4  ;;  %v4903_v21 = vshrl.u32 %v4731_v58, 16  ;;  %v10722_v50 = vld [vmem:[%s13831_s5 + $0x68] sm:$0xff]  }
 0x30d   : > { %9830 = vmatpush3.bf16.msra.mxu1 %v10716_v31  ;;  %v4881_v31 = vrot.slane %v4879_v9, 4  ;;  %v4906_v6 = vshll.u32 %v4731_v58, 16  ;;  %v4912_v37 = vshll.u32 %v4732_v18, 16  ;;  %v4916_v40 = vshrl.u32 %v4732_v18, 16  ;;  %v12694_v9 = vld [vmem:[#allocation3 + $0x14] sm:$0x1] }
 0x30e   : > { %9847 = vmatprep.subr.bf16.mxu1 %v10717_v4  ;;  %v4877_v23 = vsel %vm11133_vm2, %v4872_v15, %v4876_v1  ;;  %v4895_v56 = vor.u32 %v4894_v7, %v4890_v24  ;;  %v4922_v43 = vshll.u32 %v4733_v14, 16  ;;  %v5215_v57 = vshll.u32 %v12669_v47, 16  ;;  %v12706_v15 = vld [vmem:[#allocation3 + $0x20] sm:$0x1] }
 0x30f   : > { %v4885_v44 = vor.u32 %v4884_v38, %v4881_v31  ;;  %v4908_v61 = vrot.slane %v4906_v6, 5  ;;  %v4914_v59 = vrot.slane %v4912_v37, 5  ;;  %v4918_v26 = vrot.slane %v4916_v40, 4  ;;  %v12703_v38 = vld [vmem:[#allocation3 + $0x1c] sm:$0xf] }
 0x310   : > { %9832 = vmatmul.mubr.bf16.vlgmr.msra.gmra.mrb[4].mxu1 %v12633_v29  ;;  %v4867_v29 = vsel %vm11133_vm2, %v4862_v16, %v4866_v36  ;;  %v4896_v48 = vrot.slane %v4895_v56, 4  ;;  %v4924_v10 = vrot.slane %v4922_v43, 5  ;;  %v5219_v36 = vshrl.u32 %v12669_v47, 16  ;;  %v12698_v16 = vld [vmem:[#allocation3 + $0x18] sm:$0xf] }
 0x311   : > { %9848 = vmatpush3.bf16.msra.mxu1 %v10717_v4  ;;  %9835 = vmatprep.mubr.bf16.mxu1 %v8824_v19  ;;  %v12664_v19 = vld [vmem:[#allocation3] sm:$0xf]  ;;  %v8827_v11 = vcombine.low %v4867_v29, %v4877_v23  ;;  %v4886_v30 = vrot.slane %v4885_v44, 4  ;;  %v4905_v4 = vrot.slane %v4903_v21, 4  ;;  %v4919_v41 = vor.u32 %v4918_v26, %v4914_v59  ;;  %v12722_v43 = vld [vmem:[#allocation3 + $0x28] sm:$0xf] }
 0x312   : > { %9849 = vmatprep.subr.bf16.mxu1 %v10718_v49  ;;  %v5206_v8 = vshrl.u32 %v12664_v19, 16  ;;  %v5209_v12 = vshll.u32 %v12664_v19, 16  ;;  %v4901_v42 = vsel %vm11133_vm2, %v4896_v48, %v4900_v2  ;;  %v5217_v46 = vrot.slane %v5215_v57, 5  ;;  %v12728_v57 = vld [vmem:[#allocation3 + $0x2c] sm:$0x1] }
 0x313   : > { %v4891_v62 = vsel %vm11133_vm2, %v4886_v30, %v4890_v24  ;;  %v4909_v51 = vor.u32 %v4908_v61, %v4905_v4  ;;  %v5221_v25 = vrot.slane %v5219_v36, 4  ;;  %v5225_v0 = vshll.u32 %v12671_v22, 16  ;;  %v12708_v24 = vld [vmem:[#allocation3 + $0x24] sm:$0xf] }
 0x314   : > { %v5208_v34 = vrot.slane %v5206_v8, 4  ;;  %v5211_v5 = vrot.slane %v5209_v12, 5  ;;  %v8828_v13 = vcombine.low %v4891_v62, %v4901_v42  ;;  %v5230_v58 = vshrl.u32 %v12673_v33, 16 }
 0x315   : > { %9850 = vmatpush3.bf16.msra.mxu1 %v10718_v49  ;;  %v4910_v49 = vrot.slane %v4909_v51, 4  ;;  %v5233_v32 = vshll.u32 %v12673_v33, 16  ;;  %v5239_v18 = vshll.u32 %v12679_v63, 16  ;;  %v5222_v27 = vor.u32 %v5221_v25, %v5217_v46 }
 0x316   : > { %9851 = vmatprep.subr.bf16.mxu1 %v10719_v52  ;;  %v5212_v60 = vor.u32 %v5211_v5, %v5208_v34  ;;  %v5227_v31 = vrot.slane %v5225_v0, 5  ;;  %v5232_v55 = vrot.slane %v5230_v58, 4  ;;  %v5243_v29 = vshrl.u32 %v12679_v63, 16  ;;  %v12731_v34 = vld [vmem:[#allocation3 + $0x30] sm:$0xf] }
 0x317   : > { %v4915_v39 = vsel %vm11133_vm2, %v4910_v49, %v4914_v59  ;;  %v5223_v7 = vrot.slane %v5222_v27, 4  ;;  %v5249_v2 = vshll.u32 %v12694_v9, 16  ;;  %v5254_v14 = vshrl.u32 %v12698_v16, 16  ;;  %v12734_v49 = vld [vmem:[#allocation3 + $0x34] sm:$0xf] }
 0x318   : > { %9836 = vmatmul.mubr.bf16.gmra.mrb[8].mxu1 %v8825_v35  ;;  %v4920_v35 = vrot.slane %v4919_v41, 4  ;;  %v5213_v3 = vrot.slane %v5212_v60, 4  ;;  %v5245_v23 = vrot.slane %v5243_v29, 4  ;;  %v5257_v6 = vshll.u32 %v12698_v16, 16  ;;  %v12742_v58 = vld [vmem:[#allocation3 + $0x38] sm:$0x1] }
 0x319   : > { %9852 = vmatpush3.bf16.msra.mxu1 %v10719_v52  ;;  %9839 = vmatprep.mubr.bf16.mxu1 %v8826_v28  ;;  %v5235_v52 = vrot.slane %v5233_v32, 5  ;;  %v5241_v28 = vrot.slane %v5239_v18, 5  ;;  %v5263_v37 = vshll.u32 %v12703_v38, 16  ;;  %v5228_v40 = vsel %vm11133_vm2, %v5223_v7, %v5227_v31  ;;  %v12754_v29 = vld [vmem:[#allocation3 + $0x3c] sm:$0xf] }
 0x31a   : > { %9853 = vmatprep.subr.bf16.mxu1 %v10720_v20  ;;  %v4925_v1 = vsel %vm11133_vm2, %v4920_v35, %v4924_v10  ;;  %v5218_v44 = vsel %vm11133_vm2, %v5213_v3, %v5217_v46  ;;  %v5256_v30 = vrot.slane %v5254_v14, 4  ;;  %v5267_v56 = vshrl.u32 %v12703_v38, 16  ;;  %v10724_v35 = vld [vmem:[%s13831_s5 + $0x78] sm:$0xff]  }
 0x31b   : > { %v8829_v53 = vcombine.low %v4915_v39, %v4925_v1  ;;  %v5236_v21 = vor.u32 %v5235_v52, %v5232_v55  ;;  %v8856_v4 = vcombine.low %v5218_v44, %v5228_v40  ;;  %v5246_v59 = vor.u32 %v5245_v23, %v5241_v28 }
 0x31c   : > { %v5259_v26 = vrot.slane %v5257_v6, 5  ;;  %v5265_v62 = vrot.slane %v5263_v37, 5  ;;  %v5269_v48 = vrot.slane %v5267_v56, 4  ;;  %v5273_v8 = vshll.u32 %v12706_v15, 16 }
 0x31d   : > { %9854 = vmatpush3.bf16.msra.mxu1 %v10720_v20  ;;  %v5251_v20 = vrot.slane %v5249_v2, 5  ;;  %v5237_v61 = vrot.slane %v5236_v21, 4  ;;  %v5278_v12 = vshrl.u32 %v12708_v24, 16  ;;  %v5247_v41 = vrot.slane %v5246_v59, 4  ;;  %v12760_v21 = vld [vmem:[#allocation3 + $0x40] sm:$0xf] }
 0x31e   : > { %9855 = vmatprep.subr.bf16.mxu1 %v10721_v17  ;;  %v5260_v10 = vor.u32 %v5259_v26, %v5256_v30  ;;  %v5281_v42 = vshll.u32 %v12708_v24, 16  ;;  %v5270_v5 = vor.u32 %v5269_v48, %v5265_v62  ;;  %v5275_v36 = vrot.slane %v5273_v8, 5  ;;  %v12775_v8 = vld [vmem:[#allocation3 + $0x48] sm:$0xf] }
 0x31f   : > { %v5242_v51 = vsel %vm11133_vm2, %v5237_v61, %v5241_v28  ;;  %v5252_v46 = vsel %vm11133_vm2, %v5247_v41, %v5251_v20  ;;  %v5291_v0 = vshrl.u32 %v12722_v43, 16  ;;  %v5297_v32 = vshll.u32 %v12728_v57, 16  ;;  %v10726_v20 = vld [vmem:[%s13831_s5 + $0x8] sm:$0xff]  }
 0x320   : > { %9840 = vmatmul.mubr.bf16.gmra.mrb[12].mxu1 %v8827_v11  ;;  %v10723_v11 = vld [vmem:[%s13831_s5 + $0x70] sm:$0xff]   ;;  %v5261_v60 = vrot.slane %v5260_v10, 4  ;;  %v5283_v25 = vrot.slane %v5281_v42, 5  ;;  %v5271_v39 = vrot.slane %v5270_v5, 4  ;;  %v8857_v18 = vcombine.low %v5242_v51, %v5252_v46 }
 0x321   : > { %9856 = vmatpush3.bf16.msra.mxu1 %v10721_v17  ;;  %9843 = vmatprep.mubr.bf16.mxu1 %v8828_v13  ;;  %v5280_v17 = vrot.slane %v5278_v12, 4  ;;  %v5287_v13 = vshll.u32 %v12722_v43, 16  ;;  %v5293_v3 = vrot.slane %v5291_v0, 4  ;;  %v5302_v27 = vshrl.u32 %v12731_v34, 16  ;;  %v12777_v12 = vld [vmem:[#allocation3 + $0x4c] sm:$0xf] }
 0x322   : > { %9857 = vmatprep.subr.bf16.mxu1 %v10722_v50  ;;  %v5266_v31 = vsel %vm11133_vm2, %v5261_v60, %v5265_v62  ;;  %v5276_v55 = vsel %vm11133_vm2, %v5271_v39, %v5275_v36  ;;  %v5305_v52 = vshll.u32 %v12731_v34, 16  ;;  %v5311_v28 = vshll.u32 %v12734_v49, 16  ;;  %v12786_v39 = vld [vmem:[#allocation3 + $0x54] sm:$0xf] }
 0x323   : > { %v12744_v1 = vrot.slane %v5287_v13, 5  ;;  %v5299_v2 = vrot.slane %v5297_v32, 5  ;;  %v5304_v14 = vrot.slane %v5302_v27, 4  ;;  %v5315_v37 = vshrl.u32 %v12734_v49, 16  ;;  %v12792_v27 = vld [vmem:[#allocation3 + $0x58] sm:$0xf] }
 0x324   : > { %v5307_v23 = vrot.slane %v5305_v52, 5  ;;  %v5313_v6 = vrot.slane %v5311_v28, 5  ;;  %v5321_v40 = vshll.u32 %v12742_v58, 16  ;;  %v8858_v30 = vcombine.low %v5266_v31, %v5276_v55 }
 0x325   : > { %9858 = vmatpush3.bf16.msra.mxu1 %v10722_v50  ;;  %v5284_v50 = vor.u32 %v5283_v25, %v5280_v17  ;;  %v5294_v7 = vor.u32 %v5293_v3, %v12744_v1  ;;  %v5329_v61 = vshll.u32 %v12754_v29, 16  ;;  %v5317_v62 = vrot.slane %v5315_v37, 4 }
 0x326   : > { %9859 = vmatprep.subr.bf16.mxu1 %v10723_v11  ;;  %v5308_v26 = vor.u32 %v5307_v23, %v5304_v14  ;;  %v5335_v48 = vshll.u32 %v12760_v21, 16  ;;  %v5323_v51 = vrot.slane %v5321_v40, 5  ;;  %v5339_v42 = vshrl.u32 %v12760_v21, 16  ;;  %v12800_v14 = vld [vmem:[#allocation3 + $0x5c] sm:$0x1] }
 0x327   : > { %v5285_v44 = vrot.slane %v5284_v50, 4  ;;  %v5295_v56 = vrot.slane %v5294_v7, 4  ;;  %v5331_v10 = vrot.slane %v5329_v61, 5  ;;  %v5318_v17 = vor.u32 %v5317_v62, %v5313_v6 }
 0x328   : > { %9844 = vmatmul.mubr.bf16.gmra.mrb[16].mxu1 %v8829_v53  ;;  %v10725_v53 = vld [vmem:[%s13831_s5] sm:$0xff]   ;;  %v5309_v36 = vrot.slane %v5308_v26, 4  ;;  %v5337_v13 = vrot.slane %v5335_v48, 5  ;;  %v5341_v60 = vrot.slane %v5339_v42, 4  ;;  %v5350_v0 = vshrl.u32 %v12775_v8, 16  ;;  %v10728_v26 = vld [vmem:[%s13831_s5 + $0x18] sm:$0xff]  }
 0x329   : > { %9860 = vmatpush3.bf16.msra.mxu1 %v10723_v11  ;;  %9863 = vmatprep.mubr.bf16.mxu1 %v8856_v4  ;;  %v12767_v11 = vld [vmem:[#allocation3 + $0x44] sm:$0x1]  ;;  %v5326_v4 = vshrl.u32 %v12754_v29, 16  ;;  %v5290_v59 = vsel %vm11133_vm2, %v5285_v44, %v12744_v1  ;;  %v5300_v5 = vsel %vm11133_vm2, %v5295_v56, %v5299_v2  ;;  %v5319_v32 = vrot.slane %v5318_v17, 4 }
 0x32a   : > { %9861 = vmatprep.subr.bf16.mxu1 %v10724_v35  ;;  %v5345_v25 = vshll.u32 %v12767_v11, 16  ;;  %v5314_v1 = vsel %vm11133_vm2, %v5309_v36, %v5313_v6  ;;  %v5353_v50 = vshll.u32 %v12775_v8, 16  ;;  %v5359_v3 = vshll.u32 %v12777_v12, 16 }
 0x32b   : > { %v5328_v41 = vrot.slane %v5326_v4, 4  ;;  %v5342_v55 = vor.u32 %v5341_v60, %v5337_v13  ;;  %v5352_v28 = vrot.slane %v5350_v0, 4  ;;  %v5363_v2 = vshrl.u32 %v12777_v12, 16 }
 0x32c   : > { %v5347_v52 = vrot.slane %v5345_v25, 5  ;;  %v5355_v44 = vrot.slane %v5353_v50, 5  ;;  %v5361_v7 = vrot.slane %v5359_v3, 5  ;;  %v8859_v23 = vcombine.low %v5290_v59, %v5300_v5  ;;  %v10729_v25 = vld [vmem:[%s13831_s5 + $0x20] sm:$0xff]  }
 0x32d   : > { %9862 = vmatpush3.bf16.msra.mxu1 %v10724_v35  ;;  %v12782_v35 = vld [vmem:[#allocation3 + $0x50] sm:$0x1]  ;;  %v5332_v46 = vor.u32 %v5331_v10, %v5328_v41  ;;  %v5343_v37 = vrot.slane %v5342_v55, 4  ;;  %v5365_v56 = vrot.slane %v5363_v2, 4  ;;  %v5374_v4 = vshrl.u32 %v12786_v39, 16 }
 0x32e   : > { %9879 = vmatprep.subr.bf16.mxu1 %v10725_v53  ;;  %v5369_v40 = vshll.u32 %v12782_v35, 16  ;;  %v5377_v61 = vshll.u32 %v12786_v39, 16  ;;  %v5383_v48 = vshll.u32 %v12792_v27, 16  ;;  %v5387_v59 = vshrl.u32 %v12792_v27, 16 }
 0x32f   : > { %v5333_v31 = vrot.slane %v5332_v46, 4  ;;  %v5366_v41 = vor.u32 %v5365_v56, %v5361_v7  ;;  %v5376_v10 = vrot.slane %v5374_v4, 4  ;;  %v5393_v36 = vshll.u32 %v12800_v14, 16 }
 0x330   : > { %9864 = vmatmul.mubr.bf16.vlgmr.msra.gmra.mrb[20].mxu1 %v8857_v18  ;;  %v10727_v18 = vld [vmem:[%s13831_s5 + $0x10] sm:$0xff]   ;;  %v5371_v62 = vrot.slane %v5369_v40, 5  ;;  %v5385_v42 = vrot.slane %v5383_v48, 5  ;;  %v5389_v5 = vrot.slane %v5387_v59, 4  ;;  %v5348_v46 = vsel %vm11133_vm2, %v5343_v37, %v5347_v52 }
 0x331   : > { %9880 = vmatpush3.bf16.msra.mxu1 %v10725_v53  ;;  %9867 = vmatprep.mubr.bf16.mxu1 %v8858_v30  ;;  %v5324_v53 = vsel %vm11133_vm2, %v5319_v32, %v5323_v51  ;;  %v5356_v30 = vor.u32 %v5355_v44, %v5352_v28  ;;  %v5338_v17 = vsel %vm11133_vm2, %v5333_v31, %v5337_v13  ;;  %v5367_v60 = vrot.slane %v5366_v41, 4  ;;  %v5785_v28 = vld [vmem:[#allocation3 + $0xc] sm:$0xe] }
 0x332   : > { %9881 = vmatprep.subr.bf16.mxu1 %v10726_v20  ;;  %v8860_v6 = vcombine.low %v5314_v1, %v5324_v53  ;;  %v5390_v32 = vor.u32 %v5389_v5, %v5385_v42  ;;  %v5395_v50 = vrot.slane %v5393_v36, 5  ;;  %v8861_v13 = vcombine.low %v5338_v17, %v5348_v46  ;;  %v10730_v53 = vld [vmem:[%s13831_s5 + $0x28] sm:$0xff]   ;;  %v10731_v5 = vld [vmem:[%s13831_s5 + $0x30] sm:$0xff]  }
 0x333   : > { %v5357_v51 = vrot.slane %v5356_v30, 4  ;;  %v5372_v3 = vsel %vm11133_vm2, %v5367_v60, %v5371_v62  ;;  %v8872_v52 = vcombine.low %v12664_v19, %v12669_v47  ;;  %v5810_v2 = vrot.slane %v12669_v47, 5  ;;  %v5786_v62 = vld [vmem:[#allocation3 + $0x18] sm:$0xe] }
 0x334   : > { %v5391_v55 = vrot.slane %v5390_v32, 4  ;;  %v8889_v40 = vrot.slane %v5785_v28, 9  ;;  %v5817_v30 = vrot.slane %v12679_v63, 5  ;;  %v5824_v41 = vrot.slane %v12703_v38, 5  ;;  %v5788_v32 = vld [vmem:[#allocation3 + $0x30] sm:$0xe] }
 0x335   : > { %9882 = vmatpush3.bf16.msra.mxu1 %v10726_v20  ;;  %v5379_v20 = vrot.slane %v5377_v61, 5  ;;  %v5362_v0 = vsel %vm11133_vm2, %v5357_v51, %v5361_v7  ;;  %v5812_v61 = vrot.slane %v5810_v2, 4  ;;  %v8890_v51 = vrot.slane %v5786_v62, 9 }
 0x336   : > { %9883 = vmatprep.subr.bf16.mxu1 %v10727_v18  ;;  %v8862_v44 = vcombine.low %v5362_v0, %v5372_v3  ;;  %v5396_v37 = vsel %vm11133_vm2, %v5391_v55, %v5395_v50  ;;  %v12841_v48 = vsel %vm11290_vm5, %v8889_v40, %v5817_v30  ;;  %v5819_v59 = vrot.slane %v5817_v30, 4  ;;  %v5789_v50 = vld [vmem:[#allocation3 + $0x3c] sm:$0xe]  ;;  %v10732_v3 = vld [vmem:[%s13831_s5 + $0x38] sm:$0xff]  }
 0x337   : > { %v5380_v1 = vor.u32 %v5379_v20, %v5376_v10  ;;  %v5827_v20 = vrot.slane %v12706_v15, 5  ;;  %v12861_v46 = vsel %vm11290_vm5, %v8890_v51, %v5824_v41  ;;  %v5826_v15 = vrot.slane %v5824_v41, 4  ;;  %v10735_v51 = vld [vmem:[%s13831_s5 + $0x80] sm:$0xff]  }
 0x338   : > { %9868 = vmatmul.mubr.bf16.gmra.mrb[24].mxu1 %v8859_v23  ;;  %v5813_v23 = vrot.slane %v12671_v22, 5  ;;  %v5787_v22 = vld [vmem:[#allocation3 + $0x24] sm:$0xe]  ;;  %v5841_v55 = vrot.slane %v12742_v58, 5 }
 0x339   : > { %9884 = vmatpush3.bf16.msra.mxu1 %v10727_v18  ;;  %9871 = vmatprep.mubr.bf16.mxu1 %v8860_v6  ;;  %v5784_v18 = vld [vmem:[#allocation3] sm:$0xe]  ;;  %v5381_v31 = vrot.slane %v5380_v1, 4  ;;  %v5834_v1 = vrot.slane %v12728_v57, 5 }
 0x33a   : > { %9885 = vmatprep.subr.bf16.mxu1 %v10728_v26  ;;  %v8888_v7 = vrot.slane %v5784_v18, 9  ;;  %v12846_v10 = vsel %vm11290_vm5, %v5812_v61, %v5813_v23  ;;  %v12875_v18 = vsel %vm11290_vm5, %v5826_v15, %v5827_v20  ;;  %v5852_v61 = vrot.slane %v12777_v12, 5  ;;  %v10736_v15 = vld [vmem:[%s13831_s5 + $0x88] sm:$0xff]  }
 0x33b   : > { %v5386_v6 = vsel %vm11133_vm2, %v5381_v31, %v5385_v42  ;;  %v5831_v42 = vrot.slane %v12722_v43, 5  ;;  %v5838_v31 = vrot.slane %v12734_v49, 5  ;;  %v8914_v28 = vcombine.low %v12861_v46, %v12875_v18  ;;  %v10757_v46 = vld [vmem:[#allocation3 + $0xc] sm:$0xff]  }
 0x33c   : > { %v8863_v56 = vcombine.low %v5386_v6, %v5396_v37  ;;  %v12836_v4 = vsel %vm11290_vm5, %v8888_v7, %v5810_v2  ;;  %v5845_v7 = vrot.slane %v12760_v21, 5  ;;  %v5790_v6 = vld [vmem:[#allocation3 + $0x48] sm:$0xe]  ;;  %v5854_v20 = vrot.slane %v5852_v61, 4  ;;  %v10759_v18 = vld [vmem:[%s13831_s5 + $0x100] sm:$0xff]  }
 0x33d   : > { %9886 = vmatpush3.bf16.msra.mxu1 %v10728_v26  ;;  %v5820_v26 = vrot.slane %v12694_v9, 5  ;;  %v8891_v9 = vrot.slane %v5787_v22, 9  ;;  %v8912_v36 = vcombine.low %v12836_v4, %v12846_v10  ;;  %v5833_v0 = vrot.slane %v5831_v42, 4  ;;  %v10753_v4 = vld [vmem:[%s13831_s5 + $0xe0] sm:$0xff]   ;;  %v10755_v10 = vld [vmem:[%s13831_s5 + $0xf0] sm:$0xff]  }
 0x33e   : > { %9887 = vmatprep.subr.bf16.mxu1 %v10729_v25  ;;  %v5840_v58 = vrot.slane %v5838_v31, 4  ;;  %v5847_v40 = vrot.slane %v5845_v7, 4  ;;  %v8894_v30 = vrot.slane %v5790_v6, 9  ;;  %v5855_v22 = vrot.slane %v12782_v35, 5 }
 0x33f   : > { %v12857_v17 = vsel %vm11290_vm5, %v5819_v59, %v5820_v26  ;;  %v12883_v57 = vsel %vm11290_vm5, %v5833_v0, %v5834_v1  ;;  %v5791_v26 = vld [vmem:[#allocation3 + $0x54] sm:$0xe] }
 0x340   : > { %9872 = vmatmul.mubr.bf16.gmra.mrb[28].mxu1 %v8861_v13  ;;  %v8913_v60 = vcombine.low %v12841_v48, %v12857_v17  ;;  %v8892_v13 = vrot.slane %v5788_v32, 9  ;;  %v12900_v62 = vsel %vm11290_vm5, %v5840_v58, %v5841_v55  ;;  %v8895_v59 = vrot.slane %v5791_v26, 9  ;;  %v10754_v48 = vld [vmem:[%s13831_s5 + $0xe8] sm:$0xff]   ;;  %v6317_v17 = vld [vmem:[#allocation3 + $0xc] sm:$0xf]  ;;  %v10763_v26 = vld [vmem:[%s13831_s5 + $0x110] sm:$0xff]  }
 0x341   : > { %9888 = vmatpush3.bf16.msra.mxu1 %v10729_v25  ;;  %9875 = vmatprep.mubr.bf16.mxu1 %v8862_v44  ;;  %v12867_v25 = vsel %vm11290_vm5, %v8891_v9, %v5831_v42  ;;  %v8893_v44 = vrot.slane %v5789_v50, 9  ;;  %v12918_v35 = vsel %vm11290_vm5, %v8894_v30, %v5852_v61  ;;  %v5862_v9 = vrot.slane %v12800_v14, 5  ;;  %v10758_v55 = vld [vmem:[#allocation3 + $0x18] sm:$0xff]  }
 0x342   : > { %9889 = vmatprep.subr.bf16.mxu1 %v10730_v53  ;;  %v8915_v2 = vcombine.low %v12867_v25, %v12883_v57  ;;  %v12890_v23 = vsel %vm11290_vm5, %v8892_v13, %v5838_v31  ;;  %v12929_v42 = vsel %vm11290_vm5, %v5854_v20, %v5855_v22  ;;  %v8874_v14 = vcombine.low %v12698_v16, %v12703_v38  ;;  %v10740_v16 = vld [vmem:[%s13831_s5 + $0x98] sm:$0xff]   ;;  %v10743_v38 = vld [vmem:[%s13831_s5 + $0xa0] sm:$0xff]   ;;  %v10760_v57 = vld [vmem:[%s13831_s5 + $0x108] sm:$0xff]  }
 0x343   : > { %v12895_v37 = vsel %vm11290_vm5, %v8893_v44, %v5845_v7  ;;  %v8918_v0 = vcombine.low %v12918_v35, %v12929_v42  ;;  %v8876_v50 = vcombine.low %v12731_v34, %v12734_v49  ;;  %v10744_v34 = vld [vmem:[%s13831_s5 + $0xa8] sm:$0xff]   ;;  %v10747_v49 = vld [vmem:[%s13831_s5 + $0xb0] sm:$0xff]   ;;  %v6342_v25 = vshrl.u32 %v6317_v17, 16 }
 0x344   : > { %v6320_v44 = vld [vmem:[#allocation3 + $0x18] sm:$0xf]  ;;  %v13031_v58 = vld [vmem:[#allocation3 + $0x1c] sm:$0xf] }
 0x345   : > { %9890 = vmatpush3.bf16.msra.mxu1 %v10730_v53  ;;  %v5848_v53 = vrot.slane %v12767_v11, 5  ;;  %v5859_v11 = vrot.slane %v12792_v27, 5  ;;  %v6344_v7 = vrot.slane %v6342_v25, 4  ;;  %v6375_v30 = vshll.u32 %v13031_v58, 16 }
 0x346   : > { %9891 = vmatprep.subr.bf16.mxu1 %v10731_v5  ;;  %v6379_v61 = vshrl.u32 %v13031_v58, 16 }
 0x347   : > { %v12914_v41 = vsel %vm11290_vm5, %v5847_v40, %v5848_v53  ;;  %v12924_v47 = vsel %vm11290_vm5, %v8895_v59, %v5859_v11  ;;  %v6369_v40 = vshll.u32 %v6320_v44, 16  ;;  %v13044_v20 = vrot.slane %v6375_v30, 5 }
 0x348   : > { %9876 = vmatmul.mubr.bf16.gmra.mrb[32].mxu1 %v8863_v56  ;;  %v8916_v56 = vcombine.low %v12890_v23, %v12900_v62  ;;  %v8917_v19 = vcombine.low %v12895_v37, %v12914_v41  ;;  %v13029_v23 = vld [vmem:[#allocation3 + $0x14] sm:$0x1]  ;;  %v6366_v37 = vshrl.u32 %v6320_v44, 16 }
 0x349   : > { %9892 = vmatpush3.bf16.msra.mxu1 %v10731_v5  ;;  %9895 = vmatprep.mubr.bf16.mxu1 %v8872_v52  ;;  %v5861_v52 = vrot.slane %v5859_v11, 4  ;;  %v8873_v5 = vcombine.low %v12673_v33, %v12679_v63  ;;  %v10739_v33 = vld [vmem:[%s13831_s5 + $0x90] sm:$0xff]   ;;  %v8875_v63 = vcombine.low %v12708_v24, %v12722_v43  ;;  %v8877_v24 = vcombine.low %v12754_v29, %v12760_v21  ;;  %v10748_v21 = vld [vmem:[%s13831_s5 + $0xb8] sm:$0xff]   ;;  %v10762_v11 = vld [vmem:[#allocation3 + $0x30] sm:$0xff]  }
 0x34a   : > { %9893 = vmatprep.subr.bf16.mxu1 %v10732_v3  ;;  %v8878_v43 = vcombine.low %v12775_v8, %v12777_v12  ;;  %v8879_v29 = vcombine.low %v12786_v39, %v12792_v27  ;;  %v10749_v8 = vld [vmem:[%s13831_s5 + $0xc0] sm:$0xff]   ;;  %v10750_v12 = vld [vmem:[%s13831_s5 + $0xc8] sm:$0xff]   ;;  %v10751_v39 = vld [vmem:[%s13831_s5 + $0xd0] sm:$0xff]   ;;  %v6361_v59 = vshll.u32 %v13029_v23, 16  ;;  %v6368_v41 = vrot.slane %v6366_v37, 4 }
 0x34b   : > { %v12940_v1 = vsel %vm11290_vm5, %v5861_v52, %v5862_v9  ;;  %v10752_v27 = vld [vmem:[%s13831_s5 + $0xd8] sm:$0xff]   ;;  %v6371_v35 = vrot.slane %v6369_v40, 5  ;;  %v13083_v37 = vld [vmem:[#allocation3 + $0x38] sm:$0x1] }
 0x34c   : > { %v8919_v32 = vcombine.low %v12924_v47, %v12940_v1  ;;  %v6323_v47 = vld [vmem:[#allocation3 + $0x24] sm:$0xf]  ;;  %v10764_v52 = vld [vmem:[%s13831_s5 + $0x118] sm:$0xff]  }
 0x34d   : > { %9894 = vmatpush3.bf16.msra.mxu1 %v10732_v3  ;;  %v6345_v3 = vshll.u32 %v6317_v17, 16  ;;  %v13049_v9 = vld [vmem:[#allocation3 + $0x28] sm:$0xf]  ;;  %v6390_v1 = vshrl.u32 %v6323_v47, 16 }
 0x34e   : > { %9911 = vmatprep.subr.bf16.mxu1 %v10735_v51 }
 0x350   : > { %9896 = vmatmul.mubr.bf16.vlgmr.msra.gmra.mrb[20].mxu1 %v8873_v5 }
 0x351   : > { %9912 = vmatpush3.bf16.msra.mxu1 %v10735_v51  ;;  %9899 = vmatprep.mubr.bf16.mxu1 %v8874_v14  ;;  %v10765_v51 = vld [vmem:[#allocation3 + $0x3c] sm:$0xff]   ;;  %v6393_v14 = vshll.u32 %v6323_v47, 16 }
 0x352   : > { %9913 = vmatprep.subr.bf16.mxu1 %v10736_v15 }
 0x355   : > { %9914 = vmatpush3.bf16.msra.mxu1 %v10736_v15  ;;  %v6363_v15 = vrot.slane %v6361_v59, 5 }
 0x356   : > { %9915 = vmatprep.subr.bf16.mxu1 %v10739_v33 }
 0x358   : > { %9900 = vmatmul.mubr.bf16.gmra.mrb[24].mxu1 %v8875_v63  ;;  %v6399_v63 = vshll.u32 %v13049_v9, 16 }
 0x359   : > { %9916 = vmatpush3.bf16.msra.mxu1 %v10739_v33  ;;  %9903 = vmatprep.mubr.bf16.mxu1 %v8876_v50  ;;  %v6403_v50 = vshrl.u32 %v13049_v9, 16 }
 0x35a   : > { %9917 = vmatprep.subr.bf16.mxu1 %v10740_v16 }
 0x35b   : > { %v6405_v17 = vrot.slane %v6403_v50, 4 }
 0x35d   : > { %9918 = vmatpush3.bf16.msra.mxu1 %v10740_v16  ;;  %v10766_v16 = vld [vmem:[#allocation3 + $0x48] sm:$0xff]  }
 0x35e   : > { %9919 = vmatprep.subr.bf16.mxu1 %v10743_v38 }
 0x360   : > { %9904 = vmatmul.mubr.bf16.gmra.mrb[28].mxu1 %v8877_v24  ;;  %v10769_v24 = vld [vmem:[#allocation3 + $0x54] sm:$0xff]  }
 0x361   : > { %9920 = vmatpush3.bf16.msra.mxu1 %v10743_v38  ;;  %9907 = vmatprep.mubr.bf16.mxu1 %v8878_v43  ;;  %v10767_v38 = vld [vmem:[%s13831_s5 + $0x120] sm:$0xff]  }
 0x362   : > { %9921 = vmatprep.subr.bf16.mxu1 %v10744_v34 }
 0x365   : > { %9922 = vmatpush3.bf16.msra.mxu1 %v10744_v34  ;;  %v6326_v34 = vld [vmem:[#allocation3 + $0x30] sm:$0xf] }
 0x366   : > { %9923 = vmatprep.subr.bf16.mxu1 %v10747_v49  ;;  %v6414_v25 = vshrl.u32 %v6326_v34, 16 }
 0x368   : > { %9908 = vmatmul.mubr.bf16.gmra.mrb[32].mxu1 %v8879_v29  ;;  %v10768_v29 = vld [vmem:[%s13831_s5 + $0x128] sm:$0xff]  }
 0x369   : > { %9924 = vmatpush3.bf16.msra.mxu1 %v10747_v49  ;;  %9927 = vmatprep.mubr.bf16.mxu1 %v8912_v36  ;;  %v10756_v36 = vld [vmem:[%s13831_s5 + $0xf8] sm:$0xff]   ;;  %v13058_v49 = vld [vmem:[#allocation3 + $0x34] sm:$0xf] }
 0x36a   : > { %9925 = vmatprep.subr.bf16.mxu1 %v10748_v21 }
 0x36d   : > { %9926 = vmatpush3.bf16.msra.mxu1 %v10748_v21 }
 0x36e   : > { %9943 = vmatprep.subr.bf16.mxu1 %v10749_v8 }
 0x370   : > { %9928 = vmatmul.mubr.bf16.vlgmr.msra.gmra.mrb[20].mxu1 %v8913_v60  ;;  %v13016_v60 = vld [vmem:[#allocation3 + $0x10] sm:$0xf] }
 0x371   : > { %9944 = vmatpush3.bf16.msra.mxu1 %v10749_v8  ;;  %9931 = vmatprep.mubr.bf16.mxu1 %v8914_v28  ;;  %v6351_v13 = vshll.u32 %v13016_v60, 16  ;;  %v6355_v31 = vshrl.u32 %v13016_v60, 16  ;;  %v10761_v28 = vld [vmem:[#allocation3 + $0x24] sm:$0xff]  }
 0x372   : > { %9945 = vmatprep.subr.bf16.mxu1 %v10750_v12 }
 0x373   : > { %v13033_v53 = vrot.slane %v6351_v13, 5  ;;  %v6357_v6 = vrot.slane %v6355_v31, 4  ;;  %v6427_v13 = vshrl.u32 %v13058_v49, 16 }
 0x375   : > { %9946 = vmatpush3.bf16.msra.mxu1 %v10750_v12  ;;  %v6358_v22 = vor.u32 %v6357_v6, %v13033_v53  ;;  %v13068_v12 = vld [vmem:[#allocation3 + $0x2c] sm:$0x1] }
 0x376   : > { %9947 = vmatprep.subr.bf16.mxu1 %v10751_v39 }
 0x377   : > { %v6359_v5 = vrot.slane %v6358_v22, 4  ;;  %v6332_v22 = vld [vmem:[#allocation3 + $0x48] sm:$0xf] }
 0x378   : > { %9932 = vmatmul.mubr.bf16.gmra.mrb[24].mxu1 %v8915_v2  ;;  %v6347_v2 = vrot.slane %v6345_v3, 5  ;;  %v6417_v3 = vshll.u32 %v6326_v34, 16 }
 0x379   : > { %9948 = vmatpush3.bf16.msra.mxu1 %v10751_v39  ;;  %9935 = vmatprep.mubr.bf16.mxu1 %v8916_v56  ;;  %v13042_v56 = vld [vmem:[#allocation3 + $0x20] sm:$0x1]  ;;  %v6364_v8 = vsel %vm11133_vm2, %v6359_v5, %v6363_v15  ;;  %v6392_v39 = vrot.slane %v6390_v1, 4  ;;  %v6433_v15 = vshll.u32 %v13083_v37, 16  ;;  %v13101_v1 = vld [vmem:[#allocation3 + $0x4c] sm:$0xf] }
 0x37a   : > { %9949 = vmatprep.subr.bf16.mxu1 %v10752_v27  ;;  %v6348_v62 = vor.u32 %v6347_v2, %v6344_v7  ;;  %v10771_v2 = vld [vmem:[%s13831_s5 + $0x130] sm:$0xff]   ;;  %v6471_v34 = vshll.u32 %v13101_v1, 16 }
 0x37c   : > { %v6349_v42 = vrot.slane %v6348_v62, 4  ;;  %v13090_v62 = vld [vmem:[#allocation3 + $0x44] sm:$0x1] }
 0x37d   : > { %9950 = vmatpush3.bf16.msra.mxu1 %v10752_v27  ;;  %v6395_v27 = vrot.slane %v6393_v14, 5  ;;  %v6462_v14 = vshrl.u32 %v6332_v22, 16 }
 0x37e   : > { %9951 = vmatprep.subr.bf16.mxu1 %v10753_v4  ;;  %v6354_v21 = vsel %vm11133_vm2, %v6349_v42, %v13033_v53 }
 0x37f   : > { %v8976_v53 = vcombine.low %v6354_v21, %v6364_v8 }
 0x380   : > { %9936 = vmatmul.mubr.bf16.gmra.mrb[28].mxu1 %v8917_v19  ;;  %v6381_v19 = vrot.slane %v6379_v61, 4  ;;  %v6416_v61 = vrot.slane %v6414_v25, 4 }
 0x381   : > { %9952 = vmatpush3.bf16.msra.mxu1 %v10753_v4  ;;  %9939 = vmatprep.mubr.bf16.mxu1 %v8918_v0  ;;  %v6385_v0 = vshll.u32 %v13042_v56, 16  ;;  %v6329_v4 = vld [vmem:[#allocation3 + $0x3c] sm:$0xf] }
 0x382   : > { %9953 = vmatprep.subr.bf16.mxu1 %v10754_v48  ;;  %v6382_v33 = vor.u32 %v6381_v19, %v13044_v20  ;;  %v6438_v31 = vshrl.u32 %v6329_v4, 16  ;;  %v10772_v19 = vld [vmem:[%s13831_s5 + $0x138] sm:$0xff]  }
 0x383   : > { %v6387_v43 = vrot.slane %v6385_v0, 5  ;;  %v6457_v0 = vshll.u32 %v13090_v62, 16 }
 0x385   : > { %9954 = vmatpush3.bf16.msra.mxu1 %v10754_v48 }
 0x386   : > { %9955 = vmatprep.subr.bf16.mxu1 %v10755_v10 }
 0x388   : > { %9940 = vmatmul.mubr.bf16.gmra.mrb[32].mxu1 %v8919_v32  ;;  %v6372_v32 = vor.u32 %v6371_v35, %v6368_v41  ;;  %v10770_v35 = vld [vmem:[#allocation3 + $0x60] sm:$0xff]  }
 0x389   : > { %9956 = vmatpush3.bf16.msra.mxu1 %v10755_v10  ;;  %9959 = vmatprep.mubr.bf16.mxu1 %v10757_v46  ;;  %v6383_v10 = vrot.slane %v6382_v33, 4  ;;  %v13072_v46 = vld [vmem:[#allocation3 + $0x40] sm:$0xf]  ;;  %v6335_v33 = vld [vmem:[#allocation3 + $0x54] sm:$0xf] }
 0x38a   : > { %9957 = vmatprep.subr.bf16.mxu1 %v10756_v36  ;;  %v6373_v48 = vrot.slane %v6372_v32, 4  ;;  %v6447_v44 = vshll.u32 %v13072_v46, 16  ;;  %v6451_v7 = vshrl.u32 %v13072_v46, 16 }
 0x38b   : > { %v6388_v30 = vsel %vm11133_vm2, %v6383_v10, %v6387_v43  ;;  %v6465_v43 = vshll.u32 %v6332_v22, 16  ;;  %v6435_v10 = vrot.slane %v6433_v15, 5 }
 0x38c   : > { %v6378_v40 = vsel %vm11133_vm2, %v6373_v48, %v13044_v20  ;;  %v6453_v42 = vrot.slane %v6451_v7, 4 }
 0x38d   : > { %9958 = vmatpush3.bf16.msra.mxu1 %v10756_v36  ;;  %v13070_v36 = vrot.slane %v6399_v63, 5  ;;  %v8977_v63 = vcombine.low %v6378_v40, %v6388_v30  ;;  %v13124_v30 = vld [vmem:[#allocation3 + $0x64] sm:$0xf] }
 0x38e   : > { %9975 = vmatprep.subr.bf16.mxu1 %v10759_v18  ;;  %v6523_v15 = vshrl.u32 %v13124_v30, 16 }
 0x38f   : > { %v6406_v6 = vor.u32 %v6405_v17, %v13070_v36 }
 0x390   : > { %9960 = vmatmul.mubr.bf16.vlgmr.msra.gmra.mrb[20].mxu1 %v10758_v55  ;;  %v6441_v55 = vshll.u32 %v6329_v4, 16  ;;  %v10773_v4 = vld [vmem:[%s13831_s5 + $0x140] sm:$0xff]  }
 0x391   : > { %9976 = vmatpush3.bf16.msra.mxu1 %v10759_v18  ;;  %9963 = vmatprep.mubr.bf16.mxu1 %v10761_v28  ;;  %v6423_v18 = vshll.u32 %v13058_v49, 16  ;;  %v6396_v28 = vor.u32 %v6395_v27, %v6392_v39  ;;  %v6407_v5 = vrot.slane %v6406_v6, 4  ;;  %v6486_v39 = vshrl.u32 %v6335_v33, 16 }
 0x392   : > { %9977 = vmatprep.subr.bf16.mxu1 %v10760_v57  ;;  %v6443_v41 = vrot.slane %v6441_v55, 5  ;;  %v6489_v27 = vshll.u32 %v6335_v33, 16  ;;  %v10774_v55 = vld [vmem:[%s13831_s5 + $0x148] sm:$0xff]  }
 0x393   : > { %v13092_v59 = vrot.slane %v6423_v18, 5  ;;  %v6397_v47 = vrot.slane %v6396_v28, 4  ;;  %v6488_v6 = vrot.slane %v6486_v39, 4 }
 0x394   : > { %v6491_v40 = vrot.slane %v6489_v27, 5 }
 0x395   : > { %9978 = vmatpush3.bf16.msra.mxu1 %v10760_v57  ;;  %v6409_v57 = vshll.u32 %v13068_v12, 16  ;;  %v6402_v21 = vsel %vm11133_vm2, %v6397_v47, %v13070_v36  ;;  %v13119_v36 = vld [vmem:[#allocation3 + $0x50] sm:$0x1] }
 0x396   : > { %9979 = vmatprep.subr.bf16.mxu1 %v10763_v26 }
 0x397   : > { %v6411_v20 = vrot.slane %v6409_v57, 5  ;;  %v6467_v57 = vrot.slane %v6465_v43, 5 }
 0x398   : > { %9964 = vmatmul.mubr.bf16.gmra.mrb[24].mxu1 %v10762_v11  ;;  %v6429_v11 = vrot.slane %v6427_v13, 4  ;;  %v6459_v13 = vrot.slane %v6457_v0, 5  ;;  %v10775_v0 = vld [vmem:[%s13831_s5 + $0x150] sm:$0xff]  }
 0x399   : > { %9980 = vmatpush3.bf16.msra.mxu1 %v10763_v26  ;;  %9967 = vmatprep.mubr.bf16.mxu1 %v10765_v51  ;;  %v6419_v26 = vrot.slane %v6417_v3, 5  ;;  %v6440_v51 = vrot.slane %v6438_v31, 4  ;;  %v6412_v8 = vsel %vm11133_vm2, %v6407_v5, %v6411_v20  ;;  %v6464_v31 = vrot.slane %v6462_v14, 4 }
 0x39a   : > { %9981 = vmatprep.subr.bf16.mxu1 %v10764_v52  ;;  %v6430_v50 = vor.u32 %v6429_v11, %v13092_v59  ;;  %v6519_v5 = vshll.u32 %v13124_v30, 16  ;;  %v6492_v14 = vor.u32 %v6491_v40, %v6488_v6  ;;  %v10778_v40 = vld [vmem:[%s13831_s5 + $0x168] sm:$0xff]  }
 0x39b   : > { %v6420_v32 = vor.u32 %v6419_v26, %v6416_v61  ;;  %v6468_v47 = vor.u32 %v6467_v57, %v6464_v31  ;;  %v6743_v57 = vld [vmem:[#allocation3 + $0xc] sm:$0xe] }
 0x39c   : > { %v6431_v3 = vrot.slane %v6430_v50, 4  ;;  %v6493_v39 = vrot.slane %v6492_v14, 4  ;;  %v10780_v14 = vld [vmem:[%s13831_s5 + $0x178] sm:$0xff]  }
 0x39d   : > { %9982 = vmatpush3.bf16.msra.mxu1 %v10764_v52  ;;  %v13097_v52 = vrot.slane %v6447_v44, 5  ;;  %v6421_v48 = vrot.slane %v6420_v32, 4  ;;  %v6473_v44 = vrot.slane %v6471_v34, 5  ;;  %v6469_v50 = vrot.slane %v6468_v47, 4  ;;  %v6744_v47 = vld [vmem:[#allocation3 + $0x18] sm:$0xe] }
 0x39e   : > { %9983 = vmatprep.subr.bf16.mxu1 %v10767_v38  ;;  %v6436_v11 = vsel %vm11133_vm2, %v6431_v3, %v6435_v10 }
 0x39f   : > { %v6426_v22 = vsel %vm11133_vm2, %v6421_v48, %v13092_v59  ;;  %v13148_v48 = vld [vmem:[#allocation3 + $0x68] sm:$0x1]  ;;  %v6474_v10 = vsel %vm11133_vm2, %v6469_v50, %v6473_v44  ;;  %v10781_v50 = vld [vmem:[%s13831_s5 + $0x180] sm:$0xff]  }
 0x3a0   : > { %9968 = vmatmul.mubr.bf16.gmra.mrb[28].mxu1 %v10766_v16  ;;  %v6444_v16 = vor.u32 %v6443_v41, %v6440_v51  ;;  %v6481_v51 = vshll.u32 %v13119_v36, 16  ;;  %v13132_v41 = vld [vmem:[#allocation3 + $0x5c] sm:$0x1]  ;;  %v8979_v33 = vcombine.low %v6426_v22, %v6436_v11 }
 0x3a1   : > { %9984 = vmatpush3.bf16.msra.mxu1 %v10767_v38  ;;  %9971 = vmatprep.mubr.bf16.mxu1 %v10769_v24  ;;  %v13104_v38 = vld [vmem:[#allocation3 + $0x58] sm:$0xf]  ;;  %v6454_v24 = vor.u32 %v6453_v42, %v13097_v52  ;;  %v6505_v32 = vshll.u32 %v13132_v41, 16 }
 0x3a2   : > { %9985 = vmatprep.subr.bf16.mxu1 %v10768_v29  ;;  %v6495_v17 = vshll.u32 %v13104_v38, 16  ;;  %v6499_v25 = vshrl.u32 %v13104_v38, 16  ;;  %v6445_v18 = vrot.slane %v6444_v16, 4 }
 0x3a3   : > { %v6455_v28 = vrot.slane %v6454_v24, 4  ;;  %v6483_v24 = vrot.slane %v6481_v51, 5  ;;  %v6784_v51 = vrot.slane %v13031_v58, 5 }
 0x3a4   : > { %v6497_v61 = vrot.slane %v6495_v17, 5  ;;  %v6501_v26 = vrot.slane %v6499_v25, 4 }
 0x3a5   : > { %9986 = vmatpush3.bf16.msra.mxu1 %v10768_v29  ;;  %v6475_v29 = vshrl.u32 %v13101_v1, 16  ;;  %v6786_v58 = vrot.slane %v6784_v51, 4 }
 0x3a6   : > { %9987 = vmatprep.subr.bf16.mxu1 %v10771_v2  ;;  %v6498_v31 = vsel %vm11133_vm2, %v6493_v39, %v6497_v61  ;;  %v6801_v39 = vrot.slane %v13083_v37, 5  ;;  %v6812_v37 = vrot.slane %v13101_v1, 5 }
 0x3a7   : > { %v6477_v7 = vrot.slane %v6475_v29, 4  ;;  %v6521_v29 = vrot.slane %v6519_v5, 5 }
 0x3a8   : > { %9972 = vmatmul.mubr.bf16.gmra.mrb[32].mxu1 %v10770_v35  ;;  %v6450_v35 = vsel %vm11133_vm2, %v6445_v18, %v13097_v52  ;;  %v6502_v52 = vor.u32 %v6501_v26, %v6497_v61  ;;  %v6529_v18 = vshll.u32 %v13148_v48, 16  ;;  %v8992_v26 = vrot.slane %v6743_v57, 9 }
 0x3a9   : > { %9988 = vmatpush3.bf16.msra.mxu1 %v10771_v2  ;;  %9991 = vmatprep.mubr.bf16.mxu1 %v8976_v53  ;;  %v6338_v2 = vld [vmem:[#allocation3 + $0x60] sm:$0xf]  ;;  %v8978_v53 = vcombine.low %v6402_v21, %v6412_v8  ;;  %v6478_v20 = vor.u32 %v6477_v7, %v6473_v44  ;;  %v6525_v21 = vrot.slane %v6523_v15, 4  ;;  %v10776_v8 = vld [vmem:[%s13831_s5 + $0x158] sm:$0xff]   ;;  %v6780_v61 = vrot.slane %v13029_v23, 5 }
 0x3aa   : > { %9989 = vmatprep.subr.bf16.mxu1 %v10772_v19  ;;  %v6510_v59 = vshrl.u32 %v6338_v2, 16  ;;  %v6513_v42 = vshll.u32 %v6338_v2, 16  ;;  %v6503_v27 = vrot.slane %v6502_v52, 4  ;;  %v6531_v6 = vrot.slane %v6529_v18, 5 }
 0x3ab   : > { %v6479_v16 = vrot.slane %v6478_v20, 4  ;;  %v6526_v3 = vor.u32 %v6525_v21, %v6521_v29  ;;  %v6791_v20 = vrot.slane %v13049_v9, 5  ;;  %v8993_v15 = vrot.slane %v6744_v47, 9 }
 0x3ac   : > { %v6512_v43 = vrot.slane %v6510_v59, 4  ;;  %v6515_v34 = vrot.slane %v6513_v42, 5  ;;  %v6745_v59 = vld [vmem:[#allocation3 + $0x24] sm:$0xe]  ;;  %v6814_v1 = vrot.slane %v6812_v37, 4 }
 0x3ad   : > { %9990 = vmatpush3.bf16.msra.mxu1 %v10772_v19  ;;  %v6460_v19 = vsel %vm11133_vm2, %v6455_v28, %v6459_v13  ;;  %v6484_v17 = vsel %vm11133_vm2, %v6479_v16, %v6483_v24  ;;  %v10777_v13 = vld [vmem:[%s13831_s5 + $0x160] sm:$0xff]   ;;  %v6777_v28 = vrot.slane %v13016_v60, 5  ;;  %v8994_v52 = vrot.slane %v6745_v59, 9  ;;  %v10787_v59 = vld [vmem:[%s13831_s5 + $0x1b0] sm:$0xff]  }
 0x3ae   : > { %10007 = vmatprep.subr.bf16.mxu1 %v10773_v4  ;;  %v6516_v25 = vor.u32 %v6515_v34, %v6512_v43  ;;  %v8981_v44 = vcombine.low %v6474_v10, %v6484_v17  ;;  %v6785_v9 = vsel %vm11290_vm5, %v8993_v15, %v6784_v51  ;;  %v6746_v24 = vld [vmem:[#allocation3 + $0x30] sm:$0xe]  ;;  %v6805_v43 = vrot.slane %v13072_v46, 5  ;;  %v6747_v34 = vld [vmem:[#allocation3 + $0x3c] sm:$0xe] }
 0x3af   : > { %v6779_v22 = vrot.slane %v6777_v28, 4  ;;  %v6792_v16 = vsel %vm11290_vm5, %v8994_v52, %v6791_v20  ;;  %v6808_v17 = vrot.slane %v13090_v62, 5  ;;  %v10791_v52 = vld [vmem:[%s13831_s5 + $0x1c0] sm:$0xff]  }
 0x3b0   : > { %9992 = vmatmul.mubr.bf16.vlgmr.msra.gmra.mrb[20].mxu1 %v8977_v63  ;;  %v8980_v63 = vcombine.low %v6450_v35, %v6460_v19  ;;  %v6517_v2 = vrot.slane %v6516_v25, 4  ;;  %v10779_v35 = vld [vmem:[%s13831_s5 + $0x170] sm:$0xff]   ;;  %v6778_v19 = vsel %vm11290_vm5, %v8992_v26, %v6777_v28  ;;  %v6807_v10 = vrot.slane %v6805_v43, 4 }
 0x3b1   : > { %10008 = vmatpush3.bf16.msra.mxu1 %v10773_v4  ;;  %9995 = vmatprep.mubr.bf16.mxu1 %v8978_v53  ;;  %v6507_v4 = vrot.slane %v6505_v32, 5  ;;  %v6527_v53 = vrot.slane %v6526_v3, 4  ;;  %v6781_v23 = vsel %vm11290_vm5, %v6779_v22, %v6780_v61  ;;  %v6793_v32 = vrot.slane %v6791_v20, 4  ;;  %v10783_v3 = vld [vmem:[%s13831_s5 + $0x190] sm:$0xff]   ;;  %v10785_v22 = vld [vmem:[%s13831_s5 + $0x1a0] sm:$0xff]  }
 0x3b2   : > { %10009 = vmatprep.subr.bf16.mxu1 %v10774_v55  ;;  %v6522_v60 = vsel %vm11133_vm2, %v6517_v2, %v6521_v29  ;;  %v9016_v5 = vcombine.low %v6778_v19, %v6781_v23  ;;  %v6809_v62 = vsel %vm11290_vm5, %v6807_v10, %v6808_v17  ;;  %v10784_v2 = vld [vmem:[%s13831_s5 + $0x198] sm:$0xff]   ;;  %v6829_v23 = vrot.slane %v13148_v48, 5  ;;  %v13278_v10 = vld [vmem:[#allocation3 + $0x20] sm:$0x1] }
 0x3b3   : > { %v6532_v11 = vsel %vm11133_vm2, %v6527_v53, %v6531_v6 }
 0x3b4   : > { %v8983_v42 = vcombine.low %v6522_v60, %v6532_v11  ;;  %v6750_v60 = vld [vmem:[#allocation3 + $0x60] sm:$0xe] }
 0x3b5   : > { %10010 = vmatpush3.bf16.msra.mxu1 %v10774_v55  ;;  %v6508_v55 = vsel %vm11133_vm2, %v6503_v27, %v6507_v4  ;;  %v10782_v27 = vld [vmem:[%s13831_s5 + $0x188] sm:$0xff]   ;;  %v8996_v4 = vrot.slane %v6747_v34, 9 }
 0x3b6   : > { %10011 = vmatprep.subr.bf16.mxu1 %v10775_v0  ;;  %v8982_v7 = vcombine.low %v6498_v31, %v6508_v55  ;;  %v6819_v31 = vrot.slane %v13104_v38, 5  ;;  %v6749_v55 = vld [vmem:[#allocation3 + $0x54] sm:$0xe]  ;;  %v10792_v34 = vld [vmem:[%s13831_s5 + $0x1c8] sm:$0xff]  }
 0x3b7   : > { %v6806_v18 = vsel %vm11290_vm5, %v8996_v4, %v6805_v43  ;;  %v8998_v53 = vrot.slane %v6749_v55, 9  ;;  %v10797_v55 = vld [vmem:[#allocation3 + $0x48] sm:$0xff]  }
 0x3b8   : > { %9996 = vmatmul.mubr.bf16.gmra.mrb[24].mxu1 %v8979_v33  ;;  %v6794_v33 = vrot.slane %v13068_v12, 5  ;;  %v9020_v57 = vcombine.low %v6806_v18, %v6809_v62  ;;  %v6821_v6 = vrot.slane %v6819_v31, 4 }
 0x3b9   : > { %10012 = vmatpush3.bf16.msra.mxu1 %v10775_v0  ;;  %9999 = vmatprep.mubr.bf16.mxu1 %v8980_v63  ;;  %v6787_v0 = vrot.slane %v13042_v56, 5  ;;  %v6798_v56 = vrot.slane %v13058_v49, 5  ;;  %v6820_v61 = vsel %vm11290_vm5, %v8998_v53, %v6819_v31  ;;  %v10794_v31 = vld [vmem:[#allocation3 + $0x3c] sm:$0xff]   ;;  %v10796_v53 = vld [vmem:[%s13831_s5 + $0x1d8] sm:$0xff]  }
 0x3ba   : > { %10013 = vmatprep.subr.bf16.mxu1 %v10776_v8  ;;  %v6795_v12 = vsel %vm11290_vm5, %v6793_v32, %v6794_v33  ;;  %v7284_v32 = vld [vmem:[#allocation3 + $0x18] sm:$0xf] }
 0x3bb   : > { %v6788_v63 = vsel %vm11290_vm5, %v6786_v58, %v6787_v0  ;;  %v9018_v21 = vcombine.low %v6792_v16, %v6795_v12  ;;  %v6800_v49 = vrot.slane %v6798_v56, 4  ;;  %v10789_v58 = vld [vmem:[#allocation3 + $0x18] sm:$0xff]   ;;  %v10793_v16 = vld [vmem:[#allocation3 + $0x30] sm:$0xff]   ;;  %v7309_v12 = vshrl.u32 %v7284_v32, 16 }
 0x3bc   : > { %v9017_v29 = vcombine.low %v6785_v9, %v6788_v63  ;;  %v10790_v63 = vld [vmem:[#allocation3 + $0x24] sm:$0xff]  }
 0x3bd   : > { %10014 = vmatpush3.bf16.msra.mxu1 %v10776_v8  ;;  %v8995_v8 = vrot.slane %v6746_v24, 9  ;;  %v6802_v25 = vsel %vm11290_vm5, %v6800_v49, %v6801_v39  ;;  %v7312_v24 = vshll.u32 %v7284_v32, 16  ;;  %v13273_v49 = vld [vmem:[#allocation3 + $0x28] sm:$0xf]  ;;  %v10795_v39 = vld [vmem:[%s13831_s5 + $0x1d0] sm:$0xff]  }
 0x3be   : > { %10015 = vmatprep.subr.bf16.mxu1 %v10777_v13  ;;  %v13314_v32 = vld [vmem:[#allocation3 + $0x40] sm:$0xf] }
 0x3bf   : > { %v6799_v46 = vsel %vm11290_vm5, %v8995_v8, %v6798_v56  ;;  %v13262_v56 = vld [vmem:[#allocation3 + $0x1c] sm:$0xf]  ;;  %v7287_v8 = vld [vmem:[#allocation3 + $0x24] sm:$0xf]  ;;  %v7314_v4 = vrot.slane %v7312_v24, 5 }
 0x3c0   : > { %10000 = vmatmul.mubr.bf16.gmra.mrb[28].mxu1 %v8981_v44  ;;  %v9019_v28 = vcombine.low %v6799_v46, %v6802_v25  ;;  %v7333_v17 = vshrl.u32 %v7287_v8, 16  ;;  %v7336_v46 = vshll.u32 %v7287_v8, 16  ;;  %v7342_v25 = vshll.u32 %v13273_v49, 16 }
 0x3c1   : > { %10016 = vmatpush3.bf16.msra.mxu1 %v10777_v13  ;;  %10003 = vmatprep.mubr.bf16.mxu1 %v8982_v7  ;;  %v6748_v13 = vld [vmem:[#allocation3 + $0x48] sm:$0xe]  ;;  %v6815_v7 = vrot.slane %v13119_v36, 5  ;;  %v6826_v36 = vrot.slane %v13124_v30, 5  ;;  %v10786_v30 = vld [vmem:[%s13831_s5 + $0x1a8] sm:$0xff]  }
 0x3c2   : > { %10017 = vmatprep.subr.bf16.mxu1 %v10778_v40  ;;  %v8997_v44 = vrot.slane %v6748_v13, 9 }
 0x3c3   : > { %v6816_v26 = vsel %vm11290_vm5, %v6814_v1, %v6815_v7  ;;  %v6828_v19 = vrot.slane %v6826_v36, 4  ;;  %v7290_v1 = vld [vmem:[#allocation3 + $0x30] sm:$0xf]  ;;  %v13291_v7 = vld [vmem:[#allocation3 + $0x34] sm:$0xf] }
 0x3c4   : > { %v6813_v38 = vsel %vm11290_vm5, %v8997_v44, %v6812_v37  ;;  %v7346_v37 = vshrl.u32 %v13273_v49, 16  ;;  %v7328_v44 = vshll.u32 %v13278_v10, 16 }
 0x3c5   : > { %10018 = vmatpush3.bf16.msra.mxu1 %v10778_v40  ;;  %v6822_v40 = vrot.slane %v13132_v41, 5  ;;  %v9021_v11 = vcombine.low %v6813_v38, %v6816_v26  ;;  %v6830_v20 = vsel %vm11290_vm5, %v6828_v19, %v6829_v23  ;;  %v13298_v38 = vrot.slane %v7342_v25, 5  ;;  %v10799_v19 = vld [vmem:[%s13831_s5 + $0x1e0] sm:$0xff]  }
 0x3c6   : > { %10019 = vmatprep.subr.bf16.mxu1 %v10779_v35  ;;  %v7348_v26 = vrot.slane %v7346_v37, 4 }
 0x3c7   : > { %v6823_v41 = vsel %vm11290_vm5, %v6821_v6, %v6822_v40  ;;  %v7335_v6 = vrot.slane %v7333_v17, 4  ;;  %v7338_v40 = vrot.slane %v7336_v46, 5  ;;  %v10800_v17 = vld [vmem:[%s13831_s5 + $0x1e8] sm:$0xff]  }
 0x3c8   : > { %10004 = vmatmul.mubr.bf16.gmra.mrb[32].mxu1 %v8983_v42  ;;  %v9022_v51 = vcombine.low %v6820_v61, %v6823_v41  ;;  %v7357_v61 = vshrl.u32 %v7290_v1, 16  ;;  %v7360_v41 = vshll.u32 %v7290_v1, 16 }
 0x3c9   : > { %10020 = vmatpush3.bf16.msra.mxu1 %v10779_v35  ;;  %10023 = vmatprep.mubr.bf16.mxu1 %v9016_v5  ;;  %v8999_v35 = vrot.slane %v6750_v60, 9  ;;  %v7366_v60 = vshll.u32 %v13291_v7, 16 }
 0x3ca   : > { %10021 = vmatprep.subr.bf16.mxu1 %v10780_v14 }
 0x3cb   : > { %v6827_v47 = vsel %vm11290_vm5, %v8999_v35, %v6826_v36  ;;  %v10798_v35 = vld [vmem:[#allocation3 + $0x54] sm:$0xff]   ;;  %v13318_v24 = vrot.slane %v7366_v60, 5  ;;  %v10803_v60 = vld [vmem:[%s13831_s5 + $0x1f0] sm:$0xff]  }
 0x3cc   : > { %v9023_v5 = vcombine.low %v6827_v47, %v6830_v20  ;;  %v7349_v47 = vor.u32 %v7348_v26, %v13298_v38 }
 0x3cd   : > { %10022 = vmatpush3.bf16.msra.mxu1 %v10780_v14  ;;  %v10788_v14 = vld [vmem:[%s13831_s5 + $0x1b8] sm:$0xff]  }
 0x3ce   : > { %10039 = vmatprep.subr.bf16.mxu1 %v10781_v50  ;;  %v7350_v25 = vrot.slane %v7349_v47, 4 }
 0x3d0   : > { %10024 = vmatmul.mubr.bf16.vlgmr.msra.gmra.mrb[20].mxu1 %v9017_v29  ;;  %v7318_v29 = vshll.u32 %v13262_v56, 16 }
 0x3d1   : > { %10040 = vmatpush3.bf16.msra.mxu1 %v10781_v50  ;;  %10027 = vmatprep.mubr.bf16.mxu1 %v9018_v21  ;;  %v7322_v21 = vshrl.u32 %v13262_v56, 16 }
 0x3d2   : > { %10041 = vmatprep.subr.bf16.mxu1 %v10782_v27  ;;  %v13284_v18 = vrot.slane %v7318_v29, 5 }
 0x3d3   : > { %v7324_v62 = vrot.slane %v7322_v21, 4 }
 0x3d5   : > { %10042 = vmatpush3.bf16.msra.mxu1 %v10782_v27  ;;  %v7311_v27 = vrot.slane %v7309_v12, 4  ;;  %v7325_v36 = vor.u32 %v7324_v62, %v13284_v18  ;;  %v7362_v12 = vrot.slane %v7360_v41, 5 }
 0x3d6   : > { %10043 = vmatprep.subr.bf16.mxu1 %v10783_v3 }
 0x3d8   : > { %10028 = vmatmul.mubr.bf16.gmra.mrb[24].mxu1 %v9019_v28 }
 0x3d9   : > { %10044 = vmatpush3.bf16.msra.mxu1 %v10783_v3  ;;  %10031 = vmatprep.mubr.bf16.mxu1 %v9020_v57  ;;  %v7315_v57 = vor.u32 %v7314_v4, %v7311_v27  ;;  %v13322_v27 = vld [vmem:[#allocation3 + $0x4c] sm:$0xf] }
 0x3da   : > { %10045 = vmatprep.subr.bf16.mxu1 %v10784_v2 }
 0x3db   : > { %v7316_v23 = vrot.slane %v7315_v57, 4 }
 0x3dd   : > { %10046 = vmatpush3.bf16.msra.mxu1 %v10784_v2  ;;  %v7321_v1 = vsel %vm11133_vm2, %v7316_v23, %v13284_v18 }
 0x3de   : > { %10047 = vmatprep.subr.bf16.mxu1 %v10785_v22 }
 0x3e0   : > { %10032 = vmatmul.mubr.bf16.gmra.mrb[28].mxu1 %v9021_v11  ;;  %v7330_v11 = vrot.slane %v7328_v44, 5 }
 0x3e1   : > { %10048 = vmatpush3.bf16.msra.mxu1 %v10785_v22  ;;  %10035 = vmatprep.mubr.bf16.mxu1 %v9022_v51  ;;  %v13301_v22 = vld [vmem:[#allocation3 + $0x2c] sm:$0x1]  ;;  %v7370_v51 = vshrl.u32 %v13291_v7, 16 }
 0x3e2   : > { %10049 = vmatprep.subr.bf16.mxu1 %v10786_v30  ;;  %v7352_v20 = vshll.u32 %v13301_v22, 16 }
 0x3e3   : > { %v13244_v48 = vpop.f32.mrb[4].mxu1  ;;  %v7372_v21 = vrot.slane %v7370_v51, 4 }
 0x3e4   : > { %v13246_v42 = vpop.f32.mrb[5].mxu1  ;;  %v7354_v37 = vrot.slane %v7352_v20, 5 }
 0x3e5   : > { %v13248_v15 = vpop.f32.mrb[6].mxu1  ;;  %10050 = vmatpush3.bf16.msra.mxu1 %v10786_v30  ;;  %v7339_v30 = vor.u32 %v7338_v40, %v7335_v6  ;;  %v7414_v6 = vshll.u32 %v13322_v27, 16  ;;  %v7418_v40 = vshrl.u32 %v13322_v27, 16 }
 0x3e6   : > { %v13250_v0 = vpop.f32.mrb[7].mxu1  ;;  %10051 = vmatprep.subr.bf16.mxu1 %v10787_v59 }
 0x3e7   : > { %v7340_v46 = vrot.slane %v7339_v30, 4 }
 0x3e8   : > { %10036 = vmatmul.mubr.bf16.gmra.mrb[32].mxu1 %v9023_v5 }
 0x3e9   : > { %10052 = vmatpush3.bf16.msra.mxu1 %v10787_v59  ;;  %10055 = vmatprep.mubr.bf16.mxu1 %v10789_v58  ;;  %v7293_v59 = vld [vmem:[#allocation3 + $0x3c] sm:$0xf]  ;;  %v10801_v58 = vld [vmem:[#allocation3 + $0x60] sm:$0xff]   ;;  %v7345_v18 = vsel %vm11133_vm2, %v7340_v46, %v13298_v38  ;;  %v10804_v46 = vld [vmem:[%s13831_s5 + $0x1f8] sm:$0xff]  }
 0x3ea   : > { %10053 = vmatprep.subr.bf16.mxu1 %v10788_v14  ;;  %v7381_v8 = vshrl.u32 %v7293_v59, 16 }
 0x3eb   : > { %v13258_v33 = vpop.f32.mrb[8].mxu1 }
 0x3ec   : > { %v13260_v9 = vpop.f32.mrb[9].mxu1 }
 0x3ed   : > { %v13264_v50 = vpop.f32.mrb[10].mxu1  ;;  %10054 = vmatpush3.bf16.msra.mxu1 %v10788_v14  ;;  %v7326_v14 = vrot.slane %v7325_v36, 4  ;;  %v7373_v36 = vor.u32 %v7372_v21, %v13318_v24 }
 0x3ee   : > { %v13266_v43 = vpop.f32.mrb[11].mxu1  ;;  %10071 = vmatprep.subr.bf16.mxu1 %v10791_v52 }
 0x3f0   : > { %10056 = vmatmul.mubr.bf16.vlgmr.msra.gmra.mrb[20].mxu1 %v10790_v63 }
 0x3f1   : > { %10072 = vmatpush3.bf16.msra.mxu1 %v10791_v52  ;;  %10059 = vmatprep.mubr.bf16.mxu1 %v10793_v16  ;;  %v13312_v52 = vld [vmem:[#allocation3 + $0x38] sm:$0x1]  ;;  %v7359_v16 = vrot.slane %v7357_v61, 4  ;;  %v7383_v61 = vrot.slane %v7381_v8, 4 }
 0x3f2   : > { %10073 = vmatprep.subr.bf16.mxu1 %v10792_v34  ;;  %v7376_v62 = vshll.u32 %v13312_v52, 16 }
 0x3f3   : > { %v13282_v3 = vpop.f32.mrb[12].mxu1  ;;  %v7363_v26 = vor.u32 %v7362_v12, %v7359_v16  ;;  %v7420_v16 = vrot.slane %v7418_v40, 4  ;;  %v7299_v12 = vld [vmem:[#allocation3 + $0x54] sm:$0xf] }
 0x3f4   : > { %v13286_v13 = vpop.f32.mrb[13].mxu1  ;;  %v7378_v51 = vrot.slane %v7376_v62, 5 }
 0x3f5   : > { %v13288_v28 = vpop.f32.mrb[14].mxu1  ;;  %10074 = vmatpush3.bf16.msra.mxu1 %v10792_v34  ;;  %v7296_v34 = vld [vmem:[#allocation3 + $0x48] sm:$0xf]  ;;  %v7364_v38 = vrot.slane %v7363_v26, 4 }
 0x3f6   : > { %v13293_v2 = vpop.f32.mrb[15].mxu1  ;;  %10075 = vmatprep.subr.bf16.mxu1 %v10795_v39  ;;  %v7405_v57 = vshrl.u32 %v7296_v34, 16  ;;  %v7408_v44 = vshll.u32 %v7296_v34, 16  ;;  %v7374_v34 = vrot.slane %v7373_v36, 4 }
 0x3f7   : > { %v7369_v40 = vsel %vm11133_vm2, %v7364_v38, %v13318_v24 }
 0x3f8   : > { %10060 = vmatmul.mubr.bf16.gmra.mrb[24].mxu1 %v10794_v31  ;;  %v7390_v31 = vshll.u32 %v13314_v32, 16  ;;  %v7407_v47 = vrot.slane %v7405_v57, 4  ;;  %v7410_v20 = vrot.slane %v7408_v44, 5  ;;  %v13364_v57 = vld [vmem:[#allocation3 + $0x64] sm:$0xf]  ;;  %v7379_v26 = vsel %vm11133_vm2, %v7374_v34, %v7378_v51  ;;  %v10806_v34 = vld [vmem:[%s13831_s5 + $0x208] sm:$0xff]  }
 0x3f9   : > { %10076 = vmatpush3.bf16.msra.mxu1 %v10795_v39  ;;  %10063 = vmatprep.mubr.bf16.mxu1 %v10797_v55  ;;  %v7384_v39 = vshll.u32 %v7293_v59, 16  ;;  %v7394_v55 = vshrl.u32 %v13314_v32, 16 }
 0x3fa   : > { %10077 = vmatprep.subr.bf16.mxu1 %v10796_v53  ;;  %v13350_v23 = vrot.slane %v7390_v31, 5  ;;  %v7411_v62 = vor.u32 %v7410_v20, %v7407_v47 }
 0x3fb   : > { %v13310_v5 = vpop.f32.mrb[16].mxu1  ;;  %v7386_v41 = vrot.slane %v7384_v39, 5  ;;  %v7396_v30 = vrot.slane %v7394_v55, 4  ;;  %v13357_v39 = vld [vmem:[#allocation3 + $0x58] sm:$0xf]  ;;  %v7429_v55 = vshrl.u32 %v7299_v12, 16 }
 0x3fc   : > { %v13316_v63 = vpop.f32.mrb[17].mxu1  ;;  %v7412_v47 = vrot.slane %v7411_v62, 4 }
 0x3fd   : > { %v13320_v29 = vpop.f32.mrb[18].mxu1  ;;  %10078 = vmatpush3.bf16.msra.mxu1 %v10796_v53  ;;  %v7331_v53 = vsel %vm11133_vm2, %v7326_v14, %v7330_v11  ;;  %v7355_v11 = vsel %vm11133_vm2, %v7350_v25, %v7354_v37  ;;  %v13354_v14 = vrot.slane %v7414_v6, 5  ;;  %v7387_v21 = vor.u32 %v7386_v41, %v7383_v61  ;;  %v10805_v41 = vld [vmem:[%s13831_s5 + $0x200] sm:$0xff]  }
 0x3fe   : > { %v13324_v4 = vpop.f32.mrb[19].mxu1  ;;  %10079 = vmatprep.subr.bf16.mxu1 %v10799_v19  ;;  %v9080_v59 = vcombine.low %v7321_v1, %v7331_v53  ;;  %v9081_v25 = vcombine.low %v7345_v18, %v7355_v11  ;;  %v7397_v37 = vor.u32 %v7396_v30, %v13350_v23  ;;  %v7432_v1 = vshll.u32 %v7299_v12, 16 }
 0x3ff   : > { %13881 = vst [vmem:[#allocation4_spill] sm:$0xff] %v13324_v4  ;;  %v7421_v44 = vor.u32 %v7420_v16, %v13354_v14  ;;  %v7438_v53 = vshll.u32 %v13357_v39, 16  ;;  %v7442_v6 = vshrl.u32 %v13357_v39, 16  ;;  %v7388_v36 = vrot.slane %v7387_v21, 4  ;;  %v13379_v16 = vld [vmem:[#allocation3 + $0x5c] sm:$0x1] }
 0x400   : > { %10064 = vmatmul.mubr.bf16.gmra.mrb[28].mxu1 %v10798_v35  ;;  %v13348_v35 = vld [vmem:[#allocation3 + $0x44] sm:$0x1]  ;;  %v7398_v30 = vrot.slane %v7397_v37, 4  ;;  %v7431_v24 = vrot.slane %v7429_v55, 4  ;;  %v7434_v51 = vrot.slane %v7432_v1, 5  ;;  %v9082_v21 = vcombine.low %v7369_v40, %v7379_v26 }
 0x401   : > { %10080 = vmatpush3.bf16.msra.mxu1 %v10799_v19  ;;  %10067 = vmatprep.mubr.bf16.mxu1 %v10801_v58  ;;  %v10802_v19 = vld [vmem:[#allocation3 + $0x6c] sm:$0xff]   ;;  %v7400_v8 = vshll.u32 %v13348_v35, 16  ;;  %v13381_v12 = vrot.slane %v7438_v53, 5  ;;  %v7444_v38 = vrot.slane %v7442_v6, 4  ;;  %v7448_v1 = vshll.u32 %v13379_v16, 16 }
 0x402   : > { %10081 = vmatprep.subr.bf16.mxu1 %v10800_v17  ;;  %v13352_v58 = vld [vmem:[#allocation3 + $0x50] sm:$0x1]  ;;  %v13394_v53 = vld [vmem:[#allocation3 + $0x68] sm:$0x1]  ;;  %v7417_v6 = vsel %vm11133_vm2, %v7412_v47, %v13354_v14  ;;  %v7435_v26 = vor.u32 %v7434_v51, %v7431_v24 }
 0x403   : > { %v7424_v31 = vshll.u32 %v13352_v58, 16  ;;  %v7402_v61 = vrot.slane %v7400_v8, 5  ;;  %v7305_v8 = vld [vmem:[#allocation3 + $0x6c] sm:$0xf]  ;;  %v13386_v55 = vld [vmem:[#allocation3 + $0x70] sm:$0xf] }
 0x404   : > { %v7450_v24 = vrot.slane %v7448_v1, 5 }
 0x405   : > { %10082 = vmatpush3.bf16.msra.mxu1 %v10800_v17  ;;  %v7302_v17 = vld [vmem:[#allocation3 + $0x60] sm:$0xf]  ;;  %v7426_v20 = vrot.slane %v7424_v31, 5 }
 0x406   : > { %10083 = vmatprep.subr.bf16.mxu1 %v10803_v60  ;;  %v7453_v18 = vshrl.u32 %v7302_v17, 16  ;;  %v7456_v11 = vshll.u32 %v7302_v17, 16 }
 0x408   : > { %10068 = vmatmul.mubr.bf16.gmra.mrb[32].mxu1 %v10802_v19  ;;  %v7462_v19 = vshll.u32 %v13364_v57, 16  ;;  %v7455_v17 = vrot.slane %v7453_v18, 4  ;;  %v7458_v37 = vrot.slane %v7456_v11, 5  ;;  %v7445_v18 = vor.u32 %v7444_v38, %v13381_v12 }
 0x409   : > { %10084 = vmatpush3.bf16.msra.mxu1 %v10803_v60  ;;  %10087 = vmatprep.mubr.bf16.mxu1 %v9080_v59  ;;  %v7466_v60 = vshrl.u32 %v13364_v57, 16  ;;  %v7422_v59 = vrot.slane %v7421_v44, 4  ;;  %v7393_v44 = vsel %vm11133_vm2, %v7388_v36, %v13350_v23  ;;  %v7477_v23 = vshrl.u32 %v7305_v8, 16 }
 0x40a   : > { %10085 = vmatprep.subr.bf16.mxu1 %v10804_v46  ;;  %v7464_v62 = vrot.slane %v7462_v19, 5  ;;  %v7480_v36 = vshll.u32 %v7305_v8, 16  ;;  %v7490_v11 = vshrl.u32 %v13386_v55, 16  ;;  %v7459_v14 = vor.u32 %v7458_v37, %v7455_v17  ;;  %v10808_v8 = vld [vmem:[%s13831_s5 + $0x218] sm:$0xff]  }
 0x40b   : > { %v7468_v31 = vrot.slane %v7466_v60, 4  ;;  %v7427_v40 = vsel %vm11133_vm2, %v7422_v59, %v7426_v20  ;;  %v7472_v60 = vshll.u32 %v13394_v53, 16  ;;  %v7436_v20 = vrot.slane %v7435_v26, 4 }
 0x40c   : > { %v9084_v47 = vcombine.low %v7417_v6, %v7427_v40  ;;  %v7479_v59 = vrot.slane %v7477_v23, 4  ;;  %v7482_v51 = vrot.slane %v7480_v36, 5  ;;  %v7460_v4 = vrot.slane %v7459_v14, 4  ;;  %v10809_v40 = vld [vmem:[%s13831_s5 + $0x220] sm:$0xff]   ;;  %v7710_v23 = vld [vmem:[#allocation3 + $0x18] sm:$0xe] }
 0x40d   : > { %10086 = vmatpush3.bf16.msra.mxu1 %v10804_v46  ;;  %v7403_v46 = vsel %vm11133_vm2, %v7398_v30, %v7402_v61  ;;  %v7486_v61 = vshll.u32 %v13386_v55, 16  ;;  %v7469_v19 = vor.u32 %v7468_v31, %v7464_v62  ;;  %v7474_v37 = vrot.slane %v7472_v60, 5  ;;  %v13411_v31 = vld [vmem:[#allocation3 + $0x74] sm:$0x1] }
 0x40e   : > { %10103 = vmatprep.subr.bf16.mxu1 %v10805_v41  ;;  %v9083_v30 = vcombine.low %v7393_v44, %v7403_v46  ;;  %v7441_v44 = vsel %vm11133_vm2, %v7436_v20, %v13381_v12  ;;  %v7483_v46 = vor.u32 %v7482_v51, %v7479_v59  ;;  %v7496_v6 = vshll.u32 %v13411_v31, 16  ;;  %v10811_v20 = vld [vmem:[%s13831_s5 + $0x230] sm:$0xff]   ;;  %v7712_v51 = vld [vmem:[#allocation3 + $0x30] sm:$0xe] }
 0x40f   : > { %v7488_v38 = vrot.slane %v7486_v61, 5  ;;  %v7470_v17 = vrot.slane %v7469_v19, 4  ;;  %v7465_v26 = vsel %vm11133_vm2, %v7460_v4, %v7464_v62  ;;  %v10810_v19 = vld [vmem:[%s13831_s5 + $0x228] sm:$0xff]   ;;  %v9096_v60 = vrot.slane %v7710_v23, 9 }
 0x410   : > { %10088 = vmatmul.mubr.bf16.vlgmr.msra.gmra.mrb[20].mxu1 %v9081_v25  ;;  %v10807_v25 = vld [vmem:[%s13831_s5 + $0x210] sm:$0xff]   ;;  %v7498_v14 = vrot.slane %v7496_v6, 5  ;;  %v7747_v4 = vrot.slane %v13278_v10, 5  ;;  %v7758_v59 = vrot.slane %v13291_v7, 5 }
 0x411   : > { %10104 = vmatpush3.bf16.msra.mxu1 %v10805_v41  ;;  %10091 = vmatprep.mubr.bf16.mxu1 %v9082_v21  ;;  %v7446_v41 = vrot.slane %v7445_v18, 4  ;;  %v7492_v21 = vrot.slane %v7490_v11, 4  ;;  %v7475_v12 = vsel %vm11133_vm2, %v7470_v17, %v7474_v37  ;;  %v7744_v18 = vrot.slane %v13262_v56, 5  ;;  %v10812_v17 = vld [vmem:[%s13831_s5 + $0x238] sm:$0xff]  }
 0x412   : > { %10105 = vmatprep.subr.bf16.mxu1 %v10806_v34  ;;  %v9086_v61 = vcombine.low %v7465_v26, %v7475_v12  ;;  %v7484_v11 = vrot.slane %v7483_v46, 4  ;;  %v9098_v37 = vrot.slane %v7712_v51, 9  ;;  %v7714_v26 = vld [vmem:[#allocation3 + $0x48] sm:$0xe] }
 0x413   : > { %v7493_v1 = vor.u32 %v7492_v21, %v7488_v38 }
 0x414   : > { %v7489_v56 = vsel %vm11133_vm2, %v7484_v11, %v7488_v38  ;;  %v9100_v11 = vrot.slane %v7714_v26, 9 }
 0x415   : > { %10106 = vmatpush3.bf16.msra.mxu1 %v10806_v34  ;;  %v7451_v34 = vsel %vm11133_vm2, %v7446_v41, %v7450_v24  ;;  %v7745_v41 = vsel %vm11290_vm5, %v9096_v60, %v7744_v18  ;;  %v7711_v24 = vld [vmem:[#allocation3 + $0x24] sm:$0xe] }
 0x416   : > { %10107 = vmatprep.subr.bf16.mxu1 %v10807_v25  ;;  %v9085_v36 = vcombine.low %v7441_v44, %v7451_v34  ;;  %v9097_v21 = vrot.slane %v7711_v24, 9  ;;  %v7760_v44 = vrot.slane %v7758_v59, 4  ;;  %v7761_v34 = vrot.slane %v13312_v52, 5 }
 0x417   : > { %v7772_v52 = vrot.slane %v13322_v27, 5 }
 0x418   : > { %10092 = vmatmul.mubr.bf16.gmra.mrb[24].mxu1 %v9083_v30  ;;  %v7746_v30 = vrot.slane %v7744_v18, 4  ;;  %v7762_v6 = vsel %vm11290_vm5, %v7760_v44, %v7761_v34  ;;  %v13490_v34 = vld [vmem:[%s13835_s9] ss:$0 sm:$0xff] }
 0x419   : > { %10108 = vmatpush3.bf16.msra.mxu1 %v10807_v25  ;;  %10095 = vmatprep.mubr.bf16.mxu1 %v9084_v47  ;;  %v7494_v25 = vrot.slane %v7493_v1, 4  ;;  %v7751_v47 = vrot.slane %v13273_v49, 5  ;;  %v7759_v1 = vsel %vm11290_vm5, %v9098_v37, %v7758_v59  ;;  %v7773_v60 = vsel %vm11290_vm5, %v9100_v11, %v7772_v52 }
 0x41a   : > { %10109 = vmatprep.subr.bf16.mxu1 %v10808_v8  ;;  %v7748_v10 = vsel %vm11290_vm5, %v7746_v30, %v7747_v4  ;;  %v9122_v18 = vcombine.low %v7759_v1, %v7762_v6  ;;  %v7715_v30 = vld [vmem:[#allocation3 + $0x54] sm:$0xe]  ;;  %v7786_v4 = vrot.slane %v13364_v57, 5  ;;  %v7793_v57 = vrot.slane %v13386_v55, 5  ;;  %v13509_v1 = vld [vmem:[%s13833_s7] ss:$0 sm:$0xff] }
 0x41b   : > { %v7499_v62 = vsel %vm11133_vm2, %v7494_v25, %v7498_v14  ;;  %v9120_v45 = vcombine.low %v7745_v41, %v7748_v10  ;;  %v7753_v49 = vrot.slane %v7751_v47, 4  ;;  %v7752_v7 = vsel %vm11290_vm5, %v9097_v21, %v7751_v47 }
 0x41c   : > { %v9087_v38 = vcombine.low %v7489_v56, %v7499_v62  ;;  %v7775_v25 = vrot.slane %v13352_v58, 5  ;;  %v7716_v58 = vld [vmem:[#allocation3 + $0x60] sm:$0xe]  ;;  %v9101_v47 = vrot.slane %v7715_v30, 9  ;;  %v7782_v41 = vrot.slane %v13379_v16, 5 }
 0x41d   : > { %10110 = vmatpush3.bf16.msra.mxu1 %v10808_v8  ;;  %v7754_v8 = vrot.slane %v13301_v22, 5  ;;  %v7765_v22 = vrot.slane %v13314_v32, 5  ;;  %v7774_v32 = vrot.slane %v7772_v52, 4  ;;  %v9102_v10 = vrot.slane %v7716_v58, 9 }
 0x41e   : > { %10111 = vmatprep.subr.bf16.mxu1 %v10809_v40  ;;  %v7788_v24 = vrot.slane %v7786_v4, 4  ;;  %v5129_v6 = vmul.f32 %v13248_v15, %v13490_v34  ;;  %v5132_v15 = vmul.f32 %v13258_v33, %v13490_v34  ;;  %v5130_v11 = vmul.f32 %v13490_v34, %v13260_v9 }
 0x41f   : > { %v7755_v46 = vsel %vm11290_vm5, %v7753_v49, %v7754_v8  ;;  %v7795_v8 = vrot.slane %v7793_v57, 4 }
 0x420   : > { %10096 = vmatmul.mubr.bf16.gmra.mrb[28].mxu1 %v9085_v36  ;;  %v9121_v12 = vcombine.low %v7752_v7, %v7755_v46  ;;  %v7767_v36 = vrot.slane %v7765_v22, 4  ;;  %v13495_v7 = vld [vmem:[%s13832_s6] ss:$0 sm:$0xff]  ;;  %v5126_v46 = vmul.f32 %v13490_v34, %v13246_v42  ;;  %v5127_v42 = vmul.f32 %v13490_v34, %v13250_v0 }
 0x421   : > { %10112 = vmatpush3.bf16.msra.mxu1 %v10809_v40  ;;  %10099 = vmatprep.mubr.bf16.mxu1 %v9086_v61  ;;  %v7713_v40 = vld [vmem:[#allocation3 + $0x3c] sm:$0xe]  ;;  %v7768_v61 = vrot.slane %v13348_v35, 5  ;;  %v7776_v35 = vsel %vm11290_vm5, %v7774_v32, %v7775_v25  ;;  %v5152_v25 = vadd.f32 %v13504_v54, %v5129_v6  ;;  %v5153_v58 = vadd.f32 %v13504_v54, %v5130_v11 }
 0x422   : > { %10113 = vmatprep.subr.bf16.mxu1 %v10810_v19  ;;  %v9099_v23 = vrot.slane %v7713_v40, 9  ;;  %v9124_v62 = vcombine.low %v7773_v60, %v7776_v35  ;;  %v5133_v60 = vmul.f32 %v13264_v50, %v13490_v34  ;;  %v5131_v50 = vmul.f32 %v13490_v34, %v13266_v43 }
 0x423   : > { %v7769_v27 = vsel %vm11290_vm5, %v7767_v36, %v7768_v61 }
 0x424   : > { %v7766_v14 = vsel %vm11290_vm5, %v9099_v23, %v7765_v22 }
 0x425   : > { %10114 = vmatpush3.bf16.msra.mxu1 %v10810_v19  ;;  %v7779_v19 = vrot.slane %v13357_v39, 5  ;;  %v9123_v56 = vcombine.low %v7766_v14, %v7769_v27  ;;  %v7789_v39 = vrot.slane %v13394_v53, 5 }
 0x426   : > { %10115 = vmatprep.subr.bf16.mxu1 %v10811_v20 }
 0x427   : > { %v7780_v59 = vsel %vm11290_vm5, %v9101_v47, %v7779_v19  ;;  %v7790_v16 = vsel %vm11290_vm5, %v7788_v24, %v7789_v39  ;;  %v5156_v39 = vadd.f32 %v13504_v54, %v5133_v60 }
 0x428   : > { %10100 = vmatmul.mubr.bf16.gmra.mrb[32].mxu1 %v9087_v38  ;;  %v7787_v38 = vsel %vm11290_vm5, %v9102_v10, %v7786_v4  ;;  %v5155_v4 = vadd.f32 %v13504_v54, %v5132_v15 }
 0x429   : > { %10116 = vmatpush3.bf16.msra.mxu1 %v10811_v20  ;;  %10119 = vmatprep.mubr.bf16.mxu1 %v9120_v45  ;;  %v7781_v20 = vrot.slane %v7779_v19, 4  ;;  %v7717_v45 = vld [vmem:[#allocation3 + $0x6c] sm:$0xe]  ;;  %v9126_v49 = vcombine.low %v7787_v38, %v7790_v16  ;;  %v5150_v19 = vadd.f32 %v13504_v54, %v5127_v42 }
 0x42a   : > { %10117 = vmatprep.subr.bf16.mxu1 %v10812_v17  ;;  %v9103_v53 = vrot.slane %v7717_v45, 9 }
 0x42b   : > { %v7783_v51 = vsel %vm11290_vm5, %v7781_v20, %v7782_v41 }
 0x42c   : > { %v9125_v21 = vcombine.low %v7780_v59, %v7783_v51  ;;  %v7794_v37 = vsel %vm11290_vm5, %v9103_v53, %v7793_v57 }
 0x42d   : > { %10118 = vmatpush3.bf16.msra.mxu1 %v10812_v17  ;;  %v7796_v17 = vrot.slane %v13411_v31, 5  ;;  %v5128_v31 = vmul.f32 %v13244_v48, %v13490_v34 }
 0x42f   : > { %v7797_v55 = vsel %vm11290_vm5, %v7795_v8, %v7796_v17  ;;  %v5154_v17 = vadd.f32 %v13504_v54, %v5131_v50 }
 0x430   : > { %10120 = vmatmul.mubr.bf16.vlgmr.msra.gmra.mrb[20].mxu1 %v9121_v12  ;;  %v9127_v44 = vcombine.low %v7794_v37, %v7797_v55  ;;  %v5151_v12 = vadd.f32 %v13504_v54, %v5128_v31 }
 0x431   : > { %10123 = vmatprep.mubr.bf16.mxu1 %v9122_v18  ;;  %v5149_v18 = vadd.f32 %v13504_v54, %v5126_v46 }
 0x438   : > { %10124 = vmatmul.mubr.bf16.gmra.mrb[24].mxu1 %v9123_v56 }
 0x439   : > { %10127 = vmatprep.mubr.bf16.mxu1 %v9124_v62 }
 0x440   : > { %10128 = vmatmul.mubr.bf16.gmra.mrb[28].mxu1 %v9125_v21 }
 0x441   : > { %10131 = vmatprep.mubr.bf16.mxu1 %v9126_v49 }
 0x448   : > { %10132 = vmatmul.mubr.bf16.gmra.mrb[32].mxu1 %v9127_v44  ;;  %v5136_v44 = vmul.f32 %v13282_v3, %v13490_v34 }
 0x503   : > { %v10121_v22 = vpop.f32.mrb[20].mxu1 }
 0x504   : > { %v8017_v40 = vmul.f32 %v10121_v22, %v13495_v7  ;;  %v7929_v48 = vpop.f32.mrb[21].mxu1 }
 0x505   : > { %v8015_v52 = vmul.f32 %v13495_v7, %v7929_v48  ;;  %v10122_v26 = vpop.f32.mrb[22].mxu1 }
 0x506   : > { %v8040_v23 = vadd.f32 %v13509_v1, %v8017_v40  ;;  %v8018_v36 = vmul.f32 %v10122_v26, %v13495_v7  ;;  %v7932_v61 = vpop.f32.mrb[23].mxu1 }
 0x507   : > { %v8038_v0 = vadd.f32 %v13509_v1, %v8015_v52  ;;  %v8016_v32 = vmul.f32 %v13495_v7, %v7932_v61  ;;  %v5134_v52 = vmul.f32 %v13490_v34, %v13286_v13 }
 0x508   : > { %v13528_v14 = vadd.f32 %v8040_v23, %v5151_v12  ;;  %v8041_v27 = vadd.f32 %v13509_v1, %v8018_v36  ;;  %v5159_v23 = vadd.f32 %v13504_v54, %v5136_v44 }
 0x509   : > { %v13534_v35 = vadd.f32 %v8038_v0, %v5149_v18  ;;  %v8039_v33 = vadd.f32 %v13509_v1, %v8016_v32 }
 0x50a   : > { %v8088_v9 = vmin.f32 %v13528_v14, 20.0  ;;  %v13538_v30 = vadd.f32 %v8041_v27, %v5152_v25  ;;  %v5137_v27 = vmul.f32 %v13288_v28, %v13490_v34  ;;  %vm8072_vm5 = vcmp.gt.f32.partialorder %v13528_v14, 20.0 }
 0x50b   : > { %v8086_v56 = vmin.f32 %v13534_v35, 20.0  ;;  %v13543_v62 = vadd.f32 %v8039_v33, %v5150_v19  ;;  %v10125_v47 = vpop.f32.mrb[24].mxu1  ;;  %v5157_v33 = vadd.f32 %v13504_v54, %v5134_v52  ;;  %vm8070_vm1 = vcmp.gt.f32.partialorder %v13534_v35, 20.0 }
 0x50c   : > { %v8106_v20 = vmul.f32 1.442695, %v8088_v9  ;;  %v8089_v41 = vmin.f32 %v13538_v30, 20.0  ;;  %v8021_v10 = vmul.f32 %v10125_v47, %v13495_v7  ;;  %v7945_v24 = vpop.f32.mrb[25].mxu1  ;;  %v5135_v9 = vmul.f32 %v13490_v34, %v13293_v2 }
 0x50d   : > { %v8102_v59 = vmul.f32 1.442695, %v8086_v56  ;;  %v8087_v51 = vmin.f32 %v13543_v62, 20.0  ;;  %v8019_v57 = vmul.f32 %v13495_v7, %v7945_v24  ;;  %v10126_v38 = vpop.f32.mrb[26].mxu1  ;;  %v5140_v56 = vmul.f32 %v13310_v5, %v13490_v34 }
 0x50e   : > { %10813 = vpow2.f32 %v8106_v20  ;;  %v8108_v16 = vmul.f32 1.442695, %v8089_v41  ;;  %v8044_v45 = vadd.f32 %v13509_v1, %v8021_v10  ;;  %v8022_v43 = vmul.f32 %v10126_v38, %v13495_v7  ;;  %v7948_v21 = vpop.f32.mrb[27].mxu1 }
 0x50f   : > { %10815 = vpow2.f32 %v8102_v59  ;;  %v8104_v49 = vmul.f32 1.442695, %v8087_v51  ;;  %v8042_v53 = vadd.f32 %v13509_v1, %v8019_v57  ;;  %v8020_v8 = vmul.f32 %v13495_v7, %v7948_v21 }
 0x510   : > { %10817 = vpow2.f32 %v8108_v16  ;;  %v13557_v37 = vadd.f32 %v8044_v45, %v5155_v4  ;;  %v8045_v55 = vadd.f32 %v13509_v1, %v8022_v43  ;;  %v5160_v43 = vadd.f32 %v13504_v54, %v5137_v27 }
 0x511   : > { %10819 = vpow2.f32 %v8104_v49  ;;  %v13562_v31 = vadd.f32 %v8042_v53, %v5153_v58  ;;  %v8043_v46 = vadd.f32 %v13509_v1, %v8020_v8  ;;  %v13597_v21 = vadd.f32 %v13504_v54, %v5135_v9 }
 0x512   : > { %v8092_v22 = vmin.f32 %v13557_v37, 20.0  ;;  %v13566_v6 = vadd.f32 %v8045_v55, %v5156_v39  ;;  %v13602_v8 = vadd.f32 %v13504_v54, %v5140_v56  ;;  %vm8073_vm4 = vcmp.gt.f32.partialorder %v13538_v30, 20.0 }
 0x513   : > { %v8090_v40 = vmin.f32 %v13562_v31, 20.0  ;;  %v13569_v48 = vadd.f32 %v8043_v46, %v5154_v17  ;;  %v10129_v42 = vpop.f32.mrb[28].mxu1  ;;  %v13606_v17 = vmul.f32 %v13490_v34, %v13316_v63  ;;  %vm8071_vm11 = vcmp.gt.f32.partialorder %v13543_v62, 20.0 }
 0x514   : > { %v8114_v26 = vmul.f32 1.442695, %v8092_v22  ;;  %v8093_v3 = vmin.f32 %v13566_v6, 20.0  ;;  %v8025_v12 = vmul.f32 %v10129_v42, %v13495_v7  ;;  %v7961_v18 = vpop.f32.mrb[29].mxu1  ;;  %vm8076_vm15 = vcmp.gt.f32.partialorder %v13557_v37, 20.0 }
 0x515   : > { %v8110_v36 = vmul.f32 1.442695, %v8090_v40  ;;  %v8091_v61 = vmin.f32 %v13569_v48, 20.0  ;;  %v8023_v15 = vmul.f32 %v13495_v7, %v7961_v18  ;;  %v10130_v11 = vpop.f32.mrb[30].mxu1  ;;  %vm8074_vm0 = vcmp.gt.f32.partialorder %v13562_v31, 20.0 }
 0x516   : > { %10821 = vpow2.f32 %v8114_v26  ;;  %v8116_v0 = vmul.f32 1.442695, %v8093_v3  ;;  %v8048_v32 = vadd.f32 %v13509_v1, %v8025_v12  ;;  %v8026_v13 = vmul.f32 %v10130_v11, %v13495_v7  ;;  %v7964_v25 = vpop.f32.mrb[31].mxu1 }
 0x517   : > { %10823 = vpow2.f32 %v8110_v36  ;;  %v8112_v19 = vmul.f32 1.442695, %v8091_v61  ;;  %v8046_v10 = vadd.f32 %v13509_v1, %v8023_v15  ;;  %v13617_v42 = vmul.f32 %v13495_v7, %v7964_v25 }
 0x518   : > { %v10814_v60 = vpop.eup %10813  ;;  %10825 = vpow2.f32 %v8116_v0  ;;  %v13585_v4 = vadd.f32 %v8048_v32, %v5159_v23  ;;  %v8049_v24 = vadd.f32 %v13509_v1, %v8026_v13  ;;  %vm8077_vm3 = vcmp.gt.f32.partialorder %v13566_v6, 20.0 }
 0x519   : > { %v10816_v58 = vpop.eup %10815  ;;  %v8152_v47 = vadd.f32 1.0, %v10814_v60  ;;  %v8155_v50 = vmul.f32 -0.5, %v10814_v60  ;;  %10827 = vpow2.f32 %v8112_v19  ;;  %v8158_v2 = vand.u32 2147483647, %v10814_v60 }
 0x51a   : > { %v10818_v20 = vpop.eup %10817  ;;  %v8134_v28 = vadd.f32 1.0, %v10816_v58  ;;  %v8137_v41 = vmul.f32 -0.5, %v10816_v58  ;;  %v8140_v59 = vand.u32 2147483647, %v10816_v58  ;;  %v13614_v40 = vadd.f32 %v8046_v10, %v5157_v33 }
 0x51b   : > { %v10820_v39 = vpop.eup %10819  ;;  %10829 = vlog2.f32 %v8152_v47  ;;  %v8161_v51 = vadd.f32 1.0, %v10818_v20  ;;  %v13591_v57 = vpop.f32.mrb[32].mxu1  ;;  %v8156_v38 = vadd.f32 1.0, %v8155_v50  ;;  %v8164_v16 = vmul.f32 -0.5, %v10818_v20 }
 0x51c   : > { %10831 = vlog2.f32 %v8134_v28  ;;  %v8138_v5 = vadd.f32 1.0, %v8137_v41  ;;  %v13593_v45 = vpop.f32.mrb[33].mxu1  ;;  %v8143_v49 = vadd.f32 1.0, %v10820_v39  ;;  %v8167_v55 = vand.u32 2147483647, %v10818_v20 }
 0x51d   : > { %10833 = vlog2.f32 %v8161_v51  ;;  %v13599_v53 = vpop.f32.mrb[34].mxu1  ;;  %v8146_v44 = vmul.f32 -0.5, %v10820_v39  ;;  %vm13610_vm2 = vcmp.lt.f32.partialorder %v8158_v2, 0.0004427343  ;;  %v8157_v26 = vmul.f32 %v10814_v60, %v8156_v38 }
 0x51e   : > { %v13608_v46 = vpop.f32.mrb[35].mxu1  ;;  %10835 = vlog2.f32 %v8143_v49  ;;  %v8139_v63 = vmul.f32 %v10816_v58, %v8138_v5  ;;  %vm13620_vm8 = vcmp.lt.f32.partialorder %v8140_v59, 0.0004427343  ;;  %v8165_v12 = vadd.f32 1.0, %v8164_v16 }
 0x51f   : > { %v13624_v18 = vadd.f32 %v8049_v24, %v5160_v43  ;;  %v8149_v36 = vand.u32 2147483647, %v10820_v39  ;;  %v8096_v11 = vmin.f32 %v13585_v4, 20.0  ;;  %vm13629_vm12 = vcmp.lt.f32.partialorder %v8167_v55, 0.0004427343 }
 0x520   : > { %v10822_v52 = vpop.eup %10821  ;;  %v8147_v13 = vadd.f32 1.0, %v8146_v44  ;;  %v8166_v28 = vmul.f32 %v10818_v20, %v8165_v12  ;;  %vm8075_vm9 = vcmp.gt.f32.partialorder %v13569_v48, 20.0  ;;  %v8027_v51 = vmul.f32 %v13495_v7, %v13593_v45 }
 0x521   : > { %v10824_v23 = vpop.eup %10823  ;;  %v8188_v61 = vadd.f32 1.0, %v10822_v52  ;;  %v8191_v15 = vmul.f32 -0.5, %v10822_v52  ;;  %v8194_v33 = vand.u32 2147483647, %v10822_v52  ;;  %v8122_v10 = vmul.f32 1.442695, %v8096_v11 }
 0x522   : > { %v10826_v0 = vpop.eup %10825  ;;  %v8170_v25 = vadd.f32 1.0, %v10824_v23  ;;  %v8173_v27 = vmul.f32 -0.5, %v10824_v23  ;;  %v8176_v56 = vand.u32 2147483647, %v10824_v23  ;;  %v8148_v59 = vmul.f32 %v10820_v39, %v8147_v13 }
 0x523   : > { %v13633_v19 = vpop.eup %10827  ;;  %10837 = vlog2.f32 %v8188_v61  ;;  %v8192_v60 = vadd.f32 1.0, %v8191_v15  ;;  %v8197_v9 = vadd.f32 1.0, %v10826_v0  ;;  %v8200_v47 = vmul.f32 -0.5, %v10826_v0 }
 0x524   : > { %10839 = vlog2.f32 %v8170_v25  ;;  %v8174_v58 = vadd.f32 1.0, %v8173_v27  ;;  %v8179_v41 = vadd.f32 1.0, %v13633_v19  ;;  %vm13637_vm13 = vcmp.lt.f32.partialorder %v8149_v36, 0.0004427343 }
 0x525   : > { %v10830_v50 = vpop.eup %10829  ;;  %10841 = vlog2.f32 %v8197_v9  ;;  %v8193_v38 = vmul.f32 %v10822_v52, %v8192_v60  ;;  %vm13641_vm14 = vcmp.lt.f32.partialorder %v8194_v33, 0.0004427343  ;;  %v8201_v49 = vadd.f32 1.0, %v8200_v47 }
 0x526   : > { %v10832_v24 = vpop.eup %10831  ;;  %v8154_v2 = vmul.f32 0.6931472, %v10830_v50  ;;  %v8203_v20 = vand.u32 2147483647, %v10826_v0  ;;  %10843 = vlog2.f32 %v8179_v41  ;;  %v8175_v39 = vmul.f32 %v10824_v23, %v8174_v58 }
 0x527   : > { %v10834_v5 = vpop.eup %10833  ;;  %v8136_v16 = vmul.f32 0.6931472, %v10832_v24  ;;  %vm13648_vm7 = vcmp.lt.f32.partialorder %v8176_v56, 0.0004427343  ;;  %v8182_v52 = vmul.f32 -0.5, %v13633_v19  ;;  %10845 = vpow2.f32 %v8122_v10 }
 0x528   : > { %v8160_v55 = vsel %vm13610_vm2, %v8157_v26, %v8154_v2  ;;  %v8163_v44 = vmul.f32 0.6931472, %v10834_v5  ;;  %v10836_v36 = vpop.eup %10835  ;;  %v8185_v22 = vand.u32 2147483647, %v13633_v19  ;;  %v8202_v3 = vmul.f32 %v10826_v0, %v8201_v49 }
 0x529   : > { %v8280_v61 = vsel %vm8072_vm5, %v13528_v14, %v8160_v55  ;;  %v8142_v15 = vsel %vm13620_vm8, %v8139_v63, %v8136_v16  ;;  %v8145_v11 = vmul.f32 0.6931472, %v10836_v36  ;;  %vm13669_vm10 = vcmp.lt.f32.partialorder %v8203_v20, 0.0004427343 }
 0x52a   : > { %10847 = vtanh.f32 %v8280_v61  ;;  %v8278_v26 = vsel %vm8070_vm1, %v13534_v35, %v8142_v15  ;;  %v8169_v23 = vsel %vm13629_vm12, %v8166_v28, %v8163_v44  ;;  %v8183_v32 = vadd.f32 1.0, %v8182_v52 }
 0x52b   : > { %10849 = vtanh.f32 %v8278_v26  ;;  %v8281_v63 = vsel %vm8073_vm4, %v13538_v30, %v8169_v23  ;;  %v8151_v25 = vsel %vm13637_vm13, %v8148_v59, %v8145_v11  ;;  %v8094_v27 = vmin.f32 %v13614_v40, 20.0 }
 0x52c   : > { %10851 = vtanh.f32 %v8281_v63  ;;  %v8279_v33 = vsel %vm8071_vm11, %v13543_v62, %v8151_v25  ;;  %v8097_v0 = vmin.f32 %v13624_v18, 20.0  ;;  %v8047_v9 = vadd.f32 %v13509_v1, %v13617_v42 }
 0x52d   : > { %v10838_v60 = vpop.eup %10837  ;;  %v8029_v58 = vmul.f32 %v13591_v57, %v13495_v7  ;;  %10853 = vtanh.f32 %v8279_v33  ;;  %vm13685_vm6 = vcmp.lt.f32.partialorder %v8185_v22, 0.0004427343  ;;  %v8118_v28 = vmul.f32 1.442695, %v8094_v27 }
 0x52e   : > { %v10840_v56 = vpop.eup %10839  ;;  %v8190_v47 = vmul.f32 0.6931472, %v10838_v60  ;;  %v8124_v24 = vmul.f32 1.442695, %v8097_v0  ;;  %v13690_v2 = vadd.f32 %v8047_v9, %v13597_v21  ;;  %v8184_v21 = vmul.f32 %v13633_v19, %v8183_v32  ;;  %v13898_v9 = vld [vmem:[#allocation4_spill] sm:$0xff] }
 0x52f   : > { %v10842_v41 = vpop.eup %10841  ;;  %v8172_v10 = vmul.f32 0.6931472, %v10840_v56  ;;  %v8052_v59 = vadd.f32 %v13509_v1, %v8029_v58  ;;  %10855 = vpow2.f32 %v8118_v28  ;;  %v8050_v36 = vadd.f32 %v13509_v1, %v8027_v51 }
 0x530   : > { %v8196_v42 = vsel %vm13641_vm14, %v8193_v38, %v8190_v47  ;;  %v8199_v57 = vmul.f32 0.6931472, %v10842_v41  ;;  %v10844_v5 = vpop.eup %10843  ;;  %10857 = vpow2.f32 %v8124_v24  ;;  %v8095_v19 = vmin.f32 %v13690_v2, 20.0 }
 0x531   : > { %v8284_v16 = vsel %vm8076_vm15, %v13557_v37, %v8196_v42  ;;  %v8178_v49 = vsel %vm13648_vm7, %v8175_v39, %v8172_v10  ;;  %v8181_v45 = vmul.f32 0.6931472, %v10844_v5  ;;  %v13708_v20 = vpop.eup %10845  ;;  %v13715_v44 = vadd.f32 %v8052_v59, %v13602_v8 }
 0x532   : > { %10859 = vtanh.f32 %v8284_v16  ;;  %v8282_v38 = vsel %vm8074_vm0, %v13562_v31, %v8178_v49  ;;  %v8205_v43 = vsel %vm13669_vm10, %v8202_v3, %v8199_v57  ;;  %v8224_v52 = vadd.f32 1.0, %v13708_v20 }
 0x533   : > { %10861 = vtanh.f32 %v8282_v38  ;;  %v8285_v55 = vsel %vm8077_vm3, %v13566_v6, %v8205_v43  ;;  %v8187_v12 = vsel %vm13685_vm6, %v8184_v21, %v8181_v45  ;;  %v8120_v8 = vmul.f32 1.442695, %v8095_v19 }
 0x534   : > { %v10848_v39 = vpop.eup %10847  ;;  %10863 = vtanh.f32 %v8285_v55  ;;  %v8283_v22 = vsel %vm8075_vm9, %v13569_v48, %v8187_v12  ;;  %v5161_v23 = vadd.f32 %v13504_v54, %v13606_v17  ;;  %v8030_v25 = vmul.f32 %v13599_v53, %v13495_v7 }
 0x535   : > { %v10850_v61 = vpop.eup %10849  ;;  %v8312_v15 = vmul.f32 %v10848_v39, %v13528_v14  ;;  %10865 = vtanh.f32 %v8283_v22  ;;  %v8100_v14 = vmin.f32 %v13715_v44, 20.0  ;;  %v5141_v17 = vmul.f32 %v13320_v29, %v13490_v34 }
 0x536   : > { %v10852_v26 = vpop.eup %10851  ;;  %v8310_v11 = vmul.f32 %v10850_v61, %v13534_v35  ;;  %10867 = vlog2.f32 %v8224_v52  ;;  %v13732_v13 = vadd.f32 %v8050_v36, %v5161_v23  ;;  %v8227_v27 = vmul.f32 -0.5, %v13708_v20 }
 0x537   : > { %8328 = vst [vmem:[%s11091_s14 + $0x10] sm:$0xff] %v8312_v15  ;;  %v8313_v63 = vmul.f32 %v10852_v26, %v13538_v30  ;;  %v10854_v3 = vpop.eup %10853  ;;  %10869 = vpow2.f32 %v8120_v8  ;;  %v8130_v32 = vmul.f32 1.442695, %v8100_v14  ;;  %v8053_v53 = vadd.f32 %v13509_v1, %v8030_v25 }
 0x538   : > { %8326 = vst [vmem:[%s11091_s14] sm:$0xff] %v8310_v11  ;;  %v8311_v35 = vmul.f32 %v10854_v3, %v13543_v62  ;;  %v8098_v60 = vmin.f32 %v13732_v13, 20.0  ;;  %v5139_v62 = vmul.f32 %v13490_v34, %v13898_v9  ;;  %v8028_v47 = vmul.f32 %v13495_v7, %v13608_v46 }
 0x539   : > { %8329 = vst [vmem:[%s11091_s14 + $0x18] sm:$0xff] %v8313_v63  ;;  %v13740_v30 = vpop.eup %10855  ;;  %10871 = vpow2.f32 %v8130_v32  ;;  %v5164_v28 = vadd.f32 %v13504_v54, %v5141_v17  ;;  %v8228_v59 = vadd.f32 1.0, %v8227_v27  ;;  %v8230_v42 = vand.u32 2147483647, %v13708_v20 }
 0x53a   : > { %v13744_v33 = vpop.eup %10857  ;;  %8327 = vst [vmem:[%s11091_s14 + $0x8] sm:$0xff] %v8311_v35  ;;  %v8206_v0 = vadd.f32 1.0, %v13740_v30  ;;  %v8126_v56 = vmul.f32 1.442695, %v8098_v60  ;;  %v5162_v57 = vadd.f32 %v13504_v54, %v5139_v62  ;;  %v8051_v51 = vadd.f32 %v13509_v1, %v8028_v47 }
 0x53b   : > { %v8233_v58 = vadd.f32 1.0, %v13744_v33  ;;  %v13760_v7 = vadd.f32 %v8053_v53, %v5164_v28  ;;  %v8229_v38 = vmul.f32 %v13708_v20, %v8228_v59  ;;  %vm8231_vm2 = vcmp.lt.f32.partialorder %v8230_v42, 0.0004427343 }
 0x53c   : > { %v10860_v29 = vpop.eup %10859  ;;  %10873 = vlog2.f32 %v8206_v0  ;;  %v13771_v43 = vadd.f32 %v8051_v51, %v5162_v57  ;;  %vm8080_vm5 = vcmp.gt.f32.partialorder %v13585_v4, 20.0  ;;  %v8212_v12 = vand.u32 2147483647, %v13740_v30 }
 0x53d   : > { %v10862_v50 = vpop.eup %10861  ;;  %v8316_v41 = vmul.f32 %v10860_v29, %v13557_v37  ;;  %10875 = vlog2.f32 %v8233_v58  ;;  %v8209_v37 = vmul.f32 -0.5, %v13740_v30  ;;  %v8101_v16 = vmin.f32 %v13760_v7, 20.0 }
 0x53e   : > { %v10864_v10 = vpop.eup %10863  ;;  %v8314_v24 = vmul.f32 %v10862_v50, %v13562_v31  ;;  %10877 = vpow2.f32 %v8126_v56  ;;  %v8239_v20 = vand.u32 2147483647, %v13744_v33  ;;  %vm8213_vm8 = vcmp.lt.f32.partialorder %v8212_v12, 0.0004427343 }
 0x53f   : > { %8332 = vst [vmem:[%s11091_s14 + $0x30] sm:$0xff] %v8316_v41  ;;  %v8317_v34 = vmul.f32 %v10864_v10, %v13566_v6  ;;  %v10866_v46 = vpop.eup %10865  ;;  %v8236_v6 = vmul.f32 -0.5, %v13744_v33  ;;  %v8132_v45 = vmul.f32 1.442695, %v8101_v16  ;;  %v8210_v55 = vadd.f32 1.0, %v8209_v37 }
 0x540   : > { %8330 = vst [vmem:[%s11091_s14 + $0x20] sm:$0xff] %v8314_v24  ;;  %v10868_v31 = vpop.eup %10867  ;;  %v8315_v5 = vmul.f32 %v10866_v46, %v13569_v48  ;;  %v8099_v48 = vmin.f32 %v13771_v43, 20.0  ;;  %vm8078_vm1 = vcmp.gt.f32.partialorder %v13614_v40, 20.0  ;;  %vm8240_vm4 = vcmp.lt.f32.partialorder %v8239_v20, 0.0004427343 }
 0x541   : > { %8333 = vst [vmem:[%s11091_s14 + $0x38] sm:$0xff] %v8317_v34  ;;  %v10870_v49 = vpop.eup %10869  ;;  %v8226_v21 = vmul.f32 0.6931472, %v10868_v31  ;;  %v8237_v52 = vadd.f32 1.0, %v8236_v6  ;;  %v8211_v26 = vmul.f32 %v13740_v30, %v8210_v55  ;;  %vm8081_vm12 = vcmp.gt.f32.partialorder %v13624_v18, 20.0 }
 0x542   : > { %8331 = vst [vmem:[%s11091_s14 + $0x28] sm:$0xff] %v8315_v5  ;;  %v8215_v54 = vadd.f32 1.0, %v10870_v49  ;;  %v8128_v15 = vmul.f32 1.442695, %v8099_v48  ;;  %v8218_v23 = vmul.f32 -0.5, %v10870_v49  ;;  %vm8079_vm13 = vcmp.gt.f32.partialorder %v13690_v2, 20.0 }
 0x543   : > { %v8232_v1 = vsel %vm8231_vm2, %v8229_v38, %v8226_v21  ;;  %v10872_v19 = vpop.eup %10871  ;;  %v8238_v14 = vmul.f32 %v13744_v33, %v8237_v52  ;;  %v8221_v60 = vand.u32 2147483647, %v10870_v49  ;;  %vm8084_vm15 = vcmp.gt.f32.partialorder %v13715_v44, 20.0 }
 0x544   : > { %v8288_v39 = vsel %vm8080_vm5, %v13585_v4, %v8232_v1  ;;  %10879 = vlog2.f32 %v8215_v54  ;;  %v8260_v36 = vadd.f32 1.0, %v10872_v19  ;;  %v8263_v32 = vmul.f32 -0.5, %v10872_v19 }
 0x545   : > { %10881 = vtanh.f32 %v8288_v39  ;;  %v8219_v27 = vadd.f32 1.0, %v8218_v23  ;;  %v8266_v62 = vand.u32 2147483647, %v10872_v19  ;;  %vm8222_vm11 = vcmp.lt.f32.partialorder %v8221_v60, 0.0004427343 }
 0x546   : > { %v10874_v61 = vpop.eup %10873  ;;  %10883 = vpow2.f32 %v8132_v45  ;;  %v8264_v0 = vadd.f32 1.0, %v8263_v32  ;;  %vm8082_vm0 = vcmp.gt.f32.partialorder %v13732_v13, 20.0  ;;  %vm8085_vm10 = vcmp.gt.f32.partialorder %v13760_v7, 20.0 }
 0x547   : > { %v10876_v22 = vpop.eup %10875  ;;  %v8208_v8 = vmul.f32 0.6931472, %v10874_v61  ;;  %10885 = vlog2.f32 %v8260_v36  ;;  %v8220_v9 = vmul.f32 %v10870_v49, %v8219_v27  ;;  %vm8267_vm14 = vcmp.lt.f32.partialorder %v8266_v62, 0.0004427343 }
 0x548   : > { %v10878_v11 = vpop.eup %10877  ;;  %v8235_v63 = vmul.f32 0.6931472, %v10876_v22  ;;  %10887 = vpow2.f32 %v8128_v15  ;;  %v8265_v34 = vmul.f32 %v10872_v19, %v8264_v0  ;;  %vm8083_vm6 = vcmp.gt.f32.partialorder %v13771_v43, 20.0 }
 0x549   : > { %v8214_v3 = vsel %vm8213_vm8, %v8211_v26, %v8208_v8  ;;  %v8242_v25 = vadd.f32 1.0, %v10878_v11  ;;  %v8245_v47 = vmul.f32 -0.5, %v10878_v11  ;;  %v8248_v51 = vand.u32 2147483647, %v10878_v11 }
 0x54a   : > { %v8286_v17 = vsel %vm8078_vm1, %v13614_v40, %v8214_v3  ;;  %v8241_v35 = vsel %vm8240_vm4, %v8238_v14, %v8235_v63 }
 0x54b   : > { %10889 = vtanh.f32 %v8286_v17  ;;  %v8289_v30 = vsel %vm8081_vm12, %v13624_v18, %v8241_v35  ;;  %v8246_v46 = vadd.f32 1.0, %v8245_v47  ;;  %vm8249_vm7 = vcmp.lt.f32.partialorder %v8248_v51, 0.0004427343 }
 0x54c   : > { %10891 = vtanh.f32 %v8289_v30 }
 0x54d   : > { %10893 = vlog2.f32 %v8242_v25  ;;  %v8247_v38 = vmul.f32 %v10878_v11, %v8246_v46 }
 0x54e   : > { %v10880_v33 = vpop.eup %10879 }
 0x54f   : > { %v10882_v53 = vpop.eup %10881  ;;  %v8217_v29 = vmul.f32 0.6931472, %v10880_v33 }
 0x550   : > { %v10884_v58 = vpop.eup %10883  ;;  %v8320_v56 = vmul.f32 %v10882_v53, %v13585_v4 }
 0x551   : > { %v10886_v50 = vpop.eup %10885  ;;  %v8223_v28 = vsel %vm8222_vm11, %v8220_v9, %v8217_v29  ;;  %v8269_v41 = vadd.f32 1.0, %v10884_v58  ;;  %v8272_v49 = vmul.f32 -0.5, %v10884_v58 }
 0x552   : > { %v10888_v10 = vpop.eup %10887  ;;  %8336 = vst [vmem:[%s11091_s14 + $0x50] sm:$0xff] %v8320_v56  ;;  %v8287_v24 = vsel %vm8079_vm13, %v13690_v2, %v8223_v28  ;;  %v8262_v59 = vmul.f32 0.6931472, %v10886_v50 }
 0x553   : > { %10895 = vtanh.f32 %v8287_v24  ;;  %v8251_v42 = vadd.f32 1.0, %v10888_v10  ;;  %v8254_v54 = vmul.f32 -0.5, %v10888_v10  ;;  %v8273_v55 = vadd.f32 1.0, %v8272_v49 }
 0x554   : > { %v8268_v4 = vsel %vm8267_vm14, %v8265_v34, %v8262_v59  ;;  %10897 = vlog2.f32 %v8269_v41  ;;  %v8257_v39 = vand.u32 2147483647, %v10888_v10 }
 0x555   : > { %v10890_v57 = vpop.eup %10889  ;;  %v8292_v37 = vsel %vm8084_vm15, %v13715_v44, %v8268_v4  ;;  %10899 = vlog2.f32 %v8251_v42  ;;  %v8255_v48 = vadd.f32 1.0, %v8254_v54  ;;  %v8274_v36 = vmul.f32 %v10884_v58, %v8273_v55 }
 0x556   : > { %v10892_v31 = vpop.eup %10891  ;;  %v8318_v5 = vmul.f32 %v10890_v57, %v13614_v40  ;;  %10901 = vtanh.f32 %v8292_v37  ;;  %v8275_v40 = vand.u32 2147483647, %v10884_v58  ;;  %vm8258_vm9 = vcmp.lt.f32.partialorder %v8257_v39, 0.0004427343 }
 0x557   : > { %v10894_v6 = vpop.eup %10893  ;;  %v8321_v16 = vmul.f32 %v10892_v31, %v13624_v18  ;;  %v8256_v22 = vmul.f32 %v10888_v10, %v8255_v48 }
 0x558   : > { %8334 = vst [vmem:[%s11091_s14 + $0x40] sm:$0xff] %v8318_v5  ;;  %v8244_v21 = vmul.f32 0.6931472, %v10894_v6  ;;  %vm8276_vm3 = vcmp.lt.f32.partialorder %v8275_v40, 0.0004427343 }
 0x559   : > { %8337 = vst [vmem:[%s11091_s14 + $0x58] sm:$0xff] %v8321_v16 }
 0x55a   : > { %v8250_v45 = vsel %vm8249_vm7, %v8247_v38, %v8244_v21 }
 0x55b   : > { %v8290_v1 = vsel %vm8082_vm0, %v13732_v13, %v8250_v45 }
 0x55c   : > { %10903 = vtanh.f32 %v8290_v1 }
 0x55d   : > { %v10896_v19 = vpop.eup %10895 }
 0x55e   : > { %v10898_v18 = vpop.eup %10897  ;;  %v8319_v12 = vmul.f32 %v10896_v19, %v13690_v2 }
 0x55f   : > { %v10900_v52 = vpop.eup %10899  ;;  %v8271_v20 = vmul.f32 0.6931472, %v10898_v18 }
 0x560   : > { %v10902_v61 = vpop.eup %10901  ;;  %8335 = vst [vmem:[%s11091_s14 + $0x48] sm:$0xff] %v8319_v12  ;;  %v8253_v15 = vmul.f32 0.6931472, %v10900_v52 }
 0x561   : > { %v8324_v8 = vmul.f32 %v10902_v61, %v13715_v44  ;;  %v8277_v26 = vsel %vm8276_vm3, %v8274_v36, %v8271_v20 }
 0x562   : > { %v8293_v2 = vsel %vm8085_vm10, %v13760_v7, %v8277_v26  ;;  %v8259_v23 = vsel %vm8258_vm9, %v8256_v22, %v8253_v15 }
 0x563   : > { %8340 = vst [vmem:[%s11091_s14 + $0x70] sm:$0xff] %v8324_v8  ;;  %10905 = vtanh.f32 %v8293_v2  ;;  %v8291_v11 = vsel %vm8083_vm6, %v13771_v43, %v8259_v23 }
 0x564   : > { %10907 = vtanh.f32 %v8291_v11 }
 0x566   : > { %v10904_v63 = vpop.eup %10903 }
 0x567   : > { %v8322_v14 = vmul.f32 %v10904_v63, %v13732_v13 }
 0x569   : > { %8338 = vst [vmem:[%s11091_s14 + $0x60] sm:$0xff] %v8322_v14 }
 0x56d   : > { %v10906_v44 = vpop.eup %10905 }
 0x56e   : > { %v10908_v3 = vpop.eup %10907  ;;  %v8325_v25 = vmul.f32 %v10906_v44, %v13760_v7 }
 0x56f   : > { %v8323_v17 = vmul.f32 %v10908_v3, %v13771_v43 }
 0x570   : > { %8341 = vst [vmem:[%s11091_s14 + $0x78] sm:$0xff] %v8325_v25 }
 0x571   : > { %8339 = vst [vmem:[%s11091_s14 + $0x68] sm:$0xff] %v8323_v17 }
 0x572 PF: > { %s21_s21 = sadd.s32 1, %s10947_s21   ;;  %s13899_s17 = smov %s10939_s19 }
 0x573   : > { %p18_p11 = scmp.ge.s32.totalorder %s21_s21, 6   ;;  %s13900_s18 = smov %s10943_s20 }
 0x574   : > { %s13901_s19 = smov %s13904_s22  ;;  %s13902_s20 = smov %s13908_s23 }
 0x575   :  { %20 = sbr.rel (!%p18_p11) target bundleno = 3 (0x3), region = 127 }

</bundles_post_ra>
